<compile_context>
chip_gen: v5e
topology: v5e:2x2
jax: 0.10.0
libtpu: 0.0.40
codegen_flags: <defaults>
</compile_context>

<pallas_src>
import jax
import jax.numpy as jnp
from jax.experimental import pallas as pl
from jax.experimental.pallas import tpu as pltpu


K = 5              # Conv1d kernel_size (both convs)
PAD = 2            # conv_pad padding
MPK, MPS = 5, 2    # MaxPool1d(kernel_size=5, stride=2)
CMID = 32          # hidden channel width of the module
N_BLOCKS = 4       # number of (res_block -> maxpool) stages


def _round_up(x, m):
    return -(-x // m) * m


# ----------------------------------------------------------------------------
# pltpu.roll support / sign-convention probe (tiny one-off kernel).
# ----------------------------------------------------------------------------
_ROLL_MODE = None


def _roll_mode():
    """Returns (use_roll, roll_matches_jnp_roll)."""
    global _ROLL_MODE
    if _ROLL_MODE is not None:
        return _ROLL_MODE
    try:
        def probe(x_ref, o_ref):
            o_ref[...] = pltpu.roll(x_ref[...], 1, axis=0)

        x = jnp.arange(8 * 128, dtype=jnp.float32).reshape(8, 128)
        y = jax.block_until_ready(
            pl.pallas_call(probe,
                           out_shape=jax.ShapeDtypeStruct((8, 128), jnp.float32))(x))
        if bool(jnp.array_equal(y, jnp.roll(x, 1, axis=0))):
            _ROLL_MODE = (True, True)      # pltpu.roll == jnp.roll convention
        elif bool(jnp.array_equal(y, jnp.roll(x, -1, axis=0))):
            _ROLL_MODE = (True, False)     # opposite convention
        else:
            _ROLL_MODE = (False, True)     # unexpected -> slice-based fallback
    except Exception:
        _ROLL_MODE = (False, True)         # roll unsupported -> fallback
    return _ROLL_MODE


# ----------------------------------------------------------------------------
# Fused forward kernel factory (NB batch rows per grid step, all in VMEM)
# ----------------------------------------------------------------------------
def _make_kernel(NB, stages, FLp, L5, use_roll, roll_fwd):
    # stages: static tuple of (L_logical, L_padded) for the 4 res_block+pool stages.

    def circ_shift(v, s, Lp):
        # circular shift along rows: u[i] = v[(i + s) % Lp]; caller masks invalid rows.
        t = s % Lp
        if t == 0:
            return v
        if use_roll:
            amt = (-s) % Lp if roll_fwd else t
            return pltpu.roll(v, amt, axis=0)
        # fallback: two-slice circular shift (correct, slower: relayout copies)
        return jnp.concatenate([v[t:, :], v[:t, :]], axis=0)

    def kernel(x_ref, w0_ref, b0_ref, wp_ref, bp_ref, w1_ref, b1_ref,
               w2_ref, b2_ref, wf_ref, bf_ref, o_ref, pool_ref, feat_ref):

        def conv_same(v, L, Lp):
            # 'same' zero-padded conv, channels-last:
            #   out[i] = b + sum_k v[i + k - PAD] @ W[k]   (zero outside [0, L))
            idx = jax.lax.broadcasted_iota(jnp.int32, (Lp, 1), 0)
            acc = None
            for k in range(K):
                s = k - PAD
                u = circ_shift(v, s, Lp)
                if s != 0:
                    valid = (idx + s >= 0) & (idx + s < L)
                    u = jnp.where(valid, u, 0.0)
                t = jnp.dot(u.astype(jnp.bfloat16), wp_ref[k],
                            preferred_element_type=jnp.float32)
                acc = t if acc is None else acc + t
            return acc + bp_ref[...]

        def res_block(res, L, Lp):
            h = jnp.maximum(conv_same(res, L, Lp), 0.0)
            y = conv_same(h, L, Lp) + res
            return jnp.maximum(y, 0.0)

        def maxpool(y, Lp):
            # 5-wide running max in-register, then one stride-2 subsample.
            m = y
            for k in range(1, MPK):
                m = jnp.maximum(m, circ_shift(y, k, Lp))
            pool_ref[pl.ds(0, Lp), :] = m
            return pool_ref[pl.ds(0, Lp // MPS, stride=MPS), :]

        def row_body(r, carry):
            # stage 0: Conv1d(Cin, 32, k=5, valid) == one im2col matmul
            cols = x_ref[r]                                       # (L0p, K*Cin)
            res = jnp.dot(cols.astype(jnp.bfloat16), w0_ref[...],
                          preferred_element_type=jnp.float32) + b0_ref[...]
            # 4 x (residual block -> maxpool); padded-length buffers, masked logic.
            for (L, Lp) in stages:
                res = maxpool(res_block(res, L, Lp), Lp)
            # final per-row feature block (FLp, 32), logical (L5, 32)
            off = pl.multiple_of(r * FLp, FLp)
            feat_ref[pl.ds(off, FLp), :] = res
            return carry

        jax.lax.fori_loop(0, NB, row_body, 0)

        # dense1 without any flatten/concat: h1[r] = sum_l feat[r, l, :] @ W1[l]
        acc = None
        for l in range(L5):
            sl = feat_ref[pl.ds(l, NB, stride=FLp), :]            # (NB, 32)
            t = jnp.dot(sl.astype(jnp.bfloat16), w1_ref[l],
                        preferred_element_type=jnp.float32)
            acc = t if acc is None else acc + t
        h = jnp.maximum(acc + b1_ref[...], 0.0)
        h = jnp.maximum(jnp.dot(h.astype(jnp.bfloat16), w2_ref[...],
                                preferred_element_type=jnp.float32)
                        + b2_ref[...], 0.0)
        logits = jnp.dot(h.astype(jnp.bfloat16), wf_ref[...],
                         preferred_element_type=jnp.float32) + bf_ref[...]

        # log_softmax(dim=1)
        m = jnp.max(logits, axis=-1, keepdims=True)
        z = logits - m
        lse = jnp.log(jnp.sum(jnp.exp(z), axis=-1, keepdims=True))
        o_ref[...] = z - lse

    return kernel


# ----------------------------------------------------------------------------
# Wrapper: one pallas_call for the whole forward pass
# ----------------------------------------------------------------------------
def anomaly_classifier_forward(x_ncl, params):
    """x_ncl: (B, Cin, L) PyTorch NCL layout -> (B, num_classes) log-probs."""
    use_roll, roll_fwd = _roll_mode()

    x = jnp.transpose(x_ncl, (0, 2, 1)).astype(jnp.float32)       # (B, Lin, Cin)
    B, Lin, Cin = x.shape
    NC = params["df_w"].shape[1]
    assert Lin >= K, "sequence too short for the first conv"

    # static length schedule: conv(valid,k=5) then 4 x (res_block -> maxpool)
    L0 = Lin - K + 1
    L0p = _round_up(L0, 8 * (2 ** N_BLOCKS))      # all padded lengths stay /8
    stages = []
    L, Lp = L0, L0p
    for _ in range(N_BLOCKS):
        assert L >= MPK, "sequence too short for a maxpool stage"
        stages.append((L, Lp))
        L = (L - MPK) // MPS + 1
        Lp //= 2
    L5, FLp = L, Lp
    F = CMID * L5
    assert params["d1_w"].shape[0] == F, "dense1 was built for a different length"

    # batch tiling: NB rows per grid step; keep grid >= 2 for v7x's two cores.
    NB = max(1, min(8, -(-B // 2)))
    G = -(-B // NB)
    Bp = G * NB

    # ---- trace-time prep (runs once in XLA, outside the kernel) ----
    # stage-0 im2col: cols[b, i, k*Cin + c] = x[b, i + k, c]
    cols = jnp.concatenate([x[:, k:k + L0, :] for k in range(K)], axis=2)
    cols = jnp.pad(cols, ((0, Bp - B), (0, L0p - L0), (0, 0)))
    KC0 = K * Cin

    # weights: im2col / per-tap layouts; bf16 MXU operands, f32 accumulation.
    w0 = params["conv_w"].reshape(KC0, CMID).astype(jnp.bfloat16)         # (20, 32)
    wp = params["convp_w"].astype(jnp.bfloat16)                            # (K, 32, 32)
    # dense1: PyTorch channel-major flatten index (c*L5 + l) -> per-position taps
    w1 = params["d1_w"].reshape(CMID, L5, CMID).transpose(1, 0, 2).astype(jnp.bfloat16)
    w2 = params["d2_w"].astype(jnp.bfloat16)
    wf = params["df_w"].astype(jnp.bfloat16)

    kernel = _make_kernel(NB, tuple(stages), FLp, L5, use_roll, roll_fwd)

    out = pl.pallas_call(
        kernel,
        out_shape=jax.ShapeDtypeStruct((G, NB, NC), jnp.float32),
        grid=(G,),
        in_specs=[
            pl.BlockSpec((NB, L0p, KC0), lambda i: (i, 0, 0)),    # stage-0 im2col rows
            pl.BlockSpec((KC0, CMID), lambda i: (0, 0)),          # conv weight
            pl.BlockSpec((1, CMID), lambda i: (0, 0)),
            pl.BlockSpec((K, CMID, CMID), lambda i: (0, 0, 0)),   # conv_pad weight/tap
            pl.BlockSpec((1, CMID), lambda i: (0, 0)),
            pl.BlockSpec((L5, CMID, CMID), lambda i: (0, 0, 0)),  # dense1 per position
            pl.BlockSpec((1, CMID), lambda i: (0, 0)),
            pl.BlockSpec((CMID, CMID), lambda i: (0, 0)),         # dense2
            pl.BlockSpec((1, CMID), lambda i: (0, 0)),
            pl.BlockSpec((CMID, NC), lambda i: (0, 0)),           # dense_final
            pl.BlockSpec((1, NC), lambda i: (0, 0)),
        ],
        out_specs=pl.BlockSpec((None, NB, NC), lambda i: (i, 0, 0)),
        scratch_shapes=[
            pltpu.VMEM((L0p, CMID), jnp.float32),        # maxpool staging
            pltpu.VMEM((NB * FLp, CMID), jnp.float32),   # per-row final features
        ],
        compiler_params=pltpu.CompilerParams(
            dimension_semantics=("parallel",)),          # batch chunks -> both TCs
    )(cols, w0, params["conv_b"], wp, params["convp_b"],
      w1, params["d1_b"], w2, params["d2_b"], wf, params["df_b"])

    return out.reshape(Bp, NC)[:B]


# ----------------------------------------------------------------------------
# Pure-JAX reference (for correctness checking only)
# ----------------------------------------------------------------------------
def _ref_forward(x_ncl, params):
    w0 = jnp.transpose(params["conv_w"], (2, 1, 0))   # (Cout, Cin, K)
    wp = jnp.transpose(params["convp_w"], (2, 1, 0))
    b0 = params["conv_b"].reshape(1, -1, 1)
    bp = params["convp_b"].reshape(1, -1, 1)

    def conv(x, w, b, pad):
        y = jax.lax.conv_general_dilated(
            x, w, window_strides=(1,), padding=[(pad, pad)],
            dimension_numbers=("NCH", "OIH", "NCH"))
        return y + b

    def maxpool(x):
        return jax.lax.reduce_window(x, -jnp.inf, jax.lax.max,
                                     (1, 1, MPK), (1, 1, MPS), "VALID")

    def block(res):
        h = jax.nn.relu(conv(res, wp, bp, PAD))
        return jax.nn.relu(conv(h, wp, bp, PAD) + res)

    res = conv(x_ncl.astype(jnp.float32), w0, b0, 0)
    for _ in range(N_BLOCKS):
        res = maxpool(block(res))
    B = x_ncl.shape[0]
    flat = res.reshape(B, -1)                                  # channel-major
    h = jax.nn.relu(flat @ params["d1_w"] + params["d1_b"])
    h = jax.nn.relu(h @ params["d2_w"] + params["d2_b"])
    logits = h @ params["df_w"] + params["df_b"]
    return jax.nn.log_softmax(logits, axis=1)


# ----------------------------------------------------------------------------
# Parameter init (PyTorch layouts converted once)
# ----------------------------------------------------------------------------
def init_params(key, input_size, num_classes, flattened_size):
    ks = jax.random.split(key, 10)
    sc = 0.1

    def rnd(k, shape):
        return (sc * jax.random.normal(k, shape)).astype(jnp.float32)

    # PyTorch conv weight (Cout, Cin, K) -> (K, Cin, Cout)
    conv_w = jnp.transpose(rnd(ks[0], (32, input_size, K)), (2, 1, 0))
    conv_b = rnd(ks[1], (1, 32))
    convp_w = jnp.transpose(rnd(ks[2], (32, 32, K)), (2, 1, 0))
    convp_b = rnd(ks[3], (1, 32))
    # PyTorch linear weight (out, in) -> (in, out)
    d1_w = jnp.transpose(rnd(ks[4], (32, flattened_size)))
    d1_b = rnd(ks[5], (1, 32))
    d2_w = jnp.transpose(rnd(ks[6], (32, 32)))
    d2_b = rnd(ks[7], (1, 32))
    df_w = jnp.transpose(rnd(ks[8], (num_classes, 32)))
    df_b = rnd(ks[9], (1, num_classes))
    return dict(conv_w=conv_w, conv_b=conv_b, convp_w=convp_w, convp_b=convp_b,
                d1_w=d1_w, d1_b=d1_b, d2_w=d2_w, d2_b=d2_b, df_w=df_w, df_b=df_b)


if __name__ == "__main__":
    B, Cin, Lseq = 5, 4, 128       # input_size=4 channels, sequence length 128
    num_classes = 5

    # length schedule: 128 -conv-> 124 -pool-> 60 -> 28 -> 12 -> 4
    l = Lseq - K + 1
    for _ in range(N_BLOCKS):
        l = (l - MPK) // MPS + 1
    flattened_size = CMID * l      # dense1 is built from the flattened size

    key = jax.random.PRNGKey(0)
    k_x, k_p = jax.random.split(key)
    x = jax.random.normal(k_x, (B, Cin, Lseq), dtype=jnp.float32)  # PyTorch NCL
    params = init_params(k_p, Cin, num_classes, flattened_size)

    out = jax.block_until_ready(anomaly_classifier_forward(x, params))
    ref = jax.block_until_ready(_ref_forward(x, params))

    assert out.shape == (B, num_classes)
    # log-softmax rows should exp-sum to ~1
    assert jnp.allclose(jnp.sum(jnp.exp(out), axis=1), 1.0, atol=1e-4)
    # match the pure-JAX reference (tolerance covers bf16 MXU operands, which
    # is also what the TPU default-precision matmul/conv uses)
    max_diff = float(jnp.max(jnp.abs(out - ref)))
    assert jnp.allclose(out, ref, atol=5e-2, rtol=5e-2), (
        "max abs diff vs reference: %f" % max_diff)
    print("KERNEL_OK")
</pallas_src>

<mosaic_0001>
module attributes {stable_mosaic.version = 11 : i64} {
  func.func @probe(%arg0: memref<8x128xf32, #tpu.memory_space<vmem>>, %arg1: memref<8x128xf32, #tpu.memory_space<vmem>>) attributes {dimension_semantics = [], scalar_prefetch = 0 : i64, scratch_operands = 0 : i64, tpu.core_type = #tpu.core_type<tc>} {
    %c0 = arith.constant 0 : index
    %c0_0 = arith.constant 0 : index
    %0 = vector.load %arg0[%c0, %c0_0] : memref<8x128xf32, #tpu.memory_space<vmem>>, vector<8x128xf32>
    %c1_i32 = arith.constant 1 : i32
    %1 = tpu.dynamic_rotate %0 by %c1_i32 dim 0 : vector<8x128xf32>, i32 -> vector<8x128xf32>
    %c0_1 = arith.constant 0 : index
    %c0_2 = arith.constant 0 : index
    %2 = vector.load %arg1[%c0_1, %c0_2] : memref<8x128xf32, #tpu.memory_space<vmem>>, vector<8x128xf32>
    tpu.vector_store %arg1[%c0_1, %c0_2], %1 {strides = array<i32>} : memref<8x128xf32, #tpu.memory_space<vmem>>, vector<8x128xf32>,
    return
  }
}

module attributes {stable_mosaic.version = 11 : i64} {
  func.func @kernel(%arg0: i32, %arg1: memref<3x128x20xf32, #tpu.memory_space<vmem>>, %arg2: memref<20x32xbf16, #tpu.memory_space<vmem>>, %arg3: memref<1x32xf32, #tpu.memory_space<vmem>>, %arg4: memref<5x32x32xbf16, #tpu.memory_space<vmem>>, %arg5: memref<1x32xf32, #tpu.memory_space<vmem>>, %arg6: memref<4x32x32xbf16, #tpu.memory_space<vmem>>, %arg7: memref<1x32xf32, #tpu.memory_space<vmem>>, %arg8: memref<32x32xbf16, #tpu.memory_space<vmem>>, %arg9: memref<1x32xf32, #tpu.memory_space<vmem>>, %arg10: memref<32x5xbf16, #tpu.memory_space<vmem>>, %arg11: memref<1x5xf32, #tpu.memory_space<vmem>>, %arg12: memref<1x3x5xf32, #tpu.memory_space<vmem>>, %arg13: memref<128x32xf32, #tpu.memory_space<vmem>>, %arg14: memref<24x32xf32, #tpu.memory_space<vmem>>) attributes {dimension_semantics = [#tpu.dimension_semantics<parallel>], iteration_bounds = array<i64: 2>, scalar_prefetch = 0 : i64, scratch_operands = 2 : i64, tpu.core_type = #tpu.core_type<tc>, window_params = [{transform_indices = @transform_0, window_bounds = array<i64: 3, 128, 20>}, {pipeline_mode = #tpu.pipeline_mode<synchronous>, transform_indices = @transform_1, window_bounds = array<i64: 20, 32>}, {pipeline_mode = #tpu.pipeline_mode<synchronous>, transform_indices = @transform_2, window_bounds = array<i64: 1, 32>}, {pipeline_mode = #tpu.pipeline_mode<synchronous>, transform_indices = @transform_3, window_bounds = array<i64: 5, 32, 32>}, {pipeline_mode = #tpu.pipeline_mode<synchronous>, transform_indices = @transform_4, window_bounds = array<i64: 1, 32>}, {pipeline_mode = #tpu.pipeline_mode<synchronous>, transform_indices = @transform_5, window_bounds = array<i64: 4, 32, 32>}, {pipeline_mode = #tpu.pipeline_mode<synchronous>, transform_indices = @transform_6, window_bounds = array<i64: 1, 32>}, {pipeline_mode = #tpu.pipeline_mode<synchronous>, transform_indices = @transform_7, window_bounds = array<i64: 32, 32>}, {pipeline_mode = #tpu.pipeline_mode<synchronous>, transform_indices = @transform_8, window_bounds = array<i64: 1, 32>}, {pipeline_mode = #tpu.pipeline_mode<synchronous>, transform_indices = @transform_9, window_bounds = array<i64: 32, 5>}, {pipeline_mode = #tpu.pipeline_mode<synchronous>, transform_indices = @transform_10, window_bounds = array<i64: 1, 5>}, {transform_indices = @transform_11, window_bounds = array<i64: 1, 3, 5>}]} {
    %c0_i32 = arith.constant 0 : i32
    %c3_i32 = arith.constant 3 : i32
    %0 = arith.addi %c0_i32, %c3_i32 : i32
    %c1_i32 = arith.constant 1 : i32
    scf.for %arg15 = %c0_i32 to %0 step %c1_i32  : i32 {
      %56 = arith.index_cast %arg15 : i32 to index
      %c0_39 = arith.constant 0 : index
      %c0_40 = arith.constant 0 : index
      %57 = vector.load %arg1[%56, %c0_39, %c0_40] : memref<3x128x20xf32, #tpu.memory_space<vmem>>, vector<1x128x20xf32>
      %58 = vector.shape_cast %57 : vector<1x128x20xf32> to vector<128x20xf32>
      %59 = arith.truncf %58 : vector<128x20xf32> to vector<128x20xbf16>
      %c0_41 = arith.constant 0 : index
      %c0_42 = arith.constant 0 : index
      %60 = vector.load %arg2[%c0_41, %c0_42] : memref<20x32xbf16, #tpu.memory_space<vmem>>, vector<20x32xbf16>
      %cst_43 = arith.constant dense<0.000000e+00> : vector<128x32xf32>
      %61 = tpu.matmul %59, %60, %cst_43 {dimension_numbers = #tpu.dot_dimension_numbers<[1], [0], [0], [1], [0, 0, 1, 1], [], []>} : vector<128x20xbf16>, vector<20x32xbf16>, vector<128x32xf32> -> vector<128x32xf32>
      %c0_44 = arith.constant 0 : index
      %c0_45 = arith.constant 0 : index
      %62 = vector.load %arg3[%c0_44, %c0_45] : memref<1x32xf32, #tpu.memory_space<vmem>>, vector<1x32xf32>
      %63 = vector.broadcast %62 : vector<1x32xf32> to vector<128x32xf32>
      %64 = arith.addf %61, %63 : vector<128x32xf32>
      %65 = tpu.iota {dimensions = array<i32: 0>} : vector<128x1xi32>
      %66 = vector.extract_strided_slice %64 {offsets = [126, 0], sizes = [2, 32], strides = [1, 1]} : vector<128x32xf32> to vector<2x32xf32>
      %67 = vector.extract_strided_slice %64 {offsets = [0, 0], sizes = [126, 32], strides = [1, 1]} : vector<128x32xf32> to vector<126x32xf32>
      %68 = tpu.concatenate %66, %67 in 0 : vector<2x32xf32>, vector<126x32xf32> -> vector<128x32xf32>
      %c-2_i32 = arith.constant -2 : i32
      %69 = vector.broadcast %c-2_i32 : i32 to vector<128x1xi32>
      %70 = arith.addi %65, %69 : vector<128x1xi32>
      %c0_i32_46 = arith.constant 0 : i32
      %71 = vector.broadcast %c0_i32_46 : i32 to vector<128x1xi32>
      %72 = arith.cmpi sge, %70, %71 : vector<128x1xi32>
      %c-2_i32_47 = arith.constant -2 : i32
      %73 = vector.broadcast %c-2_i32_47 : i32 to vector<128x1xi32>
      %74 = arith.addi %65, %73 : vector<128x1xi32>
      %c124_i32 = arith.constant 124 : i32
      %75 = vector.broadcast %c124_i32 : i32 to vector<128x1xi32>
      %76 = arith.cmpi slt, %74, %75 : vector<128x1xi32>
      %77 = arith.andi %72, %76 : vector<128x1xi1>
      %cst_48 = arith.constant 0.000000e+00 : f32
      %78 = vector.shape_cast %77 : vector<128x1xi1> to vector<128x1xi1>
      %79 = vector.broadcast %78 : vector<128x1xi1> to vector<128x32xi1>
      %80 = vector.broadcast %cst_48 : f32 to vector<128x32xf32>
      %81 = arith.select %79, %68, %80 : vector<128x32xi1>, vector<128x32xf32>
      %82 = arith.truncf %81 : vector<128x32xf32> to vector<128x32xbf16>
      %c0_49 = arith.constant 0 : index
      %c0_50 = arith.constant 0 : index
      %c0_51 = arith.constant 0 : index
      %83 = vector.load %arg4[%c0_49, %c0_50, %c0_51] : memref<5x32x32xbf16, #tpu.memory_space<vmem>>, vector<1x32x32xbf16>
      %84 = vector.shape_cast %83 : vector<1x32x32xbf16> to vector<32x32xbf16>
      %cst_52 = arith.constant dense<0.000000e+00> : vector<128x32xf32>
      %85 = tpu.matmul %82, %84, %cst_52 {dimension_numbers = #tpu.dot_dimension_numbers<[1], [0], [0], [1], [0, 0, 1, 1], [], []>} : vector<128x32xbf16>, vector<32x32xbf16>, vector<128x32xf32> -> vector<128x32xf32>
      %86 = vector.extract_strided_slice %64 {offsets = [127, 0], sizes = [1, 32], strides = [1, 1]} : vector<128x32xf32> to vector<1x32xf32>
      %87 = vector.extract_strided_slice %64 {offsets = [0, 0], sizes = [127, 32], strides = [1, 1]} : vector<128x32xf32> to vector<127x32xf32>
      %88 = tpu.concatenate %86, %87 in 0 : vector<1x32xf32>, vector<127x32xf32> -> vector<128x32xf32>
      %c-1_i32 = arith.constant -1 : i32
      %89 = vector.broadcast %c-1_i32 : i32 to vector<128x1xi32>
      %90 = arith.addi %65, %89 : vector<128x1xi32>
      %c0_i32_53 = arith.constant 0 : i32
      %91 = vector.broadcast %c0_i32_53 : i32 to vector<128x1xi32>
      %92 = arith.cmpi sge, %90, %91 : vector<128x1xi32>
      %c-1_i32_54 = arith.constant -1 : i32
      %93 = vector.broadcast %c-1_i32_54 : i32 to vector<128x1xi32>
      %94 = arith.addi %65, %93 : vector<128x1xi32>
      %c124_i32_55 = arith.constant 124 : i32
      %95 = vector.broadcast %c124_i32_55 : i32 to vector<128x1xi32>
      %96 = arith.cmpi slt, %94, %95 : vector<128x1xi32>
      %97 = arith.andi %92, %96 : vector<128x1xi1>
      %cst_56 = arith.constant 0.000000e+00 : f32
      %98 = vector.shape_cast %97 : vector<128x1xi1> to vector<128x1xi1>
      %99 = vector.broadcast %98 : vector<128x1xi1> to vector<128x32xi1>
      %100 = vector.broadcast %cst_56 : f32 to vector<128x32xf32>
      %101 = arith.select %99, %88, %100 : vector<128x32xi1>, vector<128x32xf32>
      %102 = arith.truncf %101 : vector<128x32xf32> to vector<128x32xbf16>
      %c1_57 = arith.constant 1 : index
      %c0_58 = arith.constant 0 : index
      %c0_59 = arith.constant 0 : index
      %103 = vector.load %arg4[%c1_57, %c0_58, %c0_59] : memref<5x32x32xbf16, #tpu.memory_space<vmem>>, vector<1x32x32xbf16>
      %104 = vector.shape_cast %103 : vector<1x32x32xbf16> to vector<32x32xbf16>
      %cst_60 = arith.constant dense<0.000000e+00> : vector<128x32xf32>
      %105 = tpu.matmul %102, %104, %cst_60 {dimension_numbers = #tpu.dot_dimension_numbers<[1], [0], [0], [1], [0, 0, 1, 1], [], []>} : vector<128x32xbf16>, vector<32x32xbf16>, vector<128x32xf32> -> vector<128x32xf32>
      %106 = arith.addf %85, %105 : vector<128x32xf32>
      %107 = arith.truncf %64 : vector<128x32xf32> to vector<128x32xbf16>
      %c2_61 = arith.constant 2 : index
      %c0_62 = arith.constant 0 : index
      %c0_63 = arith.constant 0 : index
      %108 = vector.load %arg4[%c2_61, %c0_62, %c0_63] : memref<5x32x32xbf16, #tpu.memory_space<vmem>>, vector<1x32x32xbf16>
      %109 = vector.shape_cast %108 : vector<1x32x32xbf16> to vector<32x32xbf16>
      %cst_64 = arith.constant dense<0.000000e+00> : vector<128x32xf32>
      %110 = tpu.matmul %107, %109, %cst_64 {dimension_numbers = #tpu.dot_dimension_numbers<[1], [0], [0], [1], [0, 0, 1, 1], [], []>} : vector<128x32xbf16>, vector<32x32xbf16>, vector<128x32xf32> -> vector<128x32xf32>
      %111 = arith.addf %106, %110 : vector<128x32xf32>
      %112 = vector.extract_strided_slice %64 {offsets = [1, 0], sizes = [127, 32], strides = [1, 1]} : vector<128x32xf32> to vector<127x32xf32>
      %113 = vector.extract_strided_slice %64 {offsets = [0, 0], sizes = [1, 32], strides = [1, 1]} : vector<128x32xf32> to vector<1x32xf32>
      %114 = tpu.concatenate %112, %113 in 0 : vector<127x32xf32>, vector<1x32xf32> -> vector<128x32xf32>
      %c1_i32_65 = arith.constant 1 : i32
      %115 = vector.broadcast %c1_i32_65 : i32 to vector<128x1xi32>
      %116 = arith.addi %65, %115 : vector<128x1xi32>
      %c0_i32_66 = arith.constant 0 : i32
      %117 = vector.broadcast %c0_i32_66 : i32 to vector<128x1xi32>
      %118 = arith.cmpi sge, %116, %117 : vector<128x1xi32>
      %c1_i32_67 = arith.constant 1 : i32
      %119 = vector.broadcast %c1_i32_67 : i32 to vector<128x1xi32>
      %120 = arith.addi %65, %119 : vector<128x1xi32>
      %c124_i32_68 = arith.constant 124 : i32
      %121 = vector.broadcast %c124_i32_68 : i32 to vector<128x1xi32>
      %122 = arith.cmpi slt, %120, %121 : vector<128x1xi32>
      %123 = arith.andi %118, %122 : vector<128x1xi1>
      %cst_69 = arith.constant 0.000000e+00 : f32
      %124 = vector.shape_cast %123 : vector<128x1xi1> to vector<128x1xi1>
      %125 = vector.broadcast %124 : vector<128x1xi1> to vector<128x32xi1>
      %126 = vector.broadcast %cst_69 : f32 to vector<128x32xf32>
      %127 = arith.select %125, %114, %126 : vector<128x32xi1>, vector<128x32xf32>
      %128 = arith.truncf %127 : vector<128x32xf32> to vector<128x32xbf16>
      %c3_70 = arith.constant 3 : index
      %c0_71 = arith.constant 0 : index
      %c0_72 = arith.constant 0 : index
      %129 = vector.load %arg4[%c3_70, %c0_71, %c0_72] : memref<5x32x32xbf16, #tpu.memory_space<vmem>>, vector<1x32x32xbf16>
      %130 = vector.shape_cast %129 : vector<1x32x32xbf16> to vector<32x32xbf16>
      %cst_73 = arith.constant dense<0.000000e+00> : vector<128x32xf32>
      %131 = tpu.matmul %128, %130, %cst_73 {dimension_numbers = #tpu.dot_dimension_numbers<[1], [0], [0], [1], [0, 0, 1, 1], [], []>} : vector<128x32xbf16>, vector<32x32xbf16>, vector<128x32xf32> -> vector<128x32xf32>
      %132 = arith.addf %111, %131 : vector<128x32xf32>
      %133 = vector.extract_strided_slice %64 {offsets = [2, 0], sizes = [126, 32], strides = [1, 1]} : vector<128x32xf32> to vector<126x32xf32>
      %134 = vector.extract_strided_slice %64 {offsets = [0, 0], sizes = [2, 32], strides = [1, 1]} : vector<128x32xf32> to vector<2x32xf32>
      %135 = tpu.concatenate %133, %134 in 0 : vector<126x32xf32>, vector<2x32xf32> -> vector<128x32xf32>
      %c2_i32 = arith.constant 2 : i32
      %136 = vector.broadcast %c2_i32 : i32 to vector<128x1xi32>
      %137 = arith.addi %65, %136 : vector<128x1xi32>
      %c0_i32_74 = arith.constant 0 : i32
      %138 = vector.broadcast %c0_i32_74 : i32 to vector<128x1xi32>
      %139 = arith.cmpi sge, %137, %138 : vector<128x1xi32>
      %c2_i32_75 = arith.constant 2 : i32
      %140 = vector.broadcast %c2_i32_75 : i32 to vector<128x1xi32>
      %141 = arith.addi %65, %140 : vector<128x1xi32>
      %c124_i32_76 = arith.constant 124 : i32
      %142 = vector.broadcast %c124_i32_76 : i32 to vector<128x1xi32>
      %143 = arith.cmpi slt, %141, %142 : vector<128x1xi32>
      %144 = arith.andi %139, %143 : vector<128x1xi1>
      %cst_77 = arith.constant 0.000000e+00 : f32
      %145 = vector.shape_cast %144 : vector<128x1xi1> to vector<128x1xi1>
      %146 = vector.broadcast %145 : vector<128x1xi1> to vector<128x32xi1>
      %147 = vector.broadcast %cst_77 : f32 to vector<128x32xf32>
      %148 = arith.select %146, %135, %147 : vector<128x32xi1>, vector<128x32xf32>
      %149 = arith.truncf %148 : vector<128x32xf32> to vector<128x32xbf16>
      %c4 = arith.constant 4 : index
      %c0_78 = arith.constant 0 : index
      %c0_79 = arith.constant 0 : index
      %150 = vector.load %arg4[%c4, %c0_78, %c0_79] : memref<5x32x32xbf16, #tpu.memory_space<vmem>>, vector<1x32x32xbf16>
      %151 = vector.shape_cast %150 : vector<1x32x32xbf16> to vector<32x32xbf16>
      %cst_80 = arith.constant dense<0.000000e+00> : vector<128x32xf32>
      %152 = tpu.matmul %149, %151, %cst_80 {dimension_numbers = #tpu.dot_dimension_numbers<[1], [0], [0], [1], [0, 0, 1, 1], [], []>} : vector<128x32xbf16>, vector<32x32xbf16>, vector<128x32xf32> -> vector<128x32xf32>
      %153 = arith.addf %132, %152 : vector<128x32xf32>
      %c0_81 = arith.constant 0 : index
      %c0_82 = arith.constant 0 : index
      %154 = vector.load %arg5[%c0_81, %c0_82] : memref<1x32xf32, #tpu.memory_space<vmem>>, vector<1x32xf32>
      %155 = vector.broadcast %154 : vector<1x32xf32> to vector<128x32xf32>
      %156 = arith.addf %153, %155 : vector<128x32xf32>
      %cst_83 = arith.constant 0.000000e+00 : f32
      %157 = vector.broadcast %cst_83 : f32 to vector<128x32xf32>
      %158 = arith.maximumf %156, %157 : vector<128x32xf32>
      %159 = tpu.iota {dimensions = array<i32: 0>} : vector<128x1xi32>
      %160 = vector.extract_strided_slice %158 {offsets = [126, 0], sizes = [2, 32], strides = [1, 1]} : vector<128x32xf32> to vector<2x32xf32>
      %161 = vector.extract_strided_slice %158 {offsets = [0, 0], sizes = [126, 32], strides = [1, 1]} : vector<128x32xf32> to vector<126x32xf32>
      %162 = tpu.concatenate %160, %161 in 0 : vector<2x32xf32>, vector<126x32xf32> -> vector<128x32xf32>
      %c-2_i32_84 = arith.constant -2 : i32
      %163 = vector.broadcast %c-2_i32_84 : i32 to vector<128x1xi32>
      %164 = arith.addi %159, %163 : vector<128x1xi32>
      %c0_i32_85 = arith.constant 0 : i32
      %165 = vector.broadcast %c0_i32_85 : i32 to vector<128x1xi32>
      %166 = arith.cmpi sge, %164, %165 : vector<128x1xi32>
      %c-2_i32_86 = arith.constant -2 : i32
      %167 = vector.broadcast %c-2_i32_86 : i32 to vector<128x1xi32>
      %168 = arith.addi %159, %167 : vector<128x1xi32>
      %c124_i32_87 = arith.constant 124 : i32
      %169 = vector.broadcast %c124_i32_87 : i32 to vector<128x1xi32>
      %170 = arith.cmpi slt, %168, %169 : vector<128x1xi32>
      %171 = arith.andi %166, %170 : vector<128x1xi1>
      %cst_88 = arith.constant 0.000000e+00 : f32
      %172 = vector.shape_cast %171 : vector<128x1xi1> to vector<128x1xi1>
      %173 = vector.broadcast %172 : vector<128x1xi1> to vector<128x32xi1>
      %174 = vector.broadcast %cst_88 : f32 to vector<128x32xf32>
      %175 = arith.select %173, %162, %174 : vector<128x32xi1>, vector<128x32xf32>
      %176 = arith.truncf %175 : vector<128x32xf32> to vector<128x32xbf16>
      %c0_89 = arith.constant 0 : index
      %c0_90 = arith.constant 0 : index
      %c0_91 = arith.constant 0 : index
      %177 = vector.load %arg4[%c0_89, %c0_90, %c0_91] : memref<5x32x32xbf16, #tpu.memory_space<vmem>>, vector<1x32x32xbf16>
      %178 = vector.shape_cast %177 : vector<1x32x32xbf16> to vector<32x32xbf16>
      %cst_92 = arith.constant dense<0.000000e+00> : vector<128x32xf32>
      %179 = tpu.matmul %176, %178, %cst_92 {dimension_numbers = #tpu.dot_dimension_numbers<[1], [0], [0], [1], [0, 0, 1, 1], [], []>} : vector<128x32xbf16>, vector<32x32xbf16>, vector<128x32xf32> -> vector<128x32xf32>
      %180 = vector.extract_strided_slice %158 {offsets = [127, 0], sizes = [1, 32], strides = [1, 1]} : vector<128x32xf32> to vector<1x32xf32>
      %181 = vector.extract_strided_slice %158 {offsets = [0, 0], sizes = [127, 32], strides = [1, 1]} : vector<128x32xf32> to vector<127x32xf32>
      %182 = tpu.concatenate %180, %181 in 0 : vector<1x32xf32>, vector<127x32xf32> -> vector<128x32xf32>
      %c-1_i32_93 = arith.constant -1 : i32
      %183 = vector.broadcast %c-1_i32_93 : i32 to vector<128x1xi32>
      %184 = arith.addi %159, %183 : vector<128x1xi32>
      %c0_i32_94 = arith.constant 0 : i32
      %185 = vector.broadcast %c0_i32_94 : i32 to vector<128x1xi32>
      %186 = arith.cmpi sge, %184, %185 : vector<128x1xi32>
      %c-1_i32_95 = arith.constant -1 : i32
      %187 = vector.broadcast %c-1_i32_95 : i32 to vector<128x1xi32>
      %188 = arith.addi %159, %187 : vector<128x1xi32>
      %c124_i32_96 = arith.constant 124 : i32
      %189 = vector.broadcast %c124_i32_96 : i32 to vector<128x1xi32>
      %190 = arith.cmpi slt, %188, %189 : vector<128x1xi32>
      %191 = arith.andi %186, %190 : vector<128x1xi1>
      %cst_97 = arith.constant 0.000000e+00 : f32
      %192 = vector.shape_cast %191 : vector<128x1xi1> to vector<128x1xi1>
      %193 = vector.broadcast %192 : vector<128x1xi1> to vector<128x32xi1>
      %194 = vector.broadcast %cst_97 : f32 to vector<128x32xf32>
      %195 = arith.select %193, %182, %194 : vector<128x32xi1>, vector<128x32xf32>
      %196 = arith.truncf %195 : vector<128x32xf32> to vector<128x32xbf16>
      %c1_98 = arith.constant 1 : index
      %c0_99 = arith.constant 0 : index
      %c0_100 = arith.constant 0 : index
      %197 = vector.load %arg4[%c1_98, %c0_99, %c0_100] : memref<5x32x32xbf16, #tpu.memory_space<vmem>>, vector<1x32x32xbf16>
      %198 = vector.shape_cast %197 : vector<1x32x32xbf16> to vector<32x32xbf16>
      %cst_101 = arith.constant dense<0.000000e+00> : vector<128x32xf32>
      %199 = tpu.matmul %196, %198, %cst_101 {dimension_numbers = #tpu.dot_dimension_numbers<[1], [0], [0], [1], [0, 0, 1, 1], [], []>} : vector<128x32xbf16>, vector<32x32xbf16>, vector<128x32xf32> -> vector<128x32xf32>
      %200 = arith.addf %179, %199 : vector<128x32xf32>
      %201 = arith.truncf %158 : vector<128x32xf32> to vector<128x32xbf16>
      %c2_102 = arith.constant 2 : index
      %c0_103 = arith.constant 0 : index
      %c0_104 = arith.constant 0 : index
      %202 = vector.load %arg4[%c2_102, %c0_103, %c0_104] : memref<5x32x32xbf16, #tpu.memory_space<vmem>>, vector<1x32x32xbf16>
      %203 = vector.shape_cast %202 : vector<1x32x32xbf16> to vector<32x32xbf16>
      %cst_105 = arith.constant dense<0.000000e+00> : vector<128x32xf32>
      %204 = tpu.matmul %201, %203, %cst_105 {dimension_numbers = #tpu.dot_dimension_numbers<[1], [0], [0], [1], [0, 0, 1, 1], [], []>} : vector<128x32xbf16>, vector<32x32xbf16>, vector<128x32xf32> -> vector<128x32xf32>
      %205 = arith.addf %200, %204 : vector<128x32xf32>
      %206 = vector.extract_strided_slice %158 {offsets = [1, 0], sizes = [127, 32], strides = [1, 1]} : vector<128x32xf32> to vector<127x32xf32>
      %207 = vector.extract_strided_slice %158 {offsets = [0, 0], sizes = [1, 32], strides = [1, 1]} : vector<128x32xf32> to vector<1x32xf32>
      %208 = tpu.concatenate %206, %207 in 0 : vector<127x32xf32>, vector<1x32xf32> -> vector<128x32xf32>
      %c1_i32_106 = arith.constant 1 : i32
      %209 = vector.broadcast %c1_i32_106 : i32 to vector<128x1xi32>
      %210 = arith.addi %159, %209 : vector<128x1xi32>
      %c0_i32_107 = arith.constant 0 : i32
      %211 = vector.broadcast %c0_i32_107 : i32 to vector<128x1xi32>
      %212 = arith.cmpi sge, %210, %211 : vector<128x1xi32>
      %c1_i32_108 = arith.constant 1 : i32
      %213 = vector.broadcast %c1_i32_108 : i32 to vector<128x1xi32>
      %214 = arith.addi %159, %213 : vector<128x1xi32>
      %c124_i32_109 = arith.constant 124 : i32
      %215 = vector.broadcast %c124_i32_109 : i32 to vector<128x1xi32>
      %216 = arith.cmpi slt, %214, %215 : vector<128x1xi32>
      %217 = arith.andi %212, %216 : vector<128x1xi1>
      %cst_110 = arith.constant 0.000000e+00 : f32
      %218 = vector.shape_cast %217 : vector<128x1xi1> to vector<128x1xi1>
      %219 = vector.broadcast %218 : vector<128x1xi1> to vector<128x32xi1>
      %220 = vector.broadcast %cst_110 : f32 to vector<128x32xf32>
      %221 = arith.select %219, %208, %220 : vector<128x32xi1>, vector<128x32xf32>
      %222 = arith.truncf %221 : vector<128x32xf32> to vector<128x32xbf16>
      %c3_111 = arith.constant 3 : index
      %c0_112 = arith.constant 0 : index
      %c0_113 = arith.constant 0 : index
      %223 = vector.load %arg4[%c3_111, %c0_112, %c0_113] : memref<5x32x32xbf16, #tpu.memory_space<vmem>>, vector<1x32x32xbf16>
      %224 = vector.shape_cast %223 : vector<1x32x32xbf16> to vector<32x32xbf16>
      %cst_114 = arith.constant dense<0.000000e+00> : vector<128x32xf32>
      %225 = tpu.matmul %222, %224, %cst_114 {dimension_numbers = #tpu.dot_dimension_numbers<[1], [0], [0], [1], [0, 0, 1, 1], [], []>} : vector<128x32xbf16>, vector<32x32xbf16>, vector<128x32xf32> -> vector<128x32xf32>
      %226 = arith.addf %205, %225 : vector<128x32xf32>
      %227 = vector.extract_strided_slice %158 {offsets = [2, 0], sizes = [126, 32], strides = [1, 1]} : vector<128x32xf32> to vector<126x32xf32>
      %228 = vector.extract_strided_slice %158 {offsets = [0, 0], sizes = [2, 32], strides = [1, 1]} : vector<128x32xf32> to vector<2x32xf32>
      %229 = tpu.concatenate %227, %228 in 0 : vector<126x32xf32>, vector<2x32xf32> -> vector<128x32xf32>
      %c2_i32_115 = arith.constant 2 : i32
      %230 = vector.broadcast %c2_i32_115 : i32 to vector<128x1xi32>
      %231 = arith.addi %159, %230 : vector<128x1xi32>
      %c0_i32_116 = arith.constant 0 : i32
      %232 = vector.broadcast %c0_i32_116 : i32 to vector<128x1xi32>
      %233 = arith.cmpi sge, %231, %232 : vector<128x1xi32>
      %c2_i32_117 = arith.constant 2 : i32
      %234 = vector.broadcast %c2_i32_117 : i32 to vector<128x1xi32>
      %235 = arith.addi %159, %234 : vector<128x1xi32>
      %c124_i32_118 = arith.constant 124 : i32
      %236 = vector.broadcast %c124_i32_118 : i32 to vector<128x1xi32>
      %237 = arith.cmpi slt, %235, %236 : vector<128x1xi32>
      %238 = arith.andi %233, %237 : vector<128x1xi1>
      %cst_119 = arith.constant 0.000000e+00 : f32
      %239 = vector.shape_cast %238 : vector<128x1xi1> to vector<128x1xi1>
      %240 = vector.broadcast %239 : vector<128x1xi1> to vector<128x32xi1>
      %241 = vector.broadcast %cst_119 : f32 to vector<128x32xf32>
      %242 = arith.select %240, %229, %241 : vector<128x32xi1>, vector<128x32xf32>
      %243 = arith.truncf %242 : vector<128x32xf32> to vector<128x32xbf16>
      %c4_120 = arith.constant 4 : index
      %c0_121 = arith.constant 0 : index
      %c0_122 = arith.constant 0 : index
      %244 = vector.load %arg4[%c4_120, %c0_121, %c0_122] : memref<5x32x32xbf16, #tpu.memory_space<vmem>>, vector<1x32x32xbf16>
      %245 = vector.shape_cast %244 : vector<1x32x32xbf16> to vector<32x32xbf16>
      %cst_123 = arith.constant dense<0.000000e+00> : vector<128x32xf32>
      %246 = tpu.matmul %243, %245, %cst_123 {dimension_numbers = #tpu.dot_dimension_numbers<[1], [0], [0], [1], [0, 0, 1, 1], [], []>} : vector<128x32xbf16>, vector<32x32xbf16>, vector<128x32xf32> -> vector<128x32xf32>
      %247 = arith.addf %226, %246 : vector<128x32xf32>
      %c0_124 = arith.constant 0 : index
      %c0_125 = arith.constant 0 : index
      %248 = vector.load %arg5[%c0_124, %c0_125] : memref<1x32xf32, #tpu.memory_space<vmem>>, vector<1x32xf32>
      %249 = vector.broadcast %248 : vector<1x32xf32> to vector<128x32xf32>
      %250 = arith.addf %247, %249 : vector<128x32xf32>
      %251 = arith.addf %250, %64 : vector<128x32xf32>
      %cst_126 = arith.constant 0.000000e+00 : f32
      %252 = vector.broadcast %cst_126 : f32 to vector<128x32xf32>
      %253 = arith.maximumf %251, %252 : vector<128x32xf32>
      %254 = vector.extract_strided_slice %253 {offsets = [1, 0], sizes = [127, 32], strides = [1, 1]} : vector<128x32xf32> to vector<127x32xf32>
      %255 = vector.extract_strided_slice %253 {offsets = [0, 0], sizes = [1, 32], strides = [1, 1]} : vector<128x32xf32> to vector<1x32xf32>
      %256 = tpu.concatenate %254, %255 in 0 : vector<127x32xf32>, vector<1x32xf32> -> vector<128x32xf32>
      %257 = arith.maximumf %253, %256 : vector<128x32xf32>
      %258 = vector.extract_strided_slice %253 {offsets = [2, 0], sizes = [126, 32], strides = [1, 1]} : vector<128x32xf32> to vector<126x32xf32>
      %259 = vector.extract_strided_slice %253 {offsets = [0, 0], sizes = [2, 32], strides = [1, 1]} : vector<128x32xf32> to vector<2x32xf32>
      %260 = tpu.concatenate %258, %259 in 0 : vector<126x32xf32>, vector<2x32xf32> -> vector<128x32xf32>
      %261 = arith.maximumf %257, %260 : vector<128x32xf32>
      %262 = vector.extract_strided_slice %253 {offsets = [3, 0], sizes = [125, 32], strides = [1, 1]} : vector<128x32xf32> to vector<125x32xf32>
      %263 = vector.extract_strided_slice %253 {offsets = [0, 0], sizes = [3, 32], strides = [1, 1]} : vector<128x32xf32> to vector<3x32xf32>
      %264 = tpu.concatenate %262, %263 in 0 : vector<125x32xf32>, vector<3x32xf32> -> vector<128x32xf32>
      %265 = arith.maximumf %261, %264 : vector<128x32xf32>
      %266 = vector.extract_strided_slice %253 {offsets = [4, 0], sizes = [124, 32], strides = [1, 1]} : vector<128x32xf32> to vector<124x32xf32>
      %267 = vector.extract_strided_slice %253 {offsets = [0, 0], sizes = [4, 32], strides = [1, 1]} : vector<128x32xf32> to vector<4x32xf32>
      %268 = tpu.concatenate %266, %267 in 0 : vector<124x32xf32>, vector<4x32xf32> -> vector<128x32xf32>
      %269 = arith.maximumf %265, %268 : vector<128x32xf32>
      %c0_127 = arith.constant 0 : index
      %c0_128 = arith.constant 0 : index
      %270 = vector.load %arg13[%c0_127, %c0_128] : memref<128x32xf32, #tpu.memory_space<vmem>>, vector<128x32xf32>
      tpu.vector_store %arg13[%c0_127, %c0_128], %269 {strides = array<i32>} : memref<128x32xf32, #tpu.memory_space<vmem>>, vector<128x32xf32>,
      %c0_129 = arith.constant 0 : index
      %c0_130 = arith.constant 0 : index
      %271 = tpu.strided_load %arg13[%c0_129, %c0_130] {strides = array<i32: 2, 1>} : memref<128x32xf32, #tpu.memory_space<vmem>>, vector<64x32xf32>
      %272 = tpu.iota {dimensions = array<i32: 0>} : vector<64x1xi32>
      %273 = vector.extract_strided_slice %271 {offsets = [62, 0], sizes = [2, 32], strides = [1, 1]} : vector<64x32xf32> to vector<2x32xf32>
      %274 = vector.extract_strided_slice %271 {offsets = [0, 0], sizes = [62, 32], strides = [1, 1]} : vector<64x32xf32> to vector<62x32xf32>
      %275 = tpu.concatenate %273, %274 in 0 : vector<2x32xf32>, vector<62x32xf32> -> vector<64x32xf32>
      %c-2_i32_131 = arith.constant -2 : i32
      %276 = vector.broadcast %c-2_i32_131 : i32 to vector<64x1xi32>
      %277 = arith.addi %272, %276 : vector<64x1xi32>
      %c0_i32_132 = arith.constant 0 : i32
      %278 = vector.broadcast %c0_i32_132 : i32 to vector<64x1xi32>
      %279 = arith.cmpi sge, %277, %278 : vector<64x1xi32>
      %c-2_i32_133 = arith.constant -2 : i32
      %280 = vector.broadcast %c-2_i32_133 : i32 to vector<64x1xi32>
      %281 = arith.addi %272, %280 : vector<64x1xi32>
      %c60_i32 = arith.constant 60 : i32
      %282 = vector.broadcast %c60_i32 : i32 to vector<64x1xi32>
      %283 = arith.cmpi slt, %281, %282 : vector<64x1xi32>
      %284 = arith.andi %279, %283 : vector<64x1xi1>
      %cst_134 = arith.constant 0.000000e+00 : f32
      %285 = vector.shape_cast %284 : vector<64x1xi1> to vector<64x1xi1>
      %286 = vector.broadcast %285 : vector<64x1xi1> to vector<64x32xi1>
      %287 = vector.broadcast %cst_134 : f32 to vector<64x32xf32>
      %288 = arith.select %286, %275, %287 : vector<64x32xi1>, vector<64x32xf32>
      %289 = arith.truncf %288 : vector<64x32xf32> to vector<64x32xbf16>
      %c0_135 = arith.constant 0 : index
      %c0_136 = arith.constant 0 : index
      %c0_137 = arith.constant 0 : index
      %290 = vector.load %arg4[%c0_135, %c0_136, %c0_137] : memref<5x32x32xbf16, #tpu.memory_space<vmem>>, vector<1x32x32xbf16>
      %291 = vector.shape_cast %290 : vector<1x32x32xbf16> to vector<32x32xbf16>
      %cst_138 = arith.constant dense<0.000000e+00> : vector<64x32xf32>
      %292 = tpu.matmul %289, %291, %cst_138 {dimension_numbers = #tpu.dot_dimension_numbers<[1], [0], [0], [1], [0, 0, 1, 1], [], []>} : vector<64x32xbf16>, vector<32x32xbf16>, vector<64x32xf32> -> vector<64x32xf32>
      %293 = vector.extract_strided_slice %271 {offsets = [63, 0], sizes = [1, 32], strides = [1, 1]} : vector<64x32xf32> to vector<1x32xf32>
      %294 = vector.extract_strided_slice %271 {offsets = [0, 0], sizes = [63, 32], strides = [1, 1]} : vector<64x32xf32> to vector<63x32xf32>
      %295 = tpu.concatenate %293, %294 in 0 : vector<1x32xf32>, vector<63x32xf32> -> vector<64x32xf32>
      %c-1_i32_139 = arith.constant -1 : i32
      %296 = vector.broadcast %c-1_i32_139 : i32 to vector<64x1xi32>
      %297 = arith.addi %272, %296 : vector<64x1xi32>
      %c0_i32_140 = arith.constant 0 : i32
      %298 = vector.broadcast %c0_i32_140 : i32 to vector<64x1xi32>
      %299 = arith.cmpi sge, %297, %298 : vector<64x1xi32>
      %c-1_i32_141 = arith.constant -1 : i32
      %300 = vector.broadcast %c-1_i32_141 : i32 to vector<64x1xi32>
      %301 = arith.addi %272, %300 : vector<64x1xi32>
      %c60_i32_142 = arith.constant 60 : i32
      %302 = vector.broadcast %c60_i32_142 : i32 to vector<64x1xi32>
      %303 = arith.cmpi slt, %301, %302 : vector<64x1xi32>
      %304 = arith.andi %299, %303 : vector<64x1xi1>
      %cst_143 = arith.constant 0.000000e+00 : f32
      %305 = vector.shape_cast %304 : vector<64x1xi1> to vector<64x1xi1>
      %306 = vector.broadcast %305 : vector<64x1xi1> to vector<64x32xi1>
      %307 = vector.broadcast %cst_143 : f32 to vector<64x32xf32>
      %308 = arith.select %306, %295, %307 : vector<64x32xi1>, vector<64x32xf32>
      %309 = arith.truncf %308 : vector<64x32xf32> to vector<64x32xbf16>
      %c1_144 = arith.constant 1 : index
      %c0_145 = arith.constant 0 : index
      %c0_146 = arith.constant 0 : index
      %310 = vector.load %arg4[%c1_144, %c0_145, %c0_146] : memref<5x32x32xbf16, #tpu.memory_space<vmem>>, vector<1x32x32xbf16>
      %311 = vector.shape_cast %310 : vector<1x32x32xbf16> to vector<32x32xbf16>
      %cst_147 = arith.constant dense<0.000000e+00> : vector<64x32xf32>
      %312 = tpu.matmul %309, %311, %cst_147 {dimension_numbers = #tpu.dot_dimension_numbers<[1], [0], [0], [1], [0, 0, 1, 1], [], []>} : vector<64x32xbf16>, vector<32x32xbf16>, vector<64x32xf32> -> vector<64x32xf32>
      %313 = arith.addf %292, %312 : vector<64x32xf32>
      %314 = arith.truncf %271 : vector<64x32xf32> to vector<64x32xbf16>
      %c2_148 = arith.constant 2 : index
      %c0_149 = arith.constant 0 : index
      %c0_150 = arith.constant 0 : index
      %315 = vector.load %arg4[%c2_148, %c0_149, %c0_150] : memref<5x32x32xbf16, #tpu.memory_space<vmem>>, vector<1x32x32xbf16>
      %316 = vector.shape_cast %315 : vector<1x32x32xbf16> to vector<32x32xbf16>
      %cst_151 = arith.constant dense<0.000000e+00> : vector<64x32xf32>
      %317 = tpu.matmul %314, %316, %cst_151 {dimension_numbers = #tpu.dot_dimension_numbers<[1], [0], [0], [1], [0, 0, 1, 1], [], []>} : vector<64x32xbf16>, vector<32x32xbf16>, vector<64x32xf32> -> vector<64x32xf32>
      %318 = arith.addf %313, %317 : vector<64x32xf32>
      %319 = vector.extract_strided_slice %271 {offsets = [1, 0], sizes = [63, 32], strides = [1, 1]} : vector<64x32xf32> to vector<63x32xf32>
      %320 = vector.extract_strided_slice %271 {offsets = [0, 0], sizes = [1, 32], strides = [1, 1]} : vector<64x32xf32> to vector<1x32xf32>
      %321 = tpu.concatenate %319, %320 in 0 : vector<63x32xf32>, vector<1x32xf32> -> vector<64x32xf32>
      %c1_i32_152 = arith.constant 1 : i32
      %322 = vector.broadcast %c1_i32_152 : i32 to vector<64x1xi32>
      %323 = arith.addi %272, %322 : vector<64x1xi32>
      %c0_i32_153 = arith.constant 0 : i32
      %324 = vector.broadcast %c0_i32_153 : i32 to vector<64x1xi32>
      %325 = arith.cmpi sge, %323, %324 : vector<64x1xi32>
      %c1_i32_154 = arith.constant 1 : i32
      %326 = vector.broadcast %c1_i32_154 : i32 to vector<64x1xi32>
      %327 = arith.addi %272, %326 : vector<64x1xi32>
      %c60_i32_155 = arith.constant 60 : i32
      %328 = vector.broadcast %c60_i32_155 : i32 to vector<64x1xi32>
      %329 = arith.cmpi slt, %327, %328 : vector<64x1xi32>
      %330 = arith.andi %325, %329 : vector<64x1xi1>
      %cst_156 = arith.constant 0.000000e+00 : f32
      %331 = vector.shape_cast %330 : vector<64x1xi1> to vector<64x1xi1>
      %332 = vector.broadcast %331 : vector<64x1xi1> to vector<64x32xi1>
      %333 = vector.broadcast %cst_156 : f32 to vector<64x32xf32>
      %334 = arith.select %332, %321, %333 : vector<64x32xi1>, vector<64x32xf32>
      %335 = arith.truncf %334 : vector<64x32xf32> to vector<64x32xbf16>
      %c3_157 = arith.constant 3 : index
      %c0_158 = arith.constant 0 : index
      %c0_159 = arith.constant 0 : index
      %336 = vector.load %arg4[%c3_157, %c0_158, %c0_159] : memref<5x32x32xbf16, #tpu.memory_space<vmem>>, vector<1x32x32xbf16>
      %337 = vector.shape_cast %336 : vector<1x32x32xbf16> to vector<32x32xbf16>
      %cst_160 = arith.constant dense<0.000000e+00> : vector<64x32xf32>
      %338 = tpu.matmul %335, %337, %cst_160 {dimension_numbers = #tpu.dot_dimension_numbers<[1], [0], [0], [1], [0, 0, 1, 1], [], []>} : vector<64x32xbf16>, vector<32x32xbf16>, vector<64x32xf32> -> vector<64x32xf32>
      %339 = arith.addf %318, %338 : vector<64x32xf32>
      %340 = vector.extract_strided_slice %271 {offsets = [2, 0], sizes = [62, 32], strides = [1, 1]} : vector<64x32xf32> to vector<62x32xf32>
      %341 = vector.extract_strided_slice %271 {offsets = [0, 0], sizes = [2, 32], strides = [1, 1]} : vector<64x32xf32> to vector<2x32xf32>
      %342 = tpu.concatenate %340, %341 in 0 : vector<62x32xf32>, vector<2x32xf32> -> vector<64x32xf32>
      %c2_i32_161 = arith.constant 2 : i32
      %343 = vector.broadcast %c2_i32_161 : i32 to vector<64x1xi32>
      %344 = arith.addi %272, %343 : vector<64x1xi32>
      %c0_i32_162 = arith.constant 0 : i32
      %345 = vector.broadcast %c0_i32_162 : i32 to vector<64x1xi32>
      %346 = arith.cmpi sge, %344, %345 : vector<64x1xi32>
      %c2_i32_163 = arith.constant 2 : i32
      %347 = vector.broadcast %c2_i32_163 : i32 to vector<64x1xi32>
      %348 = arith.addi %272, %347 : vector<64x1xi32>
      %c60_i32_164 = arith.constant 60 : i32
      %349 = vector.broadcast %c60_i32_164 : i32 to vector<64x1xi32>
      %350 = arith.cmpi slt, %348, %349 : vector<64x1xi32>
      %351 = arith.andi %346, %350 : vector<64x1xi1>
      %cst_165 = arith.constant 0.000000e+00 : f32
      %352 = vector.shape_cast %351 : vector<64x1xi1> to vector<64x1xi1>
      %353 = vector.broadcast %352 : vector<64x1xi1> to vector<64x32xi1>
      %354 = vector.broadcast %cst_165 : f32 to vector<64x32xf32>
      %355 = arith.select %353, %342, %354 : vector<64x32xi1>, vector<64x32xf32>
      %356 = arith.truncf %355 : vector<64x32xf32> to vector<64x32xbf16>
      %c4_166 = arith.constant 4 : index
      %c0_167 = arith.constant 0 : index
      %c0_168 = arith.constant 0 : index
      %357 = vector.load %arg4[%c4_166, %c0_167, %c0_168] : memref<5x32x32xbf16, #tpu.memory_space<vmem>>, vector<1x32x32xbf16>
      %358 = vector.shape_cast %357 : vector<1x32x32xbf16> to vector<32x32xbf16>
      %cst_169 = arith.constant dense<0.000000e+00> : vector<64x32xf32>
      %359 = tpu.matmul %356, %358, %cst_169 {dimension_numbers = #tpu.dot_dimension_numbers<[1], [0], [0], [1], [0, 0, 1, 1], [], []>} : vector<64x32xbf16>, vector<32x32xbf16>, vector<64x32xf32> -> vector<64x32xf32>
      %360 = arith.addf %339, %359 : vector<64x32xf32>
      %c0_170 = arith.constant 0 : index
      %c0_171 = arith.constant 0 : index
      %361 = vector.load %arg5[%c0_170, %c0_171] : memref<1x32xf32, #tpu.memory_space<vmem>>, vector<1x32xf32>
      %362 = vector.broadcast %361 : vector<1x32xf32> to vector<64x32xf32>
      %363 = arith.addf %360, %362 : vector<64x32xf32>
      %cst_172 = arith.constant 0.000000e+00 : f32
      %364 = vector.broadcast %cst_172 : f32 to vector<64x32xf32>
      %365 = arith.maximumf %363, %364 : vector<64x32xf32>
      %366 = tpu.iota {dimensions = array<i32: 0>} : vector<64x1xi32>
      %367 = vector.extract_strided_slice %365 {offsets = [62, 0], sizes = [2, 32], strides = [1, 1]} : vector<64x32xf32> to vector<2x32xf32>
      %368 = vector.extract_strided_slice %365 {offsets = [0, 0], sizes = [62, 32], strides = [1, 1]} : vector<64x32xf32> to vector<62x32xf32>
      %369 = tpu.concatenate %367, %368 in 0 : vector<2x32xf32>, vector<62x32xf32> -> vector<64x32xf32>
      %c-2_i32_173 = arith.constant -2 : i32
      %370 = vector.broadcast %c-2_i32_173 : i32 to vector<64x1xi32>
      %371 = arith.addi %366, %370 : vector<64x1xi32>
      %c0_i32_174 = arith.constant 0 : i32
      %372 = vector.broadcast %c0_i32_174 : i32 to vector<64x1xi32>
      %373 = arith.cmpi sge, %371, %372 : vector<64x1xi32>
      %c-2_i32_175 = arith.constant -2 : i32
      %374 = vector.broadcast %c-2_i32_175 : i32 to vector<64x1xi32>
      %375 = arith.addi %366, %374 : vector<64x1xi32>
      %c60_i32_176 = arith.constant 60 : i32
      %376 = vector.broadcast %c60_i32_176 : i32 to vector<64x1xi32>
      %377 = arith.cmpi slt, %375, %376 : vector<64x1xi32>
      %378 = arith.andi %373, %377 : vector<64x1xi1>
      %cst_177 = arith.constant 0.000000e+00 : f32
      %379 = vector.shape_cast %378 : vector<64x1xi1> to vector<64x1xi1>
      %380 = vector.broadcast %379 : vector<64x1xi1> to vector<64x32xi1>
      %381 = vector.broadcast %cst_177 : f32 to vector<64x32xf32>
      %382 = arith.select %380, %369, %381 : vector<64x32xi1>, vector<64x32xf32>
      %383 = arith.truncf %382 : vector<64x32xf32> to vector<64x32xbf16>
      %c0_178 = arith.constant 0 : index
      %c0_179 = arith.constant 0 : index
      %c0_180 = arith.constant 0 : index
      %384 = vector.load %arg4[%c0_178, %c0_179, %c0_180] : memref<5x32x32xbf16, #tpu.memory_space<vmem>>, vector<1x32x32xbf16>
      %385 = vector.shape_cast %384 : vector<1x32x32xbf16> to vector<32x32xbf16>
      %cst_181 = arith.constant dense<0.000000e+00> : vector<64x32xf32>
      %386 = tpu.matmul %383, %385, %cst_181 {dimension_numbers = #tpu.dot_dimension_numbers<[1], [0], [0], [1], [0, 0, 1, 1], [], []>} : vector<64x32xbf16>, vector<32x32xbf16>, vector<64x32xf32> -> vector<64x32xf32>
      %387 = vector.extract_strided_slice %365 {offsets = [63, 0], sizes = [1, 32], strides = [1, 1]} : vector<64x32xf32> to vector<1x32xf32>
      %388 = vector.extract_strided_slice %365 {offsets = [0, 0], sizes = [63, 32], strides = [1, 1]} : vector<64x32xf32> to vector<63x32xf32>
      %389 = tpu.concatenate %387, %388 in 0 : vector<1x32xf32>, vector<63x32xf32> -> vector<64x32xf32>
      %c-1_i32_182 = arith.constant -1 : i32
      %390 = vector.broadcast %c-1_i32_182 : i32 to vector<64x1xi32>
      %391 = arith.addi %366, %390 : vector<64x1xi32>
      %c0_i32_183 = arith.constant 0 : i32
      %392 = vector.broadcast %c0_i32_183 : i32 to vector<64x1xi32>
      %393 = arith.cmpi sge, %391, %392 : vector<64x1xi32>
      %c-1_i32_184 = arith.constant -1 : i32
      %394 = vector.broadcast %c-1_i32_184 : i32 to vector<64x1xi32>
      %395 = arith.addi %366, %394 : vector<64x1xi32>
      %c60_i32_185 = arith.constant 60 : i32
      %396 = vector.broadcast %c60_i32_185 : i32 to vector<64x1xi32>
      %397 = arith.cmpi slt, %395, %396 : vector<64x1xi32>
      %398 = arith.andi %393, %397 : vector<64x1xi1>
      %cst_186 = arith.constant 0.000000e+00 : f32
      %399 = vector.shape_cast %398 : vector<64x1xi1> to vector<64x1xi1>
      %400 = vector.broadcast %399 : vector<64x1xi1> to vector<64x32xi1>
      %401 = vector.broadcast %cst_186 : f32 to vector<64x32xf32>
      %402 = arith.select %400, %389, %401 : vector<64x32xi1>, vector<64x32xf32>
      %403 = arith.truncf %402 : vector<64x32xf32> to vector<64x32xbf16>
      %c1_187 = arith.constant 1 : index
      %c0_188 = arith.constant 0 : index
      %c0_189 = arith.constant 0 : index
      %404 = vector.load %arg4[%c1_187, %c0_188, %c0_189] : memref<5x32x32xbf16, #tpu.memory_space<vmem>>, vector<1x32x32xbf16>
      %405 = vector.shape_cast %404 : vector<1x32x32xbf16> to vector<32x32xbf16>
      %cst_190 = arith.constant dense<0.000000e+00> : vector<64x32xf32>
      %406 = tpu.matmul %403, %405, %cst_190 {dimension_numbers = #tpu.dot_dimension_numbers<[1], [0], [0], [1], [0, 0, 1, 1], [], []>} : vector<64x32xbf16>, vector<32x32xbf16>, vector<64x32xf32> -> vector<64x32xf32>
      %407 = arith.addf %386, %406 : vector<64x32xf32>
      %408 = arith.truncf %365 : vector<64x32xf32> to vector<64x32xbf16>
      %c2_191 = arith.constant 2 : index
      %c0_192 = arith.constant 0 : index
      %c0_193 = arith.constant 0 : index
      %409 = vector.load %arg4[%c2_191, %c0_192, %c0_193] : memref<5x32x32xbf16, #tpu.memory_space<vmem>>, vector<1x32x32xbf16>
      %410 = vector.shape_cast %409 : vector<1x32x32xbf16> to vector<32x32xbf16>
      %cst_194 = arith.constant dense<0.000000e+00> : vector<64x32xf32>
      %411 = tpu.matmul %408, %410, %cst_194 {dimension_numbers = #tpu.dot_dimension_numbers<[1], [0], [0], [1], [0, 0, 1, 1], [], []>} : vector<64x32xbf16>, vector<32x32xbf16>, vector<64x32xf32> -> vector<64x32xf32>
      %412 = arith.addf %407, %411 : vector<64x32xf32>
      %413 = vector.extract_strided_slice %365 {offsets = [1, 0], sizes = [63, 32], strides = [1, 1]} : vector<64x32xf32> to vector<63x32xf32>
      %414 = vector.extract_strided_slice %365 {offsets = [0, 0], sizes = [1, 32], strides = [1, 1]} : vector<64x32xf32> to vector<1x32xf32>
      %415 = tpu.concatenate %413, %414 in 0 : vector<63x32xf32>, vector<1x32xf32> -> vector<64x32xf32>
      %c1_i32_195 = arith.constant 1 : i32
      %416 = vector.broadcast %c1_i32_195 : i32 to vector<64x1xi32>
      %417 = arith.addi %366, %416 : vector<64x1xi32>
      %c0_i32_196 = arith.constant 0 : i32
      %418 = vector.broadcast %c0_i32_196 : i32 to vector<64x1xi32>
      %419 = arith.cmpi sge, %417, %418 : vector<64x1xi32>
      %c1_i32_197 = arith.constant 1 : i32
      %420 = vector.broadcast %c1_i32_197 : i32 to vector<64x1xi32>
      %421 = arith.addi %366, %420 : vector<64x1xi32>
      %c60_i32_198 = arith.constant 60 : i32
      %422 = vector.broadcast %c60_i32_198 : i32 to vector<64x1xi32>
      %423 = arith.cmpi slt, %421, %422 : vector<64x1xi32>
      %424 = arith.andi %419, %423 : vector<64x1xi1>
      %cst_199 = arith.constant 0.000000e+00 : f32
      %425 = vector.shape_cast %424 : vector<64x1xi1> to vector<64x1xi1>
      %426 = vector.broadcast %425 : vector<64x1xi1> to vector<64x32xi1>
      %427 = vector.broadcast %cst_199 : f32 to vector<64x32xf32>
      %428 = arith.select %426, %415, %427 : vector<64x32xi1>, vector<64x32xf32>
      %429 = arith.truncf %428 : vector<64x32xf32> to vector<64x32xbf16>
      %c3_200 = arith.constant 3 : index
      %c0_201 = arith.constant 0 : index
      %c0_202 = arith.constant 0 : index
      %430 = vector.load %arg4[%c3_200, %c0_201, %c0_202] : memref<5x32x32xbf16, #tpu.memory_space<vmem>>, vector<1x32x32xbf16>
      %431 = vector.shape_cast %430 : vector<1x32x32xbf16> to vector<32x32xbf16>
      %cst_203 = arith.constant dense<0.000000e+00> : vector<64x32xf32>
      %432 = tpu.matmul %429, %431, %cst_203 {dimension_numbers = #tpu.dot_dimension_numbers<[1], [0], [0], [1], [0, 0, 1, 1], [], []>} : vector<64x32xbf16>, vector<32x32xbf16>, vector<64x32xf32> -> vector<64x32xf32>
      %433 = arith.addf %412, %432 : vector<64x32xf32>
      %434 = vector.extract_strided_slice %365 {offsets = [2, 0], sizes = [62, 32], strides = [1, 1]} : vector<64x32xf32> to vector<62x32xf32>
      %435 = vector.extract_strided_slice %365 {offsets = [0, 0], sizes = [2, 32], strides = [1, 1]} : vector<64x32xf32> to vector<2x32xf32>
      %436 = tpu.concatenate %434, %435 in 0 : vector<62x32xf32>, vector<2x32xf32> -> vector<64x32xf32>
      %c2_i32_204 = arith.constant 2 : i32
      %437 = vector.broadcast %c2_i32_204 : i32 to vector<64x1xi32>
      %438 = arith.addi %366, %437 : vector<64x1xi32>
      %c0_i32_205 = arith.constant 0 : i32
      %439 = vector.broadcast %c0_i32_205 : i32 to vector<64x1xi32>
      %440 = arith.cmpi sge, %438, %439 : vector<64x1xi32>
      %c2_i32_206 = arith.constant 2 : i32
      %441 = vector.broadcast %c2_i32_206 : i32 to vector<64x1xi32>
      %442 = arith.addi %366, %441 : vector<64x1xi32>
      %c60_i32_207 = arith.constant 60 : i32
      %443 = vector.broadcast %c60_i32_207 : i32 to vector<64x1xi32>
      %444 = arith.cmpi slt, %442, %443 : vector<64x1xi32>
      %445 = arith.andi %440, %444 : vector<64x1xi1>
      %cst_208 = arith.constant 0.000000e+00 : f32
      %446 = vector.shape_cast %445 : vector<64x1xi1> to vector<64x1xi1>
      %447 = vector.broadcast %446 : vector<64x1xi1> to vector<64x32xi1>
      %448 = vector.broadcast %cst_208 : f32 to vector<64x32xf32>
      %449 = arith.select %447, %436, %448 : vector<64x32xi1>, vector<64x32xf32>
      %450 = arith.truncf %449 : vector<64x32xf32> to vector<64x32xbf16>
      %c4_209 = arith.constant 4 : index
      %c0_210 = arith.constant 0 : index
      %c0_211 = arith.constant 0 : index
      %451 = vector.load %arg4[%c4_209, %c0_210, %c0_211] : memref<5x32x32xbf16, #tpu.memory_space<vmem>>, vector<1x32x32xbf16>
      %452 = vector.shape_cast %451 : vector<1x32x32xbf16> to vector<32x32xbf16>
      %cst_212 = arith.constant dense<0.000000e+00> : vector<64x32xf32>
      %453 = tpu.matmul %450, %452, %cst_212 {dimension_numbers = #tpu.dot_dimension_numbers<[1], [0], [0], [1], [0, 0, 1, 1], [], []>} : vector<64x32xbf16>, vector<32x32xbf16>, vector<64x32xf32> -> vector<64x32xf32>
      %454 = arith.addf %433, %453 : vector<64x32xf32>
      %c0_213 = arith.constant 0 : index
      %c0_214 = arith.constant 0 : index
      %455 = vector.load %arg5[%c0_213, %c0_214] : memref<1x32xf32, #tpu.memory_space<vmem>>, vector<1x32xf32>
      %456 = vector.broadcast %455 : vector<1x32xf32> to vector<64x32xf32>
      %457 = arith.addf %454, %456 : vector<64x32xf32>
      %458 = arith.addf %457, %271 : vector<64x32xf32>
      %cst_215 = arith.constant 0.000000e+00 : f32
      %459 = vector.broadcast %cst_215 : f32 to vector<64x32xf32>
      %460 = arith.maximumf %458, %459 : vector<64x32xf32>
      %461 = vector.extract_strided_slice %460 {offsets = [1, 0], sizes = [63, 32], strides = [1, 1]} : vector<64x32xf32> to vector<63x32xf32>
      %462 = vector.extract_strided_slice %460 {offsets = [0, 0], sizes = [1, 32], strides = [1, 1]} : vector<64x32xf32> to vector<1x32xf32>
      %463 = tpu.concatenate %461, %462 in 0 : vector<63x32xf32>, vector<1x32xf32> -> vector<64x32xf32>
      %464 = arith.maximumf %460, %463 : vector<64x32xf32>
      %465 = vector.extract_strided_slice %460 {offsets = [2, 0], sizes = [62, 32], strides = [1, 1]} : vector<64x32xf32> to vector<62x32xf32>
      %466 = vector.extract_strided_slice %460 {offsets = [0, 0], sizes = [2, 32], strides = [1, 1]} : vector<64x32xf32> to vector<2x32xf32>
      %467 = tpu.concatenate %465, %466 in 0 : vector<62x32xf32>, vector<2x32xf32> -> vector<64x32xf32>
      %468 = arith.maximumf %464, %467 : vector<64x32xf32>
      %469 = vector.extract_strided_slice %460 {offsets = [3, 0], sizes = [61, 32], strides = [1, 1]} : vector<64x32xf32> to vector<61x32xf32>
      %470 = vector.extract_strided_slice %460 {offsets = [0, 0], sizes = [3, 32], strides = [1, 1]} : vector<64x32xf32> to vector<3x32xf32>
      %471 = tpu.concatenate %469, %470 in 0 : vector<61x32xf32>, vector<3x32xf32> -> vector<64x32xf32>
      %472 = arith.maximumf %468, %471 : vector<64x32xf32>
      %473 = vector.extract_strided_slice %460 {offsets = [4, 0], sizes = [60, 32], strides = [1, 1]} : vector<64x32xf32> to vector<60x32xf32>
      %474 = vector.extract_strided_slice %460 {offsets = [0, 0], sizes = [4, 32], strides = [1, 1]} : vector<64x32xf32> to vector<4x32xf32>
      %475 = tpu.concatenate %473, %474 in 0 : vector<60x32xf32>, vector<4x32xf32> -> vector<64x32xf32>
      %476 = arith.maximumf %472, %475 : vector<64x32xf32>
      %c0_216 = arith.constant 0 : index
      %c0_217 = arith.constant 0 : index
      %477 = vector.load %arg13[%c0_216, %c0_217] : memref<128x32xf32, #tpu.memory_space<vmem>>, vector<64x32xf32>
      tpu.vector_store %arg13[%c0_216, %c0_217], %476 {strides = array<i32>} : memref<128x32xf32, #tpu.memory_space<vmem>>, vector<64x32xf32>,
      %c0_218 = arith.constant 0 : index
      %c0_219 = arith.constant 0 : index
      %478 = tpu.strided_load %arg13[%c0_218, %c0_219] {strides = array<i32: 2, 1>} : memref<128x32xf32, #tpu.memory_space<vmem>>, vector<32x32xf32>
      %479 = tpu.iota {dimensions = array<i32: 0>} : vector<32x1xi32>
      %480 = vector.extract_strided_slice %478 {offsets = [30, 0], sizes = [2, 32], strides = [1, 1]} : vector<32x32xf32> to vector<2x32xf32>
      %481 = vector.extract_strided_slice %478 {offsets = [0, 0], sizes = [30, 32], strides = [1, 1]} : vector<32x32xf32> to vector<30x32xf32>
      %482 = tpu.concatenate %480, %481 in 0 : vector<2x32xf32>, vector<30x32xf32> -> vector<32x32xf32>
      %c-2_i32_220 = arith.constant -2 : i32
      %483 = vector.broadcast %c-2_i32_220 : i32 to vector<32x1xi32>
      %484 = arith.addi %479, %483 : vector<32x1xi32>
      %c0_i32_221 = arith.constant 0 : i32
      %485 = vector.broadcast %c0_i32_221 : i32 to vector<32x1xi32>
      %486 = arith.cmpi sge, %484, %485 : vector<32x1xi32>
      %c-2_i32_222 = arith.constant -2 : i32
      %487 = vector.broadcast %c-2_i32_222 : i32 to vector<32x1xi32>
      %488 = arith.addi %479, %487 : vector<32x1xi32>
      %c28_i32 = arith.constant 28 : i32
      %489 = vector.broadcast %c28_i32 : i32 to vector<32x1xi32>
      %490 = arith.cmpi slt, %488, %489 : vector<32x1xi32>
      %491 = arith.andi %486, %490 : vector<32x1xi1>
      %cst_223 = arith.constant 0.000000e+00 : f32
      %492 = vector.shape_cast %491 : vector<32x1xi1> to vector<32x1xi1>
      %493 = vector.broadcast %492 : vector<32x1xi1> to vector<32x32xi1>
      %494 = vector.broadcast %cst_223 : f32 to vector<32x32xf32>
      %495 = arith.select %493, %482, %494 : vector<32x32xi1>, vector<32x32xf32>
      %496 = arith.truncf %495 : vector<32x32xf32> to vector<32x32xbf16>
      %c0_224 = arith.constant 0 : index
      %c0_225 = arith.constant 0 : index
      %c0_226 = arith.constant 0 : index
      %497 = vector.load %arg4[%c0_224, %c0_225, %c0_226] : memref<5x32x32xbf16, #tpu.memory_space<vmem>>, vector<1x32x32xbf16>
      %498 = vector.shape_cast %497 : vector<1x32x32xbf16> to vector<32x32xbf16>
      %cst_227 = arith.constant dense<0.000000e+00> : vector<32x32xf32>
      %499 = tpu.matmul %496, %498, %cst_227 {dimension_numbers = #tpu.dot_dimension_numbers<[1], [0], [0], [1], [0, 0, 1, 1], [], []>} : vector<32x32xbf16>, vector<32x32xbf16>, vector<32x32xf32> -> vector<32x32xf32>
      %500 = vector.extract_strided_slice %478 {offsets = [31, 0], sizes = [1, 32], strides = [1, 1]} : vector<32x32xf32> to vector<1x32xf32>
      %501 = vector.extract_strided_slice %478 {offsets = [0, 0], sizes = [31, 32], strides = [1, 1]} : vector<32x32xf32> to vector<31x32xf32>
      %502 = tpu.concatenate %500, %501 in 0 : vector<1x32xf32>, vector<31x32xf32> -> vector<32x32xf32>
      %c-1_i32_228 = arith.constant -1 : i32
      %503 = vector.broadcast %c-1_i32_228 : i32 to vector<32x1xi32>
      %504 = arith.addi %479, %503 : vector<32x1xi32>
      %c0_i32_229 = arith.constant 0 : i32
      %505 = vector.broadcast %c0_i32_229 : i32 to vector<32x1xi32>
      %506 = arith.cmpi sge, %504, %505 : vector<32x1xi32>
      %c-1_i32_230 = arith.constant -1 : i32
      %507 = vector.broadcast %c-1_i32_230 : i32 to vector<32x1xi32>
      %508 = arith.addi %479, %507 : vector<32x1xi32>
      %c28_i32_231 = arith.constant 28 : i32
      %509 = vector.broadcast %c28_i32_231 : i32 to vector<32x1xi32>
      %510 = arith.cmpi slt, %508, %509 : vector<32x1xi32>
      %511 = arith.andi %506, %510 : vector<32x1xi1>
      %cst_232 = arith.constant 0.000000e+00 : f32
      %512 = vector.shape_cast %511 : vector<32x1xi1> to vector<32x1xi1>
      %513 = vector.broadcast %512 : vector<32x1xi1> to vector<32x32xi1>
      %514 = vector.broadcast %cst_232 : f32 to vector<32x32xf32>
      %515 = arith.select %513, %502, %514 : vector<32x32xi1>, vector<32x32xf32>
      %516 = arith.truncf %515 : vector<32x32xf32> to vector<32x32xbf16>
      %c1_233 = arith.constant 1 : index
      %c0_234 = arith.constant 0 : index
      %c0_235 = arith.constant 0 : index
      %517 = vector.load %arg4[%c1_233, %c0_234, %c0_235] : memref<5x32x32xbf16, #tpu.memory_space<vmem>>, vector<1x32x32xbf16>
      %518 = vector.shape_cast %517 : vector<1x32x32xbf16> to vector<32x32xbf16>
      %cst_236 = arith.constant dense<0.000000e+00> : vector<32x32xf32>
      %519 = tpu.matmul %516, %518, %cst_236 {dimension_numbers = #tpu.dot_dimension_numbers<[1], [0], [0], [1], [0, 0, 1, 1], [], []>} : vector<32x32xbf16>, vector<32x32xbf16>, vector<32x32xf32> -> vector<32x32xf32>
      %520 = arith.addf %499, %519 : vector<32x32xf32>
      %521 = arith.truncf %478 : vector<32x32xf32> to vector<32x32xbf16>
      %c2_237 = arith.constant 2 : index
      %c0_238 = arith.constant 0 : index
      %c0_239 = arith.constant 0 : index
      %522 = vector.load %arg4[%c2_237, %c0_238, %c0_239] : memref<5x32x32xbf16, #tpu.memory_space<vmem>>, vector<1x32x32xbf16>
      %523 = vector.shape_cast %522 : vector<1x32x32xbf16> to vector<32x32xbf16>
      %cst_240 = arith.constant dense<0.000000e+00> : vector<32x32xf32>
      %524 = tpu.matmul %521, %523, %cst_240 {dimension_numbers = #tpu.dot_dimension_numbers<[1], [0], [0], [1], [0, 0, 1, 1], [], []>} : vector<32x32xbf16>, vector<32x32xbf16>, vector<32x32xf32> -> vector<32x32xf32>
      %525 = arith.addf %520, %524 : vector<32x32xf32>
      %526 = vector.extract_strided_slice %478 {offsets = [1, 0], sizes = [31, 32], strides = [1, 1]} : vector<32x32xf32> to vector<31x32xf32>
      %527 = vector.extract_strided_slice %478 {offsets = [0, 0], sizes = [1, 32], strides = [1, 1]} : vector<32x32xf32> to vector<1x32xf32>
      %528 = tpu.concatenate %526, %527 in 0 : vector<31x32xf32>, vector<1x32xf32> -> vector<32x32xf32>
      %c1_i32_241 = arith.constant 1 : i32
      %529 = vector.broadcast %c1_i32_241 : i32 to vector<32x1xi32>
      %530 = arith.addi %479, %529 : vector<32x1xi32>
      %c0_i32_242 = arith.constant 0 : i32
      %531 = vector.broadcast %c0_i32_242 : i32 to vector<32x1xi32>
      %532 = arith.cmpi sge, %530, %531 : vector<32x1xi32>
      %c1_i32_243 = arith.constant 1 : i32
      %533 = vector.broadcast %c1_i32_243 : i32 to vector<32x1xi32>
      %534 = arith.addi %479, %533 : vector<32x1xi32>
      %c28_i32_244 = arith.constant 28 : i32
      %535 = vector.broadcast %c28_i32_244 : i32 to vector<32x1xi32>
      %536 = arith.cmpi slt, %534, %535 : vector<32x1xi32>
      %537 = arith.andi %532, %536 : vector<32x1xi1>
      %cst_245 = arith.constant 0.000000e+00 : f32
      %538 = vector.shape_cast %537 : vector<32x1xi1> to vector<32x1xi1>
      %539 = vector.broadcast %538 : vector<32x1xi1> to vector<32x32xi1>
      %540 = vector.broadcast %cst_245 : f32 to vector<32x32xf32>
      %541 = arith.select %539, %528, %540 : vector<32x32xi1>, vector<32x32xf32>
      %542 = arith.truncf %541 : vector<32x32xf32> to vector<32x32xbf16>
      %c3_246 = arith.constant 3 : index
      %c0_247 = arith.constant 0 : index
      %c0_248 = arith.constant 0 : index
      %543 = vector.load %arg4[%c3_246, %c0_247, %c0_248] : memref<5x32x32xbf16, #tpu.memory_space<vmem>>, vector<1x32x32xbf16>
      %544 = vector.shape_cast %543 : vector<1x32x32xbf16> to vector<32x32xbf16>
      %cst_249 = arith.constant dense<0.000000e+00> : vector<32x32xf32>
      %545 = tpu.matmul %542, %544, %cst_249 {dimension_numbers = #tpu.dot_dimension_numbers<[1], [0], [0], [1], [0, 0, 1, 1], [], []>} : vector<32x32xbf16>, vector<32x32xbf16>, vector<32x32xf32> -> vector<32x32xf32>
      %546 = arith.addf %525, %545 : vector<32x32xf32>
      %547 = vector.extract_strided_slice %478 {offsets = [2, 0], sizes = [30, 32], strides = [1, 1]} : vector<32x32xf32> to vector<30x32xf32>
      %548 = vector.extract_strided_slice %478 {offsets = [0, 0], sizes = [2, 32], strides = [1, 1]} : vector<32x32xf32> to vector<2x32xf32>
      %549 = tpu.concatenate %547, %548 in 0 : vector<30x32xf32>, vector<2x32xf32> -> vector<32x32xf32>
      %c2_i32_250 = arith.constant 2 : i32
      %550 = vector.broadcast %c2_i32_250 : i32 to vector<32x1xi32>
      %551 = arith.addi %479, %550 : vector<32x1xi32>
      %c0_i32_251 = arith.constant 0 : i32
      %552 = vector.broadcast %c0_i32_251 : i32 to vector<32x1xi32>
      %553 = arith.cmpi sge, %551, %552 : vector<32x1xi32>
      %c2_i32_252 = arith.constant 2 : i32
      %554 = vector.broadcast %c2_i32_252 : i32 to vector<32x1xi32>
      %555 = arith.addi %479, %554 : vector<32x1xi32>
      %c28_i32_253 = arith.constant 28 : i32
      %556 = vector.broadcast %c28_i32_253 : i32 to vector<32x1xi32>
      %557 = arith.cmpi slt, %555, %556 : vector<32x1xi32>
      %558 = arith.andi %553, %557 : vector<32x1xi1>
      %cst_254 = arith.constant 0.000000e+00 : f32
      %559 = vector.shape_cast %558 : vector<32x1xi1> to vector<32x1xi1>
      %560 = vector.broadcast %559 : vector<32x1xi1> to vector<32x32xi1>
      %561 = vector.broadcast %cst_254 : f32 to vector<32x32xf32>
      %562 = arith.select %560, %549, %561 : vector<32x32xi1>, vector<32x32xf32>
      %563 = arith.truncf %562 : vector<32x32xf32> to vector<32x32xbf16>
      %c4_255 = arith.constant 4 : index
      %c0_256 = arith.constant 0 : index
      %c0_257 = arith.constant 0 : index
      %564 = vector.load %arg4[%c4_255, %c0_256, %c0_257] : memref<5x32x32xbf16, #tpu.memory_space<vmem>>, vector<1x32x32xbf16>
      %565 = vector.shape_cast %564 : vector<1x32x32xbf16> to vector<32x32xbf16>
      %cst_258 = arith.constant dense<0.000000e+00> : vector<32x32xf32>
      %566 = tpu.matmul %563, %565, %cst_258 {dimension_numbers = #tpu.dot_dimension_numbers<[1], [0], [0], [1], [0, 0, 1, 1], [], []>} : vector<32x32xbf16>, vector<32x32xbf16>, vector<32x32xf32> -> vector<32x32xf32>
      %567 = arith.addf %546, %566 : vector<32x32xf32>
      %c0_259 = arith.constant 0 : index
      %c0_260 = arith.constant 0 : index
      %568 = vector.load %arg5[%c0_259, %c0_260] : memref<1x32xf32, #tpu.memory_space<vmem>>, vector<1x32xf32>
      %569 = vector.broadcast %568 : vector<1x32xf32> to vector<32x32xf32>
      %570 = arith.addf %567, %569 : vector<32x32xf32>
      %cst_261 = arith.constant 0.000000e+00 : f32
      %571 = vector.broadcast %cst_261 : f32 to vector<32x32xf32>
      %572 = arith.maximumf %570, %571 : vector<32x32xf32>
      %573 = tpu.iota {dimensions = array<i32: 0>} : vector<32x1xi32>
      %574 = vector.extract_strided_slice %572 {offsets = [30, 0], sizes = [2, 32], strides = [1, 1]} : vector<32x32xf32> to vector<2x32xf32>
      %575 = vector.extract_strided_slice %572 {offsets = [0, 0], sizes = [30, 32], strides = [1, 1]} : vector<32x32xf32> to vector<30x32xf32>
      %576 = tpu.concatenate %574, %575 in 0 : vector<2x32xf32>, vector<30x32xf32> -> vector<32x32xf32>
      %c-2_i32_262 = arith.constant -2 : i32
      %577 = vector.broadcast %c-2_i32_262 : i32 to vector<32x1xi32>
      %578 = arith.addi %573, %577 : vector<32x1xi32>
      %c0_i32_263 = arith.constant 0 : i32
      %579 = vector.broadcast %c0_i32_263 : i32 to vector<32x1xi32>
      %580 = arith.cmpi sge, %578, %579 : vector<32x1xi32>
      %c-2_i32_264 = arith.constant -2 : i32
      %581 = vector.broadcast %c-2_i32_264 : i32 to vector<32x1xi32>
      %582 = arith.addi %573, %581 : vector<32x1xi32>
      %c28_i32_265 = arith.constant 28 : i32
      %583 = vector.broadcast %c28_i32_265 : i32 to vector<32x1xi32>
      %584 = arith.cmpi slt, %582, %583 : vector<32x1xi32>
      %585 = arith.andi %580, %584 : vector<32x1xi1>
      %cst_266 = arith.constant 0.000000e+00 : f32
      %586 = vector.shape_cast %585 : vector<32x1xi1> to vector<32x1xi1>
      %587 = vector.broadcast %586 : vector<32x1xi1> to vector<32x32xi1>
      %588 = vector.broadcast %cst_266 : f32 to vector<32x32xf32>
      %589 = arith.select %587, %576, %588 : vector<32x32xi1>, vector<32x32xf32>
      %590 = arith.truncf %589 : vector<32x32xf32> to vector<32x32xbf16>
      %c0_267 = arith.constant 0 : index
      %c0_268 = arith.constant 0 : index
      %c0_269 = arith.constant 0 : index
      %591 = vector.load %arg4[%c0_267, %c0_268, %c0_269] : memref<5x32x32xbf16, #tpu.memory_space<vmem>>, vector<1x32x32xbf16>
      %592 = vector.shape_cast %591 : vector<1x32x32xbf16> to vector<32x32xbf16>
      %cst_270 = arith.constant dense<0.000000e+00> : vector<32x32xf32>
      %593 = tpu.matmul %590, %592, %cst_270 {dimension_numbers = #tpu.dot_dimension_numbers<[1], [0], [0], [1], [0, 0, 1, 1], [], []>} : vector<32x32xbf16>, vector<32x32xbf16>, vector<32x32xf32> -> vector<32x32xf32>
      %594 = vector.extract_strided_slice %572 {offsets = [31, 0], sizes = [1, 32], strides = [1, 1]} : vector<32x32xf32> to vector<1x32xf32>
      %595 = vector.extract_strided_slice %572 {offsets = [0, 0], sizes = [31, 32], strides = [1, 1]} : vector<32x32xf32> to vector<31x32xf32>
      %596 = tpu.concatenate %594, %595 in 0 : vector<1x32xf32>, vector<31x32xf32> -> vector<32x32xf32>
      %c-1_i32_271 = arith.constant -1 : i32
      %597 = vector.broadcast %c-1_i32_271 : i32 to vector<32x1xi32>
      %598 = arith.addi %573, %597 : vector<32x1xi32>
      %c0_i32_272 = arith.constant 0 : i32
      %599 = vector.broadcast %c0_i32_272 : i32 to vector<32x1xi32>
      %600 = arith.cmpi sge, %598, %599 : vector<32x1xi32>
      %c-1_i32_273 = arith.constant -1 : i32
      %601 = vector.broadcast %c-1_i32_273 : i32 to vector<32x1xi32>
      %602 = arith.addi %573, %601 : vector<32x1xi32>
      %c28_i32_274 = arith.constant 28 : i32
      %603 = vector.broadcast %c28_i32_274 : i32 to vector<32x1xi32>
      %604 = arith.cmpi slt, %602, %603 : vector<32x1xi32>
      %605 = arith.andi %600, %604 : vector<32x1xi1>
      %cst_275 = arith.constant 0.000000e+00 : f32
      %606 = vector.shape_cast %605 : vector<32x1xi1> to vector<32x1xi1>
      %607 = vector.broadcast %606 : vector<32x1xi1> to vector<32x32xi1>
      %608 = vector.broadcast %cst_275 : f32 to vector<32x32xf32>
      %609 = arith.select %607, %596, %608 : vector<32x32xi1>, vector<32x32xf32>
      %610 = arith.truncf %609 : vector<32x32xf32> to vector<32x32xbf16>
      %c1_276 = arith.constant 1 : index
      %c0_277 = arith.constant 0 : index
      %c0_278 = arith.constant 0 : index
      %611 = vector.load %arg4[%c1_276, %c0_277, %c0_278] : memref<5x32x32xbf16, #tpu.memory_space<vmem>>, vector<1x32x32xbf16>
      %612 = vector.shape_cast %611 : vector<1x32x32xbf16> to vector<32x32xbf16>
      %cst_279 = arith.constant dense<0.000000e+00> : vector<32x32xf32>
      %613 = tpu.matmul %610, %612, %cst_279 {dimension_numbers = #tpu.dot_dimension_numbers<[1], [0], [0], [1], [0, 0, 1, 1], [], []>} : vector<32x32xbf16>, vector<32x32xbf16>, vector<32x32xf32> -> vector<32x32xf32>
      %614 = arith.addf %593, %613 : vector<32x32xf32>
      %615 = arith.truncf %572 : vector<32x32xf32> to vector<32x32xbf16>
      %c2_280 = arith.constant 2 : index
      %c0_281 = arith.constant 0 : index
      %c0_282 = arith.constant 0 : index
      %616 = vector.load %arg4[%c2_280, %c0_281, %c0_282] : memref<5x32x32xbf16, #tpu.memory_space<vmem>>, vector<1x32x32xbf16>
      %617 = vector.shape_cast %616 : vector<1x32x32xbf16> to vector<32x32xbf16>
      %cst_283 = arith.constant dense<0.000000e+00> : vector<32x32xf32>
      %618 = tpu.matmul %615, %617, %cst_283 {dimension_numbers = #tpu.dot_dimension_numbers<[1], [0], [0], [1], [0, 0, 1, 1], [], []>} : vector<32x32xbf16>, vector<32x32xbf16>, vector<32x32xf32> -> vector<32x32xf32>
      %619 = arith.addf %614, %618 : vector<32x32xf32>
      %620 = vector.extract_strided_slice %572 {offsets = [1, 0], sizes = [31, 32], strides = [1, 1]} : vector<32x32xf32> to vector<31x32xf32>
      %621 = vector.extract_strided_slice %572 {offsets = [0, 0], sizes = [1, 32], strides = [1, 1]} : vector<32x32xf32> to vector<1x32xf32>
      %622 = tpu.concatenate %620, %621 in 0 : vector<31x32xf32>, vector<1x32xf32> -> vector<32x32xf32>
      %c1_i32_284 = arith.constant 1 : i32
      %623 = vector.broadcast %c1_i32_284 : i32 to vector<32x1xi32>
      %624 = arith.addi %573, %623 : vector<32x1xi32>
      %c0_i32_285 = arith.constant 0 : i32
      %625 = vector.broadcast %c0_i32_285 : i32 to vector<32x1xi32>
      %626 = arith.cmpi sge, %624, %625 : vector<32x1xi32>
      %c1_i32_286 = arith.constant 1 : i32
      %627 = vector.broadcast %c1_i32_286 : i32 to vector<32x1xi32>
      %628 = arith.addi %573, %627 : vector<32x1xi32>
      %c28_i32_287 = arith.constant 28 : i32
      %629 = vector.broadcast %c28_i32_287 : i32 to vector<32x1xi32>
      %630 = arith.cmpi slt, %628, %629 : vector<32x1xi32>
      %631 = arith.andi %626, %630 : vector<32x1xi1>
      %cst_288 = arith.constant 0.000000e+00 : f32
      %632 = vector.shape_cast %631 : vector<32x1xi1> to vector<32x1xi1>
      %633 = vector.broadcast %632 : vector<32x1xi1> to vector<32x32xi1>
      %634 = vector.broadcast %cst_288 : f32 to vector<32x32xf32>
      %635 = arith.select %633, %622, %634 : vector<32x32xi1>, vector<32x32xf32>
      %636 = arith.truncf %635 : vector<32x32xf32> to vector<32x32xbf16>
      %c3_289 = arith.constant 3 : index
      %c0_290 = arith.constant 0 : index
      %c0_291 = arith.constant 0 : index
      %637 = vector.load %arg4[%c3_289, %c0_290, %c0_291] : memref<5x32x32xbf16, #tpu.memory_space<vmem>>, vector<1x32x32xbf16>
      %638 = vector.shape_cast %637 : vector<1x32x32xbf16> to vector<32x32xbf16>
      %cst_292 = arith.constant dense<0.000000e+00> : vector<32x32xf32>
      %639 = tpu.matmul %636, %638, %cst_292 {dimension_numbers = #tpu.dot_dimension_numbers<[1], [0], [0], [1], [0, 0, 1, 1], [], []>} : vector<32x32xbf16>, vector<32x32xbf16>, vector<32x32xf32> -> vector<32x32xf32>
      %640 = arith.addf %619, %639 : vector<32x32xf32>
      %641 = vector.extract_strided_slice %572 {offsets = [2, 0], sizes = [30, 32], strides = [1, 1]} : vector<32x32xf32> to vector<30x32xf32>
      %642 = vector.extract_strided_slice %572 {offsets = [0, 0], sizes = [2, 32], strides = [1, 1]} : vector<32x32xf32> to vector<2x32xf32>
      %643 = tpu.concatenate %641, %642 in 0 : vector<30x32xf32>, vector<2x32xf32> -> vector<32x32xf32>
      %c2_i32_293 = arith.constant 2 : i32
      %644 = vector.broadcast %c2_i32_293 : i32 to vector<32x1xi32>
      %645 = arith.addi %573, %644 : vector<32x1xi32>
      %c0_i32_294 = arith.constant 0 : i32
      %646 = vector.broadcast %c0_i32_294 : i32 to vector<32x1xi32>
      %647 = arith.cmpi sge, %645, %646 : vector<32x1xi32>
      %c2_i32_295 = arith.constant 2 : i32
      %648 = vector.broadcast %c2_i32_295 : i32 to vector<32x1xi32>
      %649 = arith.addi %573, %648 : vector<32x1xi32>
      %c28_i32_296 = arith.constant 28 : i32
      %650 = vector.broadcast %c28_i32_296 : i32 to vector<32x1xi32>
      %651 = arith.cmpi slt, %649, %650 : vector<32x1xi32>
      %652 = arith.andi %647, %651 : vector<32x1xi1>
      %cst_297 = arith.constant 0.000000e+00 : f32
      %653 = vector.shape_cast %652 : vector<32x1xi1> to vector<32x1xi1>
      %654 = vector.broadcast %653 : vector<32x1xi1> to vector<32x32xi1>
      %655 = vector.broadcast %cst_297 : f32 to vector<32x32xf32>
      %656 = arith.select %654, %643, %655 : vector<32x32xi1>, vector<32x32xf32>
      %657 = arith.truncf %656 : vector<32x32xf32> to vector<32x32xbf16>
      %c4_298 = arith.constant 4 : index
      %c0_299 = arith.constant 0 : index
      %c0_300 = arith.constant 0 : index
      %658 = vector.load %arg4[%c4_298, %c0_299, %c0_300] : memref<5x32x32xbf16, #tpu.memory_space<vmem>>, vector<1x32x32xbf16>
      %659 = vector.shape_cast %658 : vector<1x32x32xbf16> to vector<32x32xbf16>
      %cst_301 = arith.constant dense<0.000000e+00> : vector<32x32xf32>
      %660 = tpu.matmul %657, %659, %cst_301 {dimension_numbers = #tpu.dot_dimension_numbers<[1], [0], [0], [1], [0, 0, 1, 1], [], []>} : vector<32x32xbf16>, vector<32x32xbf16>, vector<32x32xf32> -> vector<32x32xf32>
      %661 = arith.addf %640, %660 : vector<32x32xf32>
      %c0_302 = arith.constant 0 : index
      %c0_303 = arith.constant 0 : index
      %662 = vector.load %arg5[%c0_302, %c0_303] : memref<1x32xf32, #tpu.memory_space<vmem>>, vector<1x32xf32>
      %663 = vector.broadcast %662 : vector<1x32xf32> to vector<32x32xf32>
      %664 = arith.addf %661, %663 : vector<32x32xf32>
      %665 = arith.addf %664, %478 : vector<32x32xf32>
      %cst_304 = arith.constant 0.000000e+00 : f32
      %666 = vector.broadcast %cst_304 : f32 to vector<32x32xf32>
      %667 = arith.maximumf %665, %666 : vector<32x32xf32>
      %668 = vector.extract_strided_slice %667 {offsets = [1, 0], sizes = [31, 32], strides = [1, 1]} : vector<32x32xf32> to vector<31x32xf32>
      %669 = vector.extract_strided_slice %667 {offsets = [0, 0], sizes = [1, 32], strides = [1, 1]} : vector<32x32xf32> to vector<1x32xf32>
      %670 = tpu.concatenate %668, %669 in 0 : vector<31x32xf32>, vector<1x32xf32> -> vector<32x32xf32>
      %671 = arith.maximumf %667, %670 : vector<32x32xf32>
      %672 = vector.extract_strided_slice %667 {offsets = [2, 0], sizes = [30, 32], strides = [1, 1]} : vector<32x32xf32> to vector<30x32xf32>
      %673 = vector.extract_strided_slice %667 {offsets = [0, 0], sizes = [2, 32], strides = [1, 1]} : vector<32x32xf32> to vector<2x32xf32>
      %674 = tpu.concatenate %672, %673 in 0 : vector<30x32xf32>, vector<2x32xf32> -> vector<32x32xf32>
      %675 = arith.maximumf %671, %674 : vector<32x32xf32>
      %676 = vector.extract_strided_slice %667 {offsets = [3, 0], sizes = [29, 32], strides = [1, 1]} : vector<32x32xf32> to vector<29x32xf32>
      %677 = vector.extract_strided_slice %667 {offsets = [0, 0], sizes = [3, 32], strides = [1, 1]} : vector<32x32xf32> to vector<3x32xf32>
      %678 = tpu.concatenate %676, %677 in 0 : vector<29x32xf32>, vector<3x32xf32> -> vector<32x32xf32>
      %679 = arith.maximumf %675, %678 : vector<32x32xf32>
      %680 = vector.extract_strided_slice %667 {offsets = [4, 0], sizes = [28, 32], strides = [1, 1]} : vector<32x32xf32> to vector<28x32xf32>
      %681 = vector.extract_strided_slice %667 {offsets = [0, 0], sizes = [4, 32], strides = [1, 1]} : vector<32x32xf32> to vector<4x32xf32>
      %682 = tpu.concatenate %680, %681 in 0 : vector<28x32xf32>, vector<4x32xf32> -> vector<32x32xf32>
      %683 = arith.maximumf %679, %682 : vector<32x32xf32>
      %c0_305 = arith.constant 0 : index
      %c0_306 = arith.constant 0 : index
      %684 = vector.load %arg13[%c0_305, %c0_306] : memref<128x32xf32, #tpu.memory_space<vmem>>, vector<32x32xf32>
      tpu.vector_store %arg13[%c0_305, %c0_306], %683 {strides = array<i32>} : memref<128x32xf32, #tpu.memory_space<vmem>>, vector<32x32xf32>,
      %c0_307 = arith.constant 0 : index
      %c0_308 = arith.constant 0 : index
      %685 = tpu.strided_load %arg13[%c0_307, %c0_308] {strides = array<i32: 2, 1>} : memref<128x32xf32, #tpu.memory_space<vmem>>, vector<16x32xf32>
      %686 = tpu.iota {dimensions = array<i32: 0>} : vector<16x1xi32>
      %687 = vector.extract_strided_slice %685 {offsets = [14, 0], sizes = [2, 32], strides = [1, 1]} : vector<16x32xf32> to vector<2x32xf32>
      %688 = vector.extract_strided_slice %685 {offsets = [0, 0], sizes = [14, 32], strides = [1, 1]} : vector<16x32xf32> to vector<14x32xf32>
      %689 = tpu.concatenate %687, %688 in 0 : vector<2x32xf32>, vector<14x32xf32> -> vector<16x32xf32>
      %c-2_i32_309 = arith.constant -2 : i32
      %690 = vector.broadcast %c-2_i32_309 : i32 to vector<16x1xi32>
      %691 = arith.addi %686, %690 : vector<16x1xi32>
      %c0_i32_310 = arith.constant 0 : i32
      %692 = vector.broadcast %c0_i32_310 : i32 to vector<16x1xi32>
      %693 = arith.cmpi sge, %691, %692 : vector<16x1xi32>
      %c-2_i32_311 = arith.constant -2 : i32
      %694 = vector.broadcast %c-2_i32_311 : i32 to vector<16x1xi32>
      %695 = arith.addi %686, %694 : vector<16x1xi32>
      %c12_i32 = arith.constant 12 : i32
      %696 = vector.broadcast %c12_i32 : i32 to vector<16x1xi32>
      %697 = arith.cmpi slt, %695, %696 : vector<16x1xi32>
      %698 = arith.andi %693, %697 : vector<16x1xi1>
      %cst_312 = arith.constant 0.000000e+00 : f32
      %699 = vector.shape_cast %698 : vector<16x1xi1> to vector<16x1xi1>
      %700 = vector.broadcast %699 : vector<16x1xi1> to vector<16x32xi1>
      %701 = vector.broadcast %cst_312 : f32 to vector<16x32xf32>
      %702 = arith.select %700, %689, %701 : vector<16x32xi1>, vector<16x32xf32>
      %703 = arith.truncf %702 : vector<16x32xf32> to vector<16x32xbf16>
      %c0_313 = arith.constant 0 : index
      %c0_314 = arith.constant 0 : index
      %c0_315 = arith.constant 0 : index
      %704 = vector.load %arg4[%c0_313, %c0_314, %c0_315] : memref<5x32x32xbf16, #tpu.memory_space<vmem>>, vector<1x32x32xbf16>
      %705 = vector.shape_cast %704 : vector<1x32x32xbf16> to vector<32x32xbf16>
      %cst_316 = arith.constant dense<0.000000e+00> : vector<16x32xf32>
      %706 = tpu.matmul %703, %705, %cst_316 {dimension_numbers = #tpu.dot_dimension_numbers<[1], [0], [0], [1], [0, 0, 1, 1], [], []>} : vector<16x32xbf16>, vector<32x32xbf16>, vector<16x32xf32> -> vector<16x32xf32>
      %707 = vector.extract_strided_slice %685 {offsets = [15, 0], sizes = [1, 32], strides = [1, 1]} : vector<16x32xf32> to vector<1x32xf32>
      %708 = vector.extract_strided_slice %685 {offsets = [0, 0], sizes = [15, 32], strides = [1, 1]} : vector<16x32xf32> to vector<15x32xf32>
      %709 = tpu.concatenate %707, %708 in 0 : vector<1x32xf32>, vector<15x32xf32> -> vector<16x32xf32>
      %c-1_i32_317 = arith.constant -1 : i32
      %710 = vector.broadcast %c-1_i32_317 : i32 to vector<16x1xi32>
      %711 = arith.addi %686, %710 : vector<16x1xi32>
      %c0_i32_318 = arith.constant 0 : i32
      %712 = vector.broadcast %c0_i32_318 : i32 to vector<16x1xi32>
      %713 = arith.cmpi sge, %711, %712 : vector<16x1xi32>
      %c-1_i32_319 = arith.constant -1 : i32
      %714 = vector.broadcast %c-1_i32_319 : i32 to vector<16x1xi32>
      %715 = arith.addi %686, %714 : vector<16x1xi32>
      %c12_i32_320 = arith.constant 12 : i32
      %716 = vector.broadcast %c12_i32_320 : i32 to vector<16x1xi32>
      %717 = arith.cmpi slt, %715, %716 : vector<16x1xi32>
      %718 = arith.andi %713, %717 : vector<16x1xi1>
      %cst_321 = arith.constant 0.000000e+00 : f32
      %719 = vector.shape_cast %718 : vector<16x1xi1> to vector<16x1xi1>
      %720 = vector.broadcast %719 : vector<16x1xi1> to vector<16x32xi1>
      %721 = vector.broadcast %cst_321 : f32 to vector<16x32xf32>
      %722 = arith.select %720, %709, %721 : vector<16x32xi1>, vector<16x32xf32>
      %723 = arith.truncf %722 : vector<16x32xf32> to vector<16x32xbf16>
      %c1_322 = arith.constant 1 : index
      %c0_323 = arith.constant 0 : index
      %c0_324 = arith.constant 0 : index
      %724 = vector.load %arg4[%c1_322, %c0_323, %c0_324] : memref<5x32x32xbf16, #tpu.memory_space<vmem>>, vector<1x32x32xbf16>
      %725 = vector.shape_cast %724 : vector<1x32x32xbf16> to vector<32x32xbf16>
      %cst_325 = arith.constant dense<0.000000e+00> : vector<16x32xf32>
      %726 = tpu.matmul %723, %725, %cst_325 {dimension_numbers = #tpu.dot_dimension_numbers<[1], [0], [0], [1], [0, 0, 1, 1], [], []>} : vector<16x32xbf16>, vector<32x32xbf16>, vector<16x32xf32> -> vector<16x32xf32>
      %727 = arith.addf %706, %726 : vector<16x32xf32>
      %728 = arith.truncf %685 : vector<16x32xf32> to vector<16x32xbf16>
      %c2_326 = arith.constant 2 : index
      %c0_327 = arith.constant 0 : index
      %c0_328 = arith.constant 0 : index
      %729 = vector.load %arg4[%c2_326, %c0_327, %c0_328] : memref<5x32x32xbf16, #tpu.memory_space<vmem>>, vector<1x32x32xbf16>
      %730 = vector.shape_cast %729 : vector<1x32x32xbf16> to vector<32x32xbf16>
      %cst_329 = arith.constant dense<0.000000e+00> : vector<16x32xf32>
      %731 = tpu.matmul %728, %730, %cst_329 {dimension_numbers = #tpu.dot_dimension_numbers<[1], [0], [0], [1], [0, 0, 1, 1], [], []>} : vector<16x32xbf16>, vector<32x32xbf16>, vector<16x32xf32> -> vector<16x32xf32>
      %732 = arith.addf %727, %731 : vector<16x32xf32>
      %733 = vector.extract_strided_slice %685 {offsets = [1, 0], sizes = [15, 32], strides = [1, 1]} : vector<16x32xf32> to vector<15x32xf32>
      %734 = vector.extract_strided_slice %685 {offsets = [0, 0], sizes = [1, 32], strides = [1, 1]} : vector<16x32xf32> to vector<1x32xf32>
      %735 = tpu.concatenate %733, %734 in 0 : vector<15x32xf32>, vector<1x32xf32> -> vector<16x32xf32>
      %c1_i32_330 = arith.constant 1 : i32
      %736 = vector.broadcast %c1_i32_330 : i32 to vector<16x1xi32>
      %737 = arith.addi %686, %736 : vector<16x1xi32>
      %c0_i32_331 = arith.constant 0 : i32
      %738 = vector.broadcast %c0_i32_331 : i32 to vector<16x1xi32>
      %739 = arith.cmpi sge, %737, %738 : vector<16x1xi32>
      %c1_i32_332 = arith.constant 1 : i32
      %740 = vector.broadcast %c1_i32_332 : i32 to vector<16x1xi32>
      %741 = arith.addi %686, %740 : vector<16x1xi32>
      %c12_i32_333 = arith.constant 12 : i32
      %742 = vector.broadcast %c12_i32_333 : i32 to vector<16x1xi32>
      %743 = arith.cmpi slt, %741, %742 : vector<16x1xi32>
      %744 = arith.andi %739, %743 : vector<16x1xi1>
      %cst_334 = arith.constant 0.000000e+00 : f32
      %745 = vector.shape_cast %744 : vector<16x1xi1> to vector<16x1xi1>
      %746 = vector.broadcast %745 : vector<16x1xi1> to vector<16x32xi1>
      %747 = vector.broadcast %cst_334 : f32 to vector<16x32xf32>
      %748 = arith.select %746, %735, %747 : vector<16x32xi1>, vector<16x32xf32>
      %749 = arith.truncf %748 : vector<16x32xf32> to vector<16x32xbf16>
      %c3_335 = arith.constant 3 : index
      %c0_336 = arith.constant 0 : index
      %c0_337 = arith.constant 0 : index
      %750 = vector.load %arg4[%c3_335, %c0_336, %c0_337] : memref<5x32x32xbf16, #tpu.memory_space<vmem>>, vector<1x32x32xbf16>
      %751 = vector.shape_cast %750 : vector<1x32x32xbf16> to vector<32x32xbf16>
      %cst_338 = arith.constant dense<0.000000e+00> : vector<16x32xf32>
      %752 = tpu.matmul %749, %751, %cst_338 {dimension_numbers = #tpu.dot_dimension_numbers<[1], [0], [0], [1], [0, 0, 1, 1], [], []>} : vector<16x32xbf16>, vector<32x32xbf16>, vector<16x32xf32> -> vector<16x32xf32>
      %753 = arith.addf %732, %752 : vector<16x32xf32>
      %754 = vector.extract_strided_slice %685 {offsets = [2, 0], sizes = [14, 32], strides = [1, 1]} : vector<16x32xf32> to vector<14x32xf32>
      %755 = vector.extract_strided_slice %685 {offsets = [0, 0], sizes = [2, 32], strides = [1, 1]} : vector<16x32xf32> to vector<2x32xf32>
      %756 = tpu.concatenate %754, %755 in 0 : vector<14x32xf32>, vector<2x32xf32> -> vector<16x32xf32>
      %c2_i32_339 = arith.constant 2 : i32
      %757 = vector.broadcast %c2_i32_339 : i32 to vector<16x1xi32>
      %758 = arith.addi %686, %757 : vector<16x1xi32>
      %c0_i32_340 = arith.constant 0 : i32
      %759 = vector.broadcast %c0_i32_340 : i32 to vector<16x1xi32>
      %760 = arith.cmpi sge, %758, %759 : vector<16x1xi32>
      %c2_i32_341 = arith.constant 2 : i32
      %761 = vector.broadcast %c2_i32_341 : i32 to vector<16x1xi32>
      %762 = arith.addi %686, %761 : vector<16x1xi32>
      %c12_i32_342 = arith.constant 12 : i32
      %763 = vector.broadcast %c12_i32_342 : i32 to vector<16x1xi32>
      %764 = arith.cmpi slt, %762, %763 : vector<16x1xi32>
      %765 = arith.andi %760, %764 : vector<16x1xi1>
      %cst_343 = arith.constant 0.000000e+00 : f32
      %766 = vector.shape_cast %765 : vector<16x1xi1> to vector<16x1xi1>
      %767 = vector.broadcast %766 : vector<16x1xi1> to vector<16x32xi1>
      %768 = vector.broadcast %cst_343 : f32 to vector<16x32xf32>
      %769 = arith.select %767, %756, %768 : vector<16x32xi1>, vector<16x32xf32>
      %770 = arith.truncf %769 : vector<16x32xf32> to vector<16x32xbf16>
      %c4_344 = arith.constant 4 : index
      %c0_345 = arith.constant 0 : index
      %c0_346 = arith.constant 0 : index
      %771 = vector.load %arg4[%c4_344, %c0_345, %c0_346] : memref<5x32x32xbf16, #tpu.memory_space<vmem>>, vector<1x32x32xbf16>
      %772 = vector.shape_cast %771 : vector<1x32x32xbf16> to vector<32x32xbf16>
      %cst_347 = arith.constant dense<0.000000e+00> : vector<16x32xf32>
      %773 = tpu.matmul %770, %772, %cst_347 {dimension_numbers = #tpu.dot_dimension_numbers<[1], [0], [0], [1], [0, 0, 1, 1], [], []>} : vector<16x32xbf16>, vector<32x32xbf16>, vector<16x32xf32> -> vector<16x32xf32>
      %774 = arith.addf %753, %773 : vector<16x32xf32>
      %c0_348 = arith.constant 0 : index
      %c0_349 = arith.constant 0 : index
      %775 = vector.load %arg5[%c0_348, %c0_349] : memref<1x32xf32, #tpu.memory_space<vmem>>, vector<1x32xf32>
      %776 = vector.broadcast %775 : vector<1x32xf32> to vector<16x32xf32>
      %777 = arith.addf %774, %776 : vector<16x32xf32>
      %cst_350 = arith.constant 0.000000e+00 : f32
      %778 = vector.broadcast %cst_350 : f32 to vector<16x32xf32>
      %779 = arith.maximumf %777, %778 : vector<16x32xf32>
      %780 = tpu.iota {dimensions = array<i32: 0>} : vector<16x1xi32>
      %781 = vector.extract_strided_slice %779 {offsets = [14, 0], sizes = [2, 32], strides = [1, 1]} : vector<16x32xf32> to vector<2x32xf32>
      %782 = vector.extract_strided_slice %779 {offsets = [0, 0], sizes = [14, 32], strides = [1, 1]} : vector<16x32xf32> to vector<14x32xf32>
      %783 = tpu.concatenate %781, %782 in 0 : vector<2x32xf32>, vector<14x32xf32> -> vector<16x32xf32>
      %c-2_i32_351 = arith.constant -2 : i32
      %784 = vector.broadcast %c-2_i32_351 : i32 to vector<16x1xi32>
      %785 = arith.addi %780, %784 : vector<16x1xi32>
      %c0_i32_352 = arith.constant 0 : i32
      %786 = vector.broadcast %c0_i32_352 : i32 to vector<16x1xi32>
      %787 = arith.cmpi sge, %785, %786 : vector<16x1xi32>
      %c-2_i32_353 = arith.constant -2 : i32
      %788 = vector.broadcast %c-2_i32_353 : i32 to vector<16x1xi32>
      %789 = arith.addi %780, %788 : vector<16x1xi32>
      %c12_i32_354 = arith.constant 12 : i32
      %790 = vector.broadcast %c12_i32_354 : i32 to vector<16x1xi32>
      %791 = arith.cmpi slt, %789, %790 : vector<16x1xi32>
      %792 = arith.andi %787, %791 : vector<16x1xi1>
      %cst_355 = arith.constant 0.000000e+00 : f32
      %793 = vector.shape_cast %792 : vector<16x1xi1> to vector<16x1xi1>
      %794 = vector.broadcast %793 : vector<16x1xi1> to vector<16x32xi1>
      %795 = vector.broadcast %cst_355 : f32 to vector<16x32xf32>
      %796 = arith.select %794, %783, %795 : vector<16x32xi1>, vector<16x32xf32>
      %797 = arith.truncf %796 : vector<16x32xf32> to vector<16x32xbf16>
      %c0_356 = arith.constant 0 : index
      %c0_357 = arith.constant 0 : index
      %c0_358 = arith.constant 0 : index
      %798 = vector.load %arg4[%c0_356, %c0_357, %c0_358] : memref<5x32x32xbf16, #tpu.memory_space<vmem>>, vector<1x32x32xbf16>
      %799 = vector.shape_cast %798 : vector<1x32x32xbf16> to vector<32x32xbf16>
      %cst_359 = arith.constant dense<0.000000e+00> : vector<16x32xf32>
      %800 = tpu.matmul %797, %799, %cst_359 {dimension_numbers = #tpu.dot_dimension_numbers<[1], [0], [0], [1], [0, 0, 1, 1], [], []>} : vector<16x32xbf16>, vector<32x32xbf16>, vector<16x32xf32> -> vector<16x32xf32>
      %801 = vector.extract_strided_slice %779 {offsets = [15, 0], sizes = [1, 32], strides = [1, 1]} : vector<16x32xf32> to vector<1x32xf32>
      %802 = vector.extract_strided_slice %779 {offsets = [0, 0], sizes = [15, 32], strides = [1, 1]} : vector<16x32xf32> to vector<15x32xf32>
      %803 = tpu.concatenate %801, %802 in 0 : vector<1x32xf32>, vector<15x32xf32> -> vector<16x32xf32>
      %c-1_i32_360 = arith.constant -1 : i32
      %804 = vector.broadcast %c-1_i32_360 : i32 to vector<16x1xi32>
      %805 = arith.addi %780, %804 : vector<16x1xi32>
      %c0_i32_361 = arith.constant 0 : i32
      %806 = vector.broadcast %c0_i32_361 : i32 to vector<16x1xi32>
      %807 = arith.cmpi sge, %805, %806 : vector<16x1xi32>
      %c-1_i32_362 = arith.constant -1 : i32
      %808 = vector.broadcast %c-1_i32_362 : i32 to vector<16x1xi32>
      %809 = arith.addi %780, %808 : vector<16x1xi32>
      %c12_i32_363 = arith.constant 12 : i32
      %810 = vector.broadcast %c12_i32_363 : i32 to vector<16x1xi32>
      %811 = arith.cmpi slt, %809, %810 : vector<16x1xi32>
      %812 = arith.andi %807, %811 : vector<16x1xi1>
      %cst_364 = arith.constant 0.000000e+00 : f32
      %813 = vector.shape_cast %812 : vector<16x1xi1> to vector<16x1xi1>
      %814 = vector.broadcast %813 : vector<16x1xi1> to vector<16x32xi1>
      %815 = vector.broadcast %cst_364 : f32 to vector<16x32xf32>
      %816 = arith.select %814, %803, %815 : vector<16x32xi1>, vector<16x32xf32>
      %817 = arith.truncf %816 : vector<16x32xf32> to vector<16x32xbf16>
      %c1_365 = arith.constant 1 : index
      %c0_366 = arith.constant 0 : index
      %c0_367 = arith.constant 0 : index
      %818 = vector.load %arg4[%c1_365, %c0_366, %c0_367] : memref<5x32x32xbf16, #tpu.memory_space<vmem>>, vector<1x32x32xbf16>
      %819 = vector.shape_cast %818 : vector<1x32x32xbf16> to vector<32x32xbf16>
      %cst_368 = arith.constant dense<0.000000e+00> : vector<16x32xf32>
      %820 = tpu.matmul %817, %819, %cst_368 {dimension_numbers = #tpu.dot_dimension_numbers<[1], [0], [0], [1], [0, 0, 1, 1], [], []>} : vector<16x32xbf16>, vector<32x32xbf16>, vector<16x32xf32> -> vector<16x32xf32>
      %821 = arith.addf %800, %820 : vector<16x32xf32>
      %822 = arith.truncf %779 : vector<16x32xf32> to vector<16x32xbf16>
      %c2_369 = arith.constant 2 : index
      %c0_370 = arith.constant 0 : index
      %c0_371 = arith.constant 0 : index
      %823 = vector.load %arg4[%c2_369, %c0_370, %c0_371] : memref<5x32x32xbf16, #tpu.memory_space<vmem>>, vector<1x32x32xbf16>
      %824 = vector.shape_cast %823 : vector<1x32x32xbf16> to vector<32x32xbf16>
      %cst_372 = arith.constant dense<0.000000e+00> : vector<16x32xf32>
      %825 = tpu.matmul %822, %824, %cst_372 {dimension_numbers = #tpu.dot_dimension_numbers<[1], [0], [0], [1], [0, 0, 1, 1], [], []>} : vector<16x32xbf16>, vector<32x32xbf16>, vector<16x32xf32> -> vector<16x32xf32>
      %826 = arith.addf %821, %825 : vector<16x32xf32>
      %827 = vector.extract_strided_slice %779 {offsets = [1, 0], sizes = [15, 32], strides = [1, 1]} : vector<16x32xf32> to vector<15x32xf32>
      %828 = vector.extract_strided_slice %779 {offsets = [0, 0], sizes = [1, 32], strides = [1, 1]} : vector<16x32xf32> to vector<1x32xf32>
      %829 = tpu.concatenate %827, %828 in 0 : vector<15x32xf32>, vector<1x32xf32> -> vector<16x32xf32>
      %c1_i32_373 = arith.constant 1 : i32
      %830 = vector.broadcast %c1_i32_373 : i32 to vector<16x1xi32>
      %831 = arith.addi %780, %830 : vector<16x1xi32>
      %c0_i32_374 = arith.constant 0 : i32
      %832 = vector.broadcast %c0_i32_374 : i32 to vector<16x1xi32>
      %833 = arith.cmpi sge, %831, %832 : vector<16x1xi32>
      %c1_i32_375 = arith.constant 1 : i32
      %834 = vector.broadcast %c1_i32_375 : i32 to vector<16x1xi32>
      %835 = arith.addi %780, %834 : vector<16x1xi32>
      %c12_i32_376 = arith.constant 12 : i32
      %836 = vector.broadcast %c12_i32_376 : i32 to vector<16x1xi32>
      %837 = arith.cmpi slt, %835, %836 : vector<16x1xi32>
      %838 = arith.andi %833, %837 : vector<16x1xi1>
      %cst_377 = arith.constant 0.000000e+00 : f32
      %839 = vector.shape_cast %838 : vector<16x1xi1> to vector<16x1xi1>
      %840 = vector.broadcast %839 : vector<16x1xi1> to vector<16x32xi1>
      %841 = vector.broadcast %cst_377 : f32 to vector<16x32xf32>
      %842 = arith.select %840, %829, %841 : vector<16x32xi1>, vector<16x32xf32>
      %843 = arith.truncf %842 : vector<16x32xf32> to vector<16x32xbf16>
      %c3_378 = arith.constant 3 : index
      %c0_379 = arith.constant 0 : index
      %c0_380 = arith.constant 0 : index
      %844 = vector.load %arg4[%c3_378, %c0_379, %c0_380] : memref<5x32x32xbf16, #tpu.memory_space<vmem>>, vector<1x32x32xbf16>
      %845 = vector.shape_cast %844 : vector<1x32x32xbf16> to vector<32x32xbf16>
      %cst_381 = arith.constant dense<0.000000e+00> : vector<16x32xf32>
      %846 = tpu.matmul %843, %845, %cst_381 {dimension_numbers = #tpu.dot_dimension_numbers<[1], [0], [0], [1], [0, 0, 1, 1], [], []>} : vector<16x32xbf16>, vector<32x32xbf16>, vector<16x32xf32> -> vector<16x32xf32>
      %847 = arith.addf %826, %846 : vector<16x32xf32>
      %848 = vector.extract_strided_slice %779 {offsets = [2, 0], sizes = [14, 32], strides = [1, 1]} : vector<16x32xf32> to vector<14x32xf32>
      %849 = vector.extract_strided_slice %779 {offsets = [0, 0], sizes = [2, 32], strides = [1, 1]} : vector<16x32xf32> to vector<2x32xf32>
      %850 = tpu.concatenate %848, %849 in 0 : vector<14x32xf32>, vector<2x32xf32> -> vector<16x32xf32>
      %c2_i32_382 = arith.constant 2 : i32
      %851 = vector.broadcast %c2_i32_382 : i32 to vector<16x1xi32>
      %852 = arith.addi %780, %851 : vector<16x1xi32>
      %c0_i32_383 = arith.constant 0 : i32
      %853 = vector.broadcast %c0_i32_383 : i32 to vector<16x1xi32>
      %854 = arith.cmpi sge, %852, %853 : vector<16x1xi32>
      %c2_i32_384 = arith.constant 2 : i32
      %855 = vector.broadcast %c2_i32_384 : i32 to vector<16x1xi32>
      %856 = arith.addi %780, %855 : vector<16x1xi32>
      %c12_i32_385 = arith.constant 12 : i32
      %857 = vector.broadcast %c12_i32_385 : i32 to vector<16x1xi32>
      %858 = arith.cmpi slt, %856, %857 : vector<16x1xi32>
      %859 = arith.andi %854, %858 : vector<16x1xi1>
      %cst_386 = arith.constant 0.000000e+00 : f32
      %860 = vector.shape_cast %859 : vector<16x1xi1> to vector<16x1xi1>
      %861 = vector.broadcast %860 : vector<16x1xi1> to vector<16x32xi1>
      %862 = vector.broadcast %cst_386 : f32 to vector<16x32xf32>
      %863 = arith.select %861, %850, %862 : vector<16x32xi1>, vector<16x32xf32>
      %864 = arith.truncf %863 : vector<16x32xf32> to vector<16x32xbf16>
      %c4_387 = arith.constant 4 : index
      %c0_388 = arith.constant 0 : index
      %c0_389 = arith.constant 0 : index
      %865 = vector.load %arg4[%c4_387, %c0_388, %c0_389] : memref<5x32x32xbf16, #tpu.memory_space<vmem>>, vector<1x32x32xbf16>
      %866 = vector.shape_cast %865 : vector<1x32x32xbf16> to vector<32x32xbf16>
      %cst_390 = arith.constant dense<0.000000e+00> : vector<16x32xf32>
      %867 = tpu.matmul %864, %866, %cst_390 {dimension_numbers = #tpu.dot_dimension_numbers<[1], [0], [0], [1], [0, 0, 1, 1], [], []>} : vector<16x32xbf16>, vector<32x32xbf16>, vector<16x32xf32> -> vector<16x32xf32>
      %868 = arith.addf %847, %867 : vector<16x32xf32>
      %c0_391 = arith.constant 0 : index
      %c0_392 = arith.constant 0 : index
      %869 = vector.load %arg5[%c0_391, %c0_392] : memref<1x32xf32, #tpu.memory_space<vmem>>, vector<1x32xf32>
      %870 = vector.broadcast %869 : vector<1x32xf32> to vector<16x32xf32>
      %871 = arith.addf %868, %870 : vector<16x32xf32>
      %872 = arith.addf %871, %685 : vector<16x32xf32>
      %cst_393 = arith.constant 0.000000e+00 : f32
      %873 = vector.broadcast %cst_393 : f32 to vector<16x32xf32>
      %874 = arith.maximumf %872, %873 : vector<16x32xf32>
      %875 = vector.extract_strided_slice %874 {offsets = [1, 0], sizes = [15, 32], strides = [1, 1]} : vector<16x32xf32> to vector<15x32xf32>
      %876 = vector.extract_strided_slice %874 {offsets = [0, 0], sizes = [1, 32], strides = [1, 1]} : vector<16x32xf32> to vector<1x32xf32>
      %877 = tpu.concatenate %875, %876 in 0 : vector<15x32xf32>, vector<1x32xf32> -> vector<16x32xf32>
      %878 = arith.maximumf %874, %877 : vector<16x32xf32>
      %879 = vector.extract_strided_slice %874 {offsets = [2, 0], sizes = [14, 32], strides = [1, 1]} : vector<16x32xf32> to vector<14x32xf32>
      %880 = vector.extract_strided_slice %874 {offsets = [0, 0], sizes = [2, 32], strides = [1, 1]} : vector<16x32xf32> to vector<2x32xf32>
      %881 = tpu.concatenate %879, %880 in 0 : vector<14x32xf32>, vector<2x32xf32> -> vector<16x32xf32>
      %882 = arith.maximumf %878, %881 : vector<16x32xf32>
      %883 = vector.extract_strided_slice %874 {offsets = [3, 0], sizes = [13, 32], strides = [1, 1]} : vector<16x32xf32> to vector<13x32xf32>
      %884 = vector.extract_strided_slice %874 {offsets = [0, 0], sizes = [3, 32], strides = [1, 1]} : vector<16x32xf32> to vector<3x32xf32>
      %885 = tpu.concatenate %883, %884 in 0 : vector<13x32xf32>, vector<3x32xf32> -> vector<16x32xf32>
      %886 = arith.maximumf %882, %885 : vector<16x32xf32>
      %887 = vector.extract_strided_slice %874 {offsets = [4, 0], sizes = [12, 32], strides = [1, 1]} : vector<16x32xf32> to vector<12x32xf32>
      %888 = vector.extract_strided_slice %874 {offsets = [0, 0], sizes = [4, 32], strides = [1, 1]} : vector<16x32xf32> to vector<4x32xf32>
      %889 = tpu.concatenate %887, %888 in 0 : vector<12x32xf32>, vector<4x32xf32> -> vector<16x32xf32>
      %890 = arith.maximumf %886, %889 : vector<16x32xf32>
      %c0_394 = arith.constant 0 : index
      %c0_395 = arith.constant 0 : index
      %891 = vector.load %arg13[%c0_394, %c0_395] : memref<128x32xf32, #tpu.memory_space<vmem>>, vector<16x32xf32>
      tpu.vector_store %arg13[%c0_394, %c0_395], %890 {strides = array<i32>} : memref<128x32xf32, #tpu.memory_space<vmem>>, vector<16x32xf32>,
      %c0_396 = arith.constant 0 : index
      %c0_397 = arith.constant 0 : index
      %892 = tpu.strided_load %arg13[%c0_396, %c0_397] {strides = array<i32: 2, 1>} : memref<128x32xf32, #tpu.memory_space<vmem>>, vector<8x32xf32>
      %c8_i32 = arith.constant 8 : i32
      %893 = arith.muli %arg15, %c8_i32 : i32
      %894 = tpu.assume_multiple %893, 8 : i32
      %895 = arith.index_cast %894 : i32 to index
      %c0_398 = arith.constant 0 : index
      %896 = vector.load %arg14[%895, %c0_398] : memref<24x32xf32, #tpu.memory_space<vmem>>, vector<8x32xf32>
      tpu.vector_store %arg14[%895, %c0_398], %892 {strides = array<i32>} : memref<24x32xf32, #tpu.memory_space<vmem>>, vector<8x32xf32>,
    }
    %c3_i32_0 = arith.constant 3 : i32
    %c0 = arith.constant 0 : index
    %c0_1 = arith.constant 0 : index
    %1 = tpu.strided_load %arg14[%c0, %c0_1] {strides = array<i32: 8, 1>} : memref<24x32xf32, #tpu.memory_space<vmem>>, vector<3x32xf32>
    %2 = arith.truncf %1 : vector<3x32xf32> to vector<3x32xbf16>
    %c0_2 = arith.constant 0 : index
    %c0_3 = arith.constant 0 : index
    %c0_4 = arith.constant 0 : index
    %3 = vector.load %arg6[%c0_2, %c0_3, %c0_4] : memref<4x32x32xbf16, #tpu.memory_space<vmem>>, vector<1x32x32xbf16>
    %4 = vector.shape_cast %3 : vector<1x32x32xbf16> to vector<32x32xbf16>
    %cst = arith.constant dense<0.000000e+00> : vector<3x32xf32>
    %5 = tpu.matmul %2, %4, %cst {dimension_numbers = #tpu.dot_dimension_numbers<[1], [0], [0], [1], [0, 0, 1, 1], [], []>} : vector<3x32xbf16>, vector<32x32xbf16>, vector<3x32xf32> -> vector<3x32xf32>
    %c1 = arith.constant 1 : index
    %c0_5 = arith.constant 0 : index
    %6 = tpu.strided_load %arg14[%c1, %c0_5] {strides = array<i32: 8, 1>} : memref<24x32xf32, #tpu.memory_space<vmem>>, vector<3x32xf32>
    %7 = arith.truncf %6 : vector<3x32xf32> to vector<3x32xbf16>
    %c1_6 = arith.constant 1 : index
    %c0_7 = arith.constant 0 : index
    %c0_8 = arith.constant 0 : index
    %8 = vector.load %arg6[%c1_6, %c0_7, %c0_8] : memref<4x32x32xbf16, #tpu.memory_space<vmem>>, vector<1x32x32xbf16>
    %9 = vector.shape_cast %8 : vector<1x32x32xbf16> to vector<32x32xbf16>
    %cst_9 = arith.constant dense<0.000000e+00> : vector<3x32xf32>
    %10 = tpu.matmul %7, %9, %cst_9 {dimension_numbers = #tpu.dot_dimension_numbers<[1], [0], [0], [1], [0, 0, 1, 1], [], []>} : vector<3x32xbf16>, vector<32x32xbf16>, vector<3x32xf32> -> vector<3x32xf32>
    %11 = arith.addf %5, %10 : vector<3x32xf32>
    %c2 = arith.constant 2 : index
    %c0_10 = arith.constant 0 : index
    %12 = tpu.strided_load %arg14[%c2, %c0_10] {strides = array<i32: 8, 1>} : memref<24x32xf32, #tpu.memory_space<vmem>>, vector<3x32xf32>
    %13 = arith.truncf %12 : vector<3x32xf32> to vector<3x32xbf16>
    %c2_11 = arith.constant 2 : index
    %c0_12 = arith.constant 0 : index
    %c0_13 = arith.constant 0 : index
    %14 = vector.load %arg6[%c2_11, %c0_12, %c0_13] : memref<4x32x32xbf16, #tpu.memory_space<vmem>>, vector<1x32x32xbf16>
    %15 = vector.shape_cast %14 : vector<1x32x32xbf16> to vector<32x32xbf16>
    %cst_14 = arith.constant dense<0.000000e+00> : vector<3x32xf32>
    %16 = tpu.matmul %13, %15, %cst_14 {dimension_numbers = #tpu.dot_dimension_numbers<[1], [0], [0], [1], [0, 0, 1, 1], [], []>} : vector<3x32xbf16>, vector<32x32xbf16>, vector<3x32xf32> -> vector<3x32xf32>
    %17 = arith.addf %11, %16 : vector<3x32xf32>
    %c3 = arith.constant 3 : index
    %c0_15 = arith.constant 0 : index
    %18 = tpu.strided_load %arg14[%c3, %c0_15] {strides = array<i32: 8, 1>} : memref<24x32xf32, #tpu.memory_space<vmem>>, vector<3x32xf32>
    %19 = arith.truncf %18 : vector<3x32xf32> to vector<3x32xbf16>
    %c3_16 = arith.constant 3 : index
    %c0_17 = arith.constant 0 : index
    %c0_18 = arith.constant 0 : index
    %20 = vector.load %arg6[%c3_16, %c0_17, %c0_18] : memref<4x32x32xbf16, #tpu.memory_space<vmem>>, vector<1x32x32xbf16>
    %21 = vector.shape_cast %20 : vector<1x32x32xbf16> to vector<32x32xbf16>
    %cst_19 = arith.constant dense<0.000000e+00> : vector<3x32xf32>
    %22 = tpu.matmul %19, %21, %cst_19 {dimension_numbers = #tpu.dot_dimension_numbers<[1], [0], [0], [1], [0, 0, 1, 1], [], []>} : vector<3x32xbf16>, vector<32x32xbf16>, vector<3x32xf32> -> vector<3x32xf32>
    %23 = arith.addf %17, %22 : vector<3x32xf32>
    %c0_20 = arith.constant 0 : index
    %c0_21 = arith.constant 0 : index
    %24 = vector.load %arg7[%c0_20, %c0_21] : memref<1x32xf32, #tpu.memory_space<vmem>>, vector<1x32xf32>
    %25 = vector.broadcast %24 : vector<1x32xf32> to vector<3x32xf32>
    %26 = arith.addf %23, %25 : vector<3x32xf32>
    %cst_22 = arith.constant 0.000000e+00 : f32
    %27 = vector.broadcast %cst_22 : f32 to vector<3x32xf32>
    %28 = arith.maximumf %26, %27 : vector<3x32xf32>
    %29 = arith.truncf %28 : vector<3x32xf32> to vector<3x32xbf16>
    %c0_23 = arith.constant 0 : index
    %c0_24 = arith.constant 0 : index
    %30 = vector.load %arg8[%c0_23, %c0_24] : memref<32x32xbf16, #tpu.memory_space<vmem>>, vector<32x32xbf16>
    %cst_25 = arith.constant dense<0.000000e+00> : vector<3x32xf32>
    %31 = tpu.matmul %29, %30, %cst_25 {dimension_numbers = #tpu.dot_dimension_numbers<[1], [0], [0], [1], [0, 0, 1, 1], [], []>} : vector<3x32xbf16>, vector<32x32xbf16>, vector<3x32xf32> -> vector<3x32xf32>
    %c0_26 = arith.constant 0 : index
    %c0_27 = arith.constant 0 : index
    %32 = vector.load %arg9[%c0_26, %c0_27] : memref<1x32xf32, #tpu.memory_space<vmem>>, vector<1x32xf32>
    %33 = vector.broadcast %32 : vector<1x32xf32> to vector<3x32xf32>
    %34 = arith.addf %31, %33 : vector<3x32xf32>
    %cst_28 = arith.constant 0.000000e+00 : f32
    %35 = vector.broadcast %cst_28 : f32 to vector<3x32xf32>
    %36 = arith.maximumf %34, %35 : vector<3x32xf32>
    %37 = arith.truncf %36 : vector<3x32xf32> to vector<3x32xbf16>
    %c0_29 = arith.constant 0 : index
    %c0_30 = arith.constant 0 : index
    %38 = vector.load %arg10[%c0_29, %c0_30] : memref<32x5xbf16, #tpu.memory_space<vmem>>, vector<32x5xbf16>
    %cst_31 = arith.constant dense<0.000000e+00> : vector<3x5xf32>
    %39 = tpu.matmul %37, %38, %cst_31 {dimension_numbers = #tpu.dot_dimension_numbers<[1], [0], [0], [1], [0, 0, 1, 1], [], []>} : vector<3x32xbf16>, vector<32x5xbf16>, vector<3x5xf32> -> vector<3x5xf32>
    %c0_32 = arith.constant 0 : index
    %c0_33 = arith.constant 0 : index
    %40 = vector.load %arg11[%c0_32, %c0_33] : memref<1x5xf32, #tpu.memory_space<vmem>>, vector<1x5xf32>
    %41 = vector.broadcast %40 : vector<1x5xf32> to vector<3x5xf32>
    %42 = arith.addf %39, %41 : vector<3x5xf32>
    %cst_34 = arith.constant dense<0xFF800000> : vector<3xf32>
    %43 = vector.multi_reduction <maximumf>, %42, %cst_34 [1] : vector<3x5xf32> to vector<3xf32>
    %44 = vector.shape_cast %43 : vector<3xf32> to vector<3x1xf32>
    %45 = vector.broadcast %44 : vector<3x1xf32> to vector<3x5xf32>
    %46 = arith.subf %42, %45 : vector<3x5xf32>
    %47 = math.exp %46 : vector<3x5xf32>
    %cst_35 = arith.constant dense<0.000000e+00> : vector<3xf32>
    %48 = vector.multi_reduction <add>, %47, %cst_35 [1] : vector<3x5xf32> to vector<3xf32>
    %49 = vector.shape_cast %48 : vector<3xf32> to vector<3x1xf32>
    %50 = math.log %49 : vector<3x1xf32>
    %51 = vector.broadcast %50 : vector<3x1xf32> to vector<3x5xf32>
    %52 = arith.subf %46, %51 : vector<3x5xf32>
    %c0_36 = arith.constant 0 : index
    %c0_37 = arith.constant 0 : index
    %c0_38 = arith.constant 0 : index
    %53 = vector.load %arg12[%c0_36, %c0_37, %c0_38] : memref<1x3x5xf32, #tpu.memory_space<vmem>>, vector<1x3x5xf32>
    %54 = vector.shape_cast %53 : vector<1x3x5xf32> to vector<3x5xf32>
    %55 = vector.shape_cast %52 : vector<3x5xf32> to vector<1x3x5xf32>
    tpu.vector_store %arg12[%c0_36, %c0_37, %c0_38], %55 {strides = array<i32>} : memref<1x3x5xf32, #tpu.memory_space<vmem>>, vector<1x3x5xf32>,
    return
  }
  func.func @transform_0(%arg0: i32) -> (i32, i32, i32) {
    %c0_i32 = arith.constant 0 : i32
    %c0_i32_0 = arith.constant 0 : i32
    %c0_i32_1 = arith.constant 0 : i32
    return %arg0, %c0_i32, %c0_i32_0 : i32, i32, i32
  }
  func.func @transform_1(%arg0: i32) -> (i32, i32) {
    %c0_i32 = arith.constant 0 : i32
    %c0_i32_0 = arith.constant 0 : i32
    %c0_i32_1 = arith.constant 0 : i32
    return %c0_i32, %c0_i32_0 : i32, i32
  }
  func.func @transform_2(%arg0: i32) -> (i32, i32) {
    %c0_i32 = arith.constant 0 : i32
    %c0_i32_0 = arith.constant 0 : i32
    %c0_i32_1 = arith.constant 0 : i32
    return %c0_i32, %c0_i32_0 : i32, i32
  }
  func.func @transform_3(%arg0: i32) -> (i32, i32, i32) {
    %c0_i32 = arith.constant 0 : i32
    %c0_i32_0 = arith.constant 0 : i32
    %c0_i32_1 = arith.constant 0 : i32
    %c0_i32_2 = arith.constant 0 : i32
    return %c0_i32, %c0_i32_0, %c0_i32_1 : i32, i32, i32
  }
  func.func @transform_4(%arg0: i32) -> (i32, i32) {
    %c0_i32 = arith.constant 0 : i32
    %c0_i32_0 = arith.constant 0 : i32
    %c0_i32_1 = arith.constant 0 : i32
    return %c0_i32, %c0_i32_0 : i32, i32
  }
  func.func @transform_5(%arg0: i32) -> (i32, i32, i32) {
    %c0_i32 = arith.constant 0 : i32
    %c0_i32_0 = arith.constant 0 : i32
    %c0_i32_1 = arith.constant 0 : i32
    %c0_i32_2 = arith.constant 0 : i32
    return %c0_i32, %c0_i32_0, %c0_i32_1 : i32, i32, i32
  }
  func.func @transform_6(%arg0: i32) -> (i32, i32) {
    %c0_i32 = arith.constant 0 : i32
    %c0_i32_0 = arith.constant 0 : i32
    %c0_i32_1 = arith.constant 0 : i32
    return %c0_i32, %c0_i32_0 : i32, i32
  }
  func.func @transform_7(%arg0: i32) -> (i32, i32) {
    %c0_i32 = arith.constant 0 : i32
    %c0_i32_0 = arith.constant 0 : i32
    %c0_i32_1 = arith.constant 0 : i32
    return %c0_i32, %c0_i32_0 : i32, i32
  }
  func.func @transform_8(%arg0: i32) -> (i32, i32) {
    %c0_i32 = arith.constant 0 : i32
    %c0_i32_0 = arith.constant 0 : i32
    %c0_i32_1 = arith.constant 0 : i32
    return %c0_i32, %c0_i32_0 : i32, i32
  }
  func.func @transform_9(%arg0: i32) -> (i32, i32) {
    %c0_i32 = arith.constant 0 : i32
    %c0_i32_0 = arith.constant 0 : i32
    %c0_i32_1 = arith.constant 0 : i32
    return %c0_i32, %c0_i32_0 : i32, i32
  }
  func.func @transform_10(%arg0: i32) -> (i32, i32) {
    %c0_i32 = arith.constant 0 : i32
    %c0_i32_0 = arith.constant 0 : i32
    %c0_i32_1 = arith.constant 0 : i32
    return %c0_i32, %c0_i32_0 : i32, i32
  }
  func.func @transform_11(%arg0: i32) -> (i32, i32, i32) {
    %c0_i32 = arith.constant 0 : i32
    %c0_i32_0 = arith.constant 0 : i32
    %c0_i32_1 = arith.constant 0 : i32
    return %arg0, %c0_i32, %c0_i32_0 : i32, i32, i32
  }
}

</mosaic_0001>

<bundles_post_ra>
// kernel: tpu_custom_call.1
= control target key start
LH: loop header
LB: loop body
LE: loop exit
PB: predicated region body
PF: predicated region fallthrough
CT: control target
= control target key end

     0   :  { %6 = vsyncpa [#allocation3], 0  ;;  %s115_s0 = inlined_call_operand.hbm [shape: f32[8,128], index: 0, kind: input, shape index: {}]   ;;  %s116_s1 = inlined_call_operand.hbm [shape: f32[8,128], index: 1, kind: output, shape index: {}]  }
   0x1   :  { %7 = vsyncpa [#allocation4], 0  ;;  %s13_s8 = sshll.u32 %s115_s0, 4  ;;  %s97_s9 = smov [#allocation2]   ;;  %s14_s8 = int_to_ptr.hbm [resolvable:$true] %s13_s8 }
   0x2   :  { %s15_s10 = sshll.u32 %s97_s9, 4  ;;  %s16_s10 = int_to_ptr.vmem [resolvable:$true] %s15_s10 }
   0x3   :  { %18 = dma.hbm_to_vmem [thread:$0]  %s14_s8, 128, %s16_s10, [#allocation3]  }
   0x4   :  { %93 = dma.done.wait [#allocation3], 128  }
   0x5   :  { %94 = vsyncadd [#allocation3], 4294967168  ;;  %s98_s11 = smov [#allocation5]   ;;  %s33_s15 = sshll.u32 %s116_s1, 4  ;;  %v23_v0 = vld [vmem:[#allocation2] sm:$0xff]  ;;  %s34_s15 = int_to_ptr.hbm [resolvable:$true] %s33_s15 }
   0x6   :  { %s31_s12 = sshll.u32 %s98_s11, 4  ;;  %v24_v1 = vrot.slane %v23_v0, 7  ;;  %s32_s12 = int_to_ptr.vmem [resolvable:$true] %s31_s12 }
   0x8   :  { %25 = vst [vmem:[#allocation5] sm:$0xff] %v24_v1 }
   0x9   :  { %36 = dma.vmem_to_hbm [thread:$0]  %s32_s12, 128, %s34_s15, [#allocation4]  }
   0xa   :  { %95 = dma.done.wait [#allocation4], 128  }
   0xb   :  { %96 = vsyncadd [#allocation4], 4294967168 }
   0xc   :  { %41 = vsyncpa [#allocation3], 1 }
   0xd   :  { %42 = vsyncpa [#allocation4], 1 }

// kernel: tpu_custom_call.1
= control target key start
LH: loop header
LB: loop body
LE: loop exit
PB: predicated region body
PF: predicated region fallthrough
CT: control target
= control target key end

     0   :  { %s6090_s17 = smov 0   ;;  %s8005_s0 = inlined_call_operand.vmem [shape: f32[6,128,20], index: 0, kind: input, shape index: {}]   ;;  %s8006_s1 = inlined_call_operand.vmem [shape: bf16[20,32], index: 1, kind: input, shape index: {}]   ;;  %s8007_s2 = inlined_call_operand.vmem [shape: f32[1,32], index: 2, kind: input, shape index: {}]   ;;  %s8008_s3 = inlined_call_operand.vmem [shape: bf16[5,32,32], index: 3, kind: input, shape index: {}]   ;;  %s8009_s4 = inlined_call_operand.vmem [shape: f32[1,32], index: 4, kind: input, shape index: {}]   ;;  %s8010_s5 = inlined_call_operand.vmem [shape: bf16[4,32,32], index: 5, kind: input, shape index: {}]   ;;  %s8011_s6 = inlined_call_operand.vmem [shape: f32[1,32], index: 6, kind: input, shape index: {}]   ;;  %s8012_s7 = inlined_call_operand.vmem [shape: bf16[32,32], index: 7, kind: input, shape index: {}]   ;;  %s8013_s8 = inlined_call_operand.vmem [shape: f32[1,32], index: 8, kind: input, shape index: {}]   ;;  %s8014_s9 = inlined_call_operand.vmem [shape: bf16[32,5], index: 9, kind: input, shape index: {}]   ;;  %s8015_s10 = inlined_call_operand.vmem [shape: f32[1,5], index: 10, kind: input, shape index: {}]   ;;  %s8016_s11 = inlined_call_operand.vmem [shape: f32[2,3,5], index: 11, kind: output, shape index: {}]  }
   0x1 LB: > { %s5463_s18 = sadd.s32 4294967295, %s6024_s17   ;;  %p5467_p0 = scmp.ge.s32.totalorder %s6024_s17, 1  ;;  %s6024_s17 = sphi %s6090_s17, %s21_s17  }
   0x2   : > { %p339_p1 = scmp.lt.s32.totalorder %s6024_s17, 3 }
   0x4   : > { %p340_p2 = pnand %p5467_p0, %p339_p1 }
   0x5   : > { %s379_s19 = smul.u32 (!%p340_p2), 3, %s5463_s18  ;;  %p386_p3 = scmp.lt.s32.totalorder (!%p340_p2), %s5463_s18, 1 }
   0x6   : > { %343 = sbr.rel (%p340_p2) target bundleno = 3067 (0xbfb), region = 64  ;;  %s6108_s28 = smov (!%p340_p2), 0  }
   0x7   : > { %p380_p4 = scmp.lt.s32.totalorder (!%p340_p2), %s379_s19, 5 }
   0xb   : > { %s8115_s18 = smov (!%p386_p3, %s5463_s18), 1  ;;  %s8117_s19 = smov (!%p380_p4, %s379_s19), 5 }
   0xc   : > { %s5470_s20 = sshll.u32 %s8115_s18, 2  ;;  %s5927_s21 = sshll.u32 %s8117_s19, 7 }
   0xd   : > { %s6101_s24 = scalar_lea.vmem %s8016_s11, %s5470_s20  ;;  %s6106_s27 = scalar_lea.vmem %s8005_s0, %s5927_s21 }
   0xe LB: >> { %v425_v0 = vld [vmem:[%s8006_s1 + $0x8] sm:$0x3]  ;;  %vm464_vm0 = vcmask 1041408   ;;  %s5471_s12 = sshll.u32 %s6028_s28, 7  ;;  %v5928_v4 = vld [vmem:[%s8006_s1] sm:$0xff]  ;;  %vm439_vm1 = vcmask 162816   ;;  %s6028_s28 = sphi %s6108_s28, %s396_s28  }
   0xf   : >> { %v435_v1 = vunpack.c.l.b16 %v425_v0  ;;  %s6118_s13 = scalar_lea.vmem %s6106_s27, %s5471_s12  ;;  %v5934_v26 = vld [vmem:[%s8008_s3 + $0x28] sm:$0xff]  ;;  %v5933_v27 = vld [vmem:[%s8008_s3 + $0x20] sm:$0xff]  ;;  %v6156_v31 = vld [vmem:[%s8008_s3 + $0x38] sm:$0xff]  ;;  %vm910_vm2 = vcmask 261120   ;;  %vm1183_vm3 = vcmask 1046528   ;;  %vm725_vm4 = vcmask 1040384  }
  0x10   : >> { %v399_v5 = vld [vmem:[%s6118_s13] sm:$0xff]  ;;  %v400_v6 = vld [vmem:[%s6118_s13 + $0x8] sm:$0xff]  ;;  %v401_v8 = vld [vmem:[%s6118_s13 + $0x10] sm:$0xff]  ;;  %1124 = vmatpush.bf16.msra.mxu3 %v5934_v26  ;;  %vm1459_vm10 = vcmask 1045504   ;;  %vm2694_vm12 = vcmask 1044480   ;;  %vm2760_vm13 = vcmask 1043456  }
  0x11   : >> { %v437_v2 = vpack.c.b16 %v435_v1, %v435_v1  ;;  %v415_v7 = vpack.c.bf16 %v400_v6, %v399_v5  ;;  %v402_v9 = vld [vmem:[%s6118_s13 + $0x18] sm:$0xff]  ;;  %v403_v11 = vld [vmem:[%s6118_s13 + $0x20] sm:$0xff]  ;;  %v404_v12 = vld [vmem:[%s6118_s13 + $0x28] sm:$0xff]  ;;  %s5858_s19 = sshll.u32 %s6028_s28, 3  ;;  %s396_s28 = sadd.s32 1, %s6028_s28  }
  0x12   : >> { %v416_v10 = vpack.c.bf16 %v402_v9, %v401_v8  ;;  %v417_v13 = vpack.c.bf16 %v404_v12, %v403_v11  ;;  %v405_v14 = vld [vmem:[%s6118_s13 + $0x30] sm:$0xff]  ;;  %v406_v15 = vld [vmem:[%s6118_s13 + $0x38] sm:$0xff]  ;;  %v407_v17 = vld [vmem:[%s6118_s13 + $0x40] sm:$0xff]  ;;  %s5159_s20 = scalar_lea.vmem [#allocation3], %s5858_s19  ;;  %p393_p5 = scmp.ge.s32.totalorder %s396_s28, 3  }
  0x13   : >> { %v466_v3 = vsel %vm464_vm0, %v437_v2, 0  ;;  %v418_v16 = vpack.c.bf16 %v406_v15, %v405_v14  ;;  %v408_v18 = vld [vmem:[%s6118_s13 + $0x48] sm:$0xff]  ;;  %v409_v20 = vld [vmem:[%s6118_s13 + $0x50] sm:$0xff]  ;;  %v410_v21 = vld [vmem:[%s6118_s13 + $0x58] sm:$0xff] }
  0x14   : >> { %474 = vmatpush.bf16.msra.mxu0 %v466_v3  ;;  %v419_v19 = vpack.c.bf16 %v408_v18, %v407_v17  ;;  %v420_v22 = vpack.c.bf16 %v410_v21, %v409_v20  ;;  %v411_v23 = vld [vmem:[%s6118_s13 + $0x60] sm:$0xff]  ;;  %v412_v24 = vld [vmem:[%s6118_s13 + $0x68] sm:$0xff]  ;;  %1125 = vmatpush.bf16.msra.mxu3 %v5933_v27  ;;  %v413_v28 = vld [vmem:[%s6118_s13 + $0x70] sm:$0xff] }
  0x15   : >> { %v421_v25 = vpack.c.bf16 %v412_v24, %v411_v23  ;;  %v414_v29 = vld [vmem:[%s6118_s13 + $0x78] sm:$0xff]  ;;  %v6162_v32 = vld [vmem:[%s8008_s3 + $0x30] sm:$0xff]  ;;  %v6169_v34 = vld [vmem:[%s8007_s2] ss:$0 sm:$0xff] }
  0x16   : >> { %v422_v30 = vpack.c.bf16 %v414_v29, %v413_v28  ;;  %v5932_v24 = vld [vmem:[%s8008_s3 + $0x18] sm:$0xff]  ;;  %v5931_v28 = vld [vmem:[%s8008_s3 + $0x10] sm:$0xff]  ;;  %v5929_v29 = vld [vmem:[%s8008_s3] sm:$0xff] }
  0x17   : >> { %941 = vmatpush.bf16.msra.mxu1 %v5932_v24 }
  0x18   : >> { %475 = vmatpush.bf16.msra.mxu0 %v5928_v4 }
  0x1b   : >> { %5476 = vmatmul.msk.bf16.vlgmr.msra.gmra.mxu0 %vm439_vm1, %v415_v7  ;;  %942 = vmatpush.bf16.msra.mxu1 %v5931_v28 }
  0x1c   : >> { %1400 = vmatpush.bf16.msrb.mxu0 %v6156_v31 }
  0x20   : >> { %1401 = vmatpush.bf16.msrb.mxu0 %v6162_v32 }
  0x24   : >> { %2117 = vmatpush.bf16.msra.mxu0 %v5934_v26 }
  0x28   : >> { %2118 = vmatpush.bf16.msra.mxu0 %v5933_v27 }
  0x2b   : >> { %5477 = vmatmul.msk.bf16.gmra.mxu0 %vm439_vm1, %v416_v10 }
  0x3b   : >> { %5478 = vmatmul.msk.bf16.gmra.mxu0 %vm439_vm1, %v417_v13 }
  0x4b   : >> { %5479 = vmatmul.msk.bf16.gmra.mxu0 %vm439_vm1, %v418_v16 }
  0x5b   : >> { %5480 = vmatmul.msk.bf16.gmra.mxu0 %vm439_vm1, %v419_v19 }
  0x6b   : >> { %5481 = vmatmul.msk.bf16.gmra.mxu0 %vm439_vm1, %v420_v22 }
  0x7b   : >> { %5482 = vmatmul.msk.bf16.gmra.mxu0 %vm439_vm1, %v421_v25  ;;  %v5930_v25 = vld [vmem:[%s8008_s3 + $0x8] sm:$0xff] }
  0x7c   : >> { %1026 = vmatpush.bf16.msra.mxu2 %v5930_v25  ;;  %2036 = vmatpush.bf16.msrb.mxu3 %v5930_v25 }
  0x80   : >> { %1027 = vmatpush.bf16.msra.mxu2 %v5929_v29  ;;  %2037 = vmatpush.bf16.msrb.mxu3 %v5929_v29 }
  0x84   : >> { %1963 = vmatpush.bf16.msrb.mxu2 %v5932_v24 }
  0x88   : >> { %1964 = vmatpush.bf16.msrb.mxu2 %v5931_v28 }
  0x8b   : >> { %5483 = vmatmul.msk.bf16.gmra.mxu0 %vm439_vm1, %v422_v30 }
  0x98   : >> { %v477_v33 = vpop.f32.mrf.mxu0 }
  0x99   : >> { %v6172_v36 = vadd.f32 %v6169_v34, %v477_v33 }
  0x9b   : >> { %8045 = vst [vmem:[#allocation4_spill] sm:$0xff] %v6172_v36  ;;  %v1184_v42 = vrot.slane %v6172_v36, 1 }
  0xa0   : >> { %v479_v35 = vpop.f32.mrf.mxu0 }
  0xa1   : >> { %v6175_v37 = vadd.f32 %v6169_v34, %v479_v35 }
  0xa3   : >> { %8046 = vst [vmem:[#allocation5_spill] sm:$0xff] %v6175_v37  ;;  %v1069_v38 = vpack.c.bf16 %v6175_v37, %v6172_v36  ;;  %v1185_v41 = vrot.slane %v6175_v37, 1 }
  0xa5   : >> { %5532 = vmatmul.msk.bf16.vlgmr.msra.gmra.mxu3 %vm910_vm2, %v1069_v38  ;;  %v1186_v44 = vsel %vm1183_vm3, %v1184_v42, %v1185_v41  ;;  %v5938_v38 = vld [vmem:[%s8008_s3 + $0x48] sm:$0xff] }
  0xa6   : >> { %1676 = vmatpush.bf16.msrb.mxu1 %v5938_v38 }
  0xa8   : >> { %v482_v39 = vpop.f32.mrf.mxu0 }
  0xa9   : >> { %v6181_v40 = vadd.f32 %v6169_v34, %v482_v39 }
  0xab   : >> { %8047 = vst [vmem:[#allocation6_spill] sm:$0xff] %v6181_v40  ;;  %v1187_v43 = vrot.slane %v6181_v40, 1  ;;  %v555_v29 = vrot.slane %v6181_v40, 6 }
  0xad   : >> { %v1188_v45 = vsel %vm1183_vm3, %v1185_v41, %v1187_v43 }
  0xae   : >> { %v1345_v46 = vpack.c.bf16 %v1188_v45, %v1186_v44 }
  0xb0   : >> { %v484_v47 = vpop.f32.mrf.mxu0  ;;  %5552 = vmatmul.msk.bf16.vlgmr.msrb.gmra.mxu0 %vm910_vm2, %v1345_v46 }
  0xb1   : >> { %v6192_v48 = vadd.f32 %v6169_v34, %v484_v47 }
  0xb3   : >> { %8048 = vst [vmem:[#allocation7_spill] sm:$0xff] %v6192_v48  ;;  %v1070_v49 = vpack.c.bf16 %v6192_v48, %v6181_v40  ;;  %v1189_v52 = vrot.slane %v6192_v48, 1  ;;  %v557_v28 = vrot.slane %v6192_v48, 6 }
  0xb5   : >> { %5533 = vmatmul.msk.bf16.gmra.mxu3 %vm910_vm2, %v1070_v49  ;;  %v1190_v54 = vsel %vm1183_vm3, %v1187_v43, %v1189_v52 }
  0xb8   : >> { %v487_v50 = vpop.f32.mrf.mxu0 }
  0xb9   : >> { %v6198_v51 = vadd.f32 %v6169_v34, %v487_v50  ;;  %v517_v50 = vlaneseq }
  0xbb   : >> { %8049 = vst [vmem:[#allocation8_spill] sm:$0xff] %v6198_v51  ;;  %v1191_v53 = vrot.slane %v6198_v51, 1 }
  0xbd   : >> { %v1192_v55 = vsel %vm1183_vm3, %v1189_v52, %v1191_v53 }
  0xbe   : >> { %v1346_v56 = vpack.c.bf16 %v1192_v55, %v1190_v54  ;;  %v6287_v55 = vshrl.u32 %v517_v50, 7 }
  0xc0   : >> { %v489_v57 = vpop.f32.mrf.mxu0  ;;  %5553 = vmatmul.msk.bf16.gmra.mxu0 %vm910_vm2, %v1346_v56  ;;  %8060 = vst [vmem:[#allocation19_spill] sm:$0xff] %v6287_v55 }
  0xc1   : >> { %v6206_v58 = vadd.f32 %v6169_v34, %v489_v57 }
  0xc3   : >> { %8050 = vst [vmem:[#allocation9_spill] sm:$0xff] %v6206_v58  ;;  %v1071_v59 = vpack.c.bf16 %v6206_v58, %v6198_v51  ;;  %v1193_v62 = vrot.slane %v6206_v58, 1 }
  0xc5   : >> { %5534 = vmatmul.msk.bf16.gmra.mxu3 %vm910_vm2, %v1071_v59  ;;  %v1194_v0 = vsel %vm1183_vm3, %v1191_v53, %v1193_v62 }
  0xc8   : >> { %v492_v60 = vpop.f32.mrf.mxu0 }
  0xc9   : >> { %v6212_v61 = vadd.f32 %v6169_v34, %v492_v60  ;;  %v6292_v60 = vadd.s32 4294967295, %v6287_v55 }
  0xcb   : >> { %8051 = vst [vmem:[#allocation10_spill] sm:$0xff] %v6212_v61  ;;  %v1195_v63 = vrot.slane %v6212_v61, 1  ;;  %vm789_vm5 = vcmp.ge.s32.totalorder %v6292_v60, 0 }
  0xcd   : >> { %v1196_v1 = vsel %vm1183_vm3, %v1193_v62, %v1195_v63  ;;  %v6295_v62 = vadd.s32 4294967294, %v6287_v55 }
  0xce   : >> { %v1347_v2 = vpack.c.bf16 %v1196_v1, %v1194_v0  ;;  %v6299_v0 = vadd.s32 120, %v6287_v55 }
  0xcf   : >> { %vm615_vm6 = vcmp.ge.s32.totalorder %v6295_v62, 0 }
  0xd0   : >> { %v494_v3 = vpop.f32.mrf.mxu0  ;;  %5554 = vmatmul.msk.bf16.gmra.mxu0 %vm910_vm2, %v1347_v2  ;;  %v726_v2 = vrot.slane %v6172_v36, 7 }
  0xd1   : >> { %v6220_v4 = vadd.f32 %v6169_v34, %v494_v3  ;;  %v727_v3 = vrot.slane %v6175_v37, 7 }
  0xd3   : >> { %8052 = vst [vmem:[#allocation11_spill] sm:$0xff] %v6220_v4  ;;  %v1072_v5 = vpack.c.bf16 %v6220_v4, %v6212_v61  ;;  %v1197_v8 = vrot.slane %v6220_v4, 1 }
  0xd5   : >> { %5535 = vmatmul.msk.bf16.gmra.mxu3 %vm910_vm2, %v1072_v5  ;;  %v1198_v10 = vsel %vm1183_vm3, %v1195_v63, %v1197_v8  ;;  %v552_v5 = vrot.slane %v6172_v36, 6 }
  0xd8   : >> { %v497_v6 = vpop.f32.mrf.mxu0 }
  0xd9   : >> { %v6226_v7 = vadd.f32 %v6169_v34, %v497_v6  ;;  %v553_v6 = vrot.slane %v6175_v37, 6 }
  0xdb   : >> { %8053 = vst [vmem:[#allocation12_spill] sm:$0xff] %v6226_v7  ;;  %v1199_v9 = vrot.slane %v6226_v7, 1 }
  0xdd   : >> { %v1200_v11 = vsel %vm1183_vm3, %v1197_v8, %v1199_v9 }
  0xde   : >> { %v1348_v12 = vpack.c.bf16 %v1200_v11, %v1198_v10  ;;  %v6316_v11 = vadd.s32 1, %v6299_v0 }
  0xe0   : >> { %v499_v13 = vpop.f32.mrf.mxu0  ;;  %5555 = vmatmul.msk.bf16.gmra.mxu0 %vm910_vm2, %v1348_v12  ;;  %vm1280_vm7 = vcmp.lt.s32.totalorder %v6316_v11, 124 }
  0xe1   : >> { %v6234_v14 = vadd.f32 %v6169_v34, %v499_v13 }
  0xe3   : >> { %8054 = vst [vmem:[#allocation13_spill] sm:$0xff] %v6234_v14  ;;  %v1073_v15 = vpack.c.bf16 %v6234_v14, %v6226_v7  ;;  %v1201_v18 = vrot.slane %v6234_v14, 1 }
  0xe5   : >> { %5536 = vmatmul.msk.bf16.gmra.mxu3 %vm910_vm2, %v1073_v15  ;;  %v1202_v20 = vsel %vm1183_vm3, %v1199_v9, %v1201_v18  ;;  %v728_v15 = vsel %vm725_vm4, %v726_v2, %v727_v3 }
  0xe8   : >> { %v502_v16 = vpop.f32.mrf.mxu0 }
  0xe9   : >> { %v6240_v17 = vadd.f32 %v6169_v34, %v502_v16 }
  0xeb   : >> { %8055 = vst [vmem:[#allocation14_spill] sm:$0xff] %v6240_v17  ;;  %v1203_v19 = vrot.slane %v6240_v17, 1 }
  0xed   : >> { %v1204_v21 = vsel %vm1183_vm3, %v1201_v18, %v1203_v19  ;;  %v554_v18 = vsel %vm464_vm0, %v552_v5, %v553_v6 }
  0xee   : >> { %v1349_v22 = vpack.c.bf16 %v1204_v21, %v1202_v20 }
  0xf0   : >> { %v504_v23 = vpop.f32.mrf.mxu0  ;;  %5556 = vmatmul.msk.bf16.gmra.mxu0 %vm910_vm2, %v1349_v22 }
  0xf1   : >> { %v6254_v26 = vadd.f32 %v6169_v34, %v504_v23 }
  0xf3   : >> { %8056 = vst [vmem:[#allocation15_spill] sm:$0xff] %v6254_v26  ;;  %v1074_v27 = vpack.c.bf16 %v6254_v26, %v6240_v17  ;;  %v1205_v35 = vrot.slane %v6254_v26, 1 }
  0xf5   : >> { %5537 = vmatmul.msk.bf16.gmra.mxu3 %vm910_vm2, %v1074_v27  ;;  %v1206_v41 = vsel %vm1183_vm3, %v1203_v19, %v1205_v35  ;;  %v731_v27 = vrot.slane %v6192_v48, 7 }
  0xf8   : >> { %v507_v30 = vpop.f32.mrf.mxu0 }
  0xf9   : >> { %v6266_v33 = vadd.f32 %v6169_v34, %v507_v30 }
  0xfb   : >> { %8057 = vst [vmem:[#allocation16_spill] sm:$0xff] %v6266_v33  ;;  %v1207_v39 = vrot.slane %v6266_v33, 1 }
  0xfd   : >> { %v1208_v43 = vsel %vm1183_vm3, %v1205_v35, %v1207_v39  ;;  %v558_v35 = vsel %vm464_vm0, %v555_v29, %v557_v28 }
  0xfe   : >> { %v1350_v44 = vpack.c.bf16 %v1208_v43, %v1206_v41 }
 0x100   : >> { %v509_v45 = vpop.f32.mrf.mxu0  ;;  %5557 = vmatmul.msk.bf16.gmra.mxu0 %vm910_vm2, %v1350_v44  ;;  %v735_v44 = vrot.slane %v6206_v58, 7 }
 0x101   : >> { %v6277_v46 = vadd.f32 %v6169_v34, %v509_v45  ;;  %v561_v45 = vrot.slane %v6206_v58, 6 }
 0x103   : >> { %8058 = vst [vmem:[#allocation17_spill] sm:$0xff] %v6277_v46  ;;  %v1075_v47 = vpack.c.bf16 %v6277_v46, %v6266_v33  ;;  %v1209_v53 = vrot.slane %v6277_v46, 1 }
 0x105   : >> { %5538 = vmatmul.msk.bf16.gmra.mxu3 %vm910_vm2, %v1075_v47  ;;  %v1210_v56 = vsel %vm1183_vm3, %v1207_v39, %v1209_v53  ;;  %v556_v39 = vsel %vm464_vm0, %v553_v6, %v555_v29  ;;  %v733_v47 = vrot.slane %v6198_v51, 7  ;;  %v563_v6 = vrot.slane %v6212_v61, 6 }
 0x106   : >> { %v712_v43 = vpack.c.bf16 %v558_v35, %v556_v39  ;;  %v571_v29 = vrot.slane %v6240_v17, 6 }
 0x107   : >> { %v736_v50 = vsel %vm725_vm4, %v733_v47, %v735_v44 }
 0x108   : >> { %v512_v49 = vpop.f32.mrf.mxu0 }
 0x109   : >> { %v6283_v52 = vadd.f32 %v6169_v34, %v512_v49  ;;  %v559_v49 = vrot.slane %v6198_v51, 6 }
 0x10b   : >> { %8059 = vst [vmem:[#allocation18_spill] sm:$0xff] %v6283_v52  ;;  %v1211_v54 = vrot.slane %v6283_v52, 1 }
 0x10d   : >> { %v1212_v57 = vsel %vm1183_vm3, %v1209_v53, %v1211_v54  ;;  %v562_v53 = vsel %vm464_vm0, %v559_v49, %v561_v45 }
 0x10e   : >> { %v1351_v59 = vpack.c.bf16 %v1212_v57, %v1210_v56  ;;  %v560_v56 = vsel %vm464_vm0, %v557_v28, %v559_v49  ;;  %v573_v28 = vrot.slane %v6254_v26, 6  ;;  %v575_v49 = vrot.slane %v6266_v33, 6 }
 0x110   : >> { %v514_v63 = vpop.f32.mrf.mxu0  ;;  %5558 = vmatmul.msk.bf16.gmra.mxu0 %vm910_vm2, %v1351_v59  ;;  %v713_v59 = vpack.c.bf16 %v562_v53, %v560_v56  ;;  %v574_v35 = vsel %vm464_vm0, %v571_v29, %v573_v28  ;;  %v576_v56 = vsel %vm464_vm0, %v573_v28, %v575_v49 }
 0x111   : >> { %v6302_v1 = vadd.f32 %v6169_v34, %v514_v63  ;;  %v5937_v63 = vld [vmem:[%s8008_s3 + $0x40] sm:$0xff] }
 0x112   : >> { %1677 = vmatpush.bf16.msrb.mxu1 %v5937_v63 }
 0x113   : >> { %8061 = vst [vmem:[#allocation20_spill] sm:$0xff] %v6302_v1  ;;  %v1076_v8 = vpack.c.bf16 %v6302_v1, %v6283_v52  ;;  %v723_v9 = vrot.slane %v6302_v1, 7  ;;  %v535_v10 = vrot.slane %v6302_v1, 6  ;;  %v1213_v34 = vrot.slane %v6302_v1, 1 }
 0x115   : >> { %5539 = vmatmul.msk.bf16.gmra.mxu3 %vm910_vm2, %v1076_v8  ;;  %v772_v12 = vsel %vm725_vm4, %v723_v9, %v726_v2  ;;  %v598_v13 = vsel %vm464_vm0, %v535_v10, %v552_v5  ;;  %v1232_v22 = vsel %vm1183_vm3, %v1213_v34, %v1184_v42  ;;  %v1214_v23 = vsel %vm1183_vm3, %v1211_v54, %v1213_v34 }
 0x116   : >> { %v869_v16 = vsel %vm789_vm5, %v772_v12, 0.0  ;;  %v695_v19 = vsel %vm615_vm6, %v598_v13, 0.0  ;;  %v1344_v24 = vsel %vm1280_vm7, %v1232_v22, 0.0  ;;  %v729_v42 = vrot.slane %v6181_v40, 7 }
 0x117   : >> { %v885_v20 = vpack.c.bf16 %v728_v15, %v869_v16  ;;  %v711_v21 = vpack.c.bf16 %v554_v18, %v695_v19  ;;  %v1352_v25 = vpack.c.bf16 %v1344_v24, %v1214_v23  ;;  %v734_v54 = vsel %vm725_vm4, %v731_v27, %v733_v47 }
 0x118   : >> { %v732_v30 = vsel %vm725_vm4, %v729_v42, %v731_v27  ;;  %v887_v57 = vpack.c.bf16 %v736_v50, %v734_v54  ;;  %v739_v2 = vrot.slane %v6220_v4, 7  ;;  %v737_v5 = vrot.slane %v6212_v61, 7 }
 0x119   : >> { %5496 = vmatmul.msk.bf16.vlgmr.msra.gmra.mxu1 %vm910_vm2, %v885_v20  ;;  %5512 = vmatmul.msk.bf16.vlgmr.msra.gmra.mxu2 %vm910_vm2, %v711_v21  ;;  %v564_v13 = vsel %vm464_vm0, %v561_v45, %v563_v6  ;;  %v569_v16 = vrot.slane %v6234_v14, 6  ;;  %v741_v18 = vrot.slane %v6226_v7, 7  ;;  %v567_v19 = vrot.slane %v6226_v7, 6 }
 0x11a   : >> { %2441 = vmatpush.bf16.msra.mxu2 %v5938_v38  ;;  %v730_v38 = vsel %vm725_vm4, %v727_v3, %v729_v42  ;;  %2279 = vmatpush.bf16.msra.mxu1 %v6156_v31  ;;  %v565_v3 = vrot.slane %v6220_v4, 6  ;;  %v740_v8 = vsel %vm725_vm4, %v737_v5, %v739_v2  ;;  %v738_v12 = vsel %vm725_vm4, %v735_v44, %v737_v5 }
 0x11b   : >> { %v886_v41 = vpack.c.bf16 %v732_v30, %v730_v38  ;;  %v888_v15 = vpack.c.bf16 %v740_v8, %v738_v12  ;;  %v570_v21 = vsel %vm464_vm0, %v567_v19, %v569_v16  ;;  %v742_v22 = vsel %vm725_vm4, %v739_v2, %v741_v18 }
 0x11c   : >> { %v566_v34 = vsel %vm464_vm0, %v563_v6, %v565_v3  ;;  %v568_v23 = vsel %vm464_vm0, %v565_v3, %v567_v19  ;;  %v747_v27 = vrot.slane %v6254_v26, 7  ;;  %v745_v42 = vrot.slane %v6240_v17, 7 }
 0x11d   : >> { %v714_v31 = vpack.c.bf16 %v566_v34, %v564_v13  ;;  %v572_v39 = vsel %vm464_vm0, %v569_v16, %v571_v29  ;;  %v751_v44 = vrot.slane %v6277_v46, 7  ;;  %v577_v45 = vrot.slane %v6277_v46, 6 }
 0x11e   : >> { %2442 = vmatpush.bf16.msra.mxu2 %v5937_v63  ;;  %2280 = vmatpush.bf16.msra.mxu1 %v6162_v32  ;;  %v743_v32 = vrot.slane %v6234_v14, 7  ;;  %v748_v30 = vsel %vm725_vm4, %v745_v42, %v747_v27  ;;  %v749_v47 = vrot.slane %v6266_v33, 7  ;;  %v6407_v63 = vadd.s32 4294967295, %v6299_v0 }
 0x11f   : >> { %v578_v53 = vsel %vm464_vm0, %v575_v49, %v577_v45  ;;  %v6410_v2 = vadd.s32 4294967294, %v6299_v0  ;;  %v753_v3 = vrot.slane %v6283_v52, 7  ;;  %v579_v5 = vrot.slane %v6283_v52, 6 }
 0x120   : >> { %5559 = vmatmul.msk.bf16.gmra.mxu0 %vm910_vm2, %v1352_v25  ;;  %v744_v20 = vsel %vm725_vm4, %v741_v18, %v743_v32  ;;  %v715_v25 = vpack.c.bf16 %v570_v21, %v568_v23  ;;  %v746_v38 = vsel %vm725_vm4, %v743_v32, %v745_v42  ;;  %v752_v50 = vsel %vm725_vm4, %v749_v47, %v751_v44 }
 0x121   : >> { %v889_v24 = vpack.c.bf16 %v744_v20, %v742_v22  ;;  %v750_v54 = vsel %vm725_vm4, %v747_v27, %v749_v47  ;;  %v755_v6 = vsel %vm725_vm4, %v753_v3, %v723_v9  ;;  %vm820_vm8 = vcmp.lt.s32.totalorder %v6407_v63, 124 }
 0x122   : >> { %v581_v8 = vsel %vm464_vm0, %v579_v5, %v535_v10  ;;  %vm646_vm9 = vcmp.lt.s32.totalorder %v6410_v2, 124  ;;  %v884_v34 = vsel %vm820_vm8, %v755_v6, 0.0  ;;  %v754_v13 = vsel %vm725_vm4, %v751_v44, %v753_v3 }
 0x123   : >> { %v710_v12 = vsel %vm646_vm9, %v581_v8, 0.0  ;;  %v1463_v10 = vrot.slane %v6181_v40, 2  ;;  %v1461_v32 = vrot.slane %v6175_v37, 2  ;;  %v1460_v16 = vrot.slane %v6172_v36, 2 }
 0x124   : >> { %v1467_v23 = vrot.slane %v6198_v51, 2  ;;  %v1473_v47 = vrot.slane %v6220_v4, 2 }
 0x125   : >> { %v1464_v18 = vsel %vm1459_vm10, %v1461_v32, %v1463_v10  ;;  %v1462_v20 = vsel %vm1459_vm10, %v1460_v16, %v1461_v32 }
 0x126   : >> { %v1621_v21 = vpack.c.bf16 %v1464_v18, %v1462_v20  ;;  %v1487_v20 = vrot.slane %v6283_v52, 2 }
 0x129   : >> { %5497 = vmatmul.msk.bf16.gmra.mxu1 %vm910_vm2, %v886_v41  ;;  %5513 = vmatmul.msk.bf16.gmra.mxu2 %vm910_vm2, %v712_v43  ;;  %v890_v41 = vpack.c.bf16 %v748_v30, %v746_v38  ;;  %v716_v43 = vpack.c.bf16 %v574_v35, %v572_v39  ;;  %v1471_v30 = vrot.slane %v6212_v61, 2  ;;  %v1469_v35 = vrot.slane %v6206_v58, 2 }
 0x12b   : >> { %v1472_v38 = vsel %vm1459_vm10, %v1469_v35, %v1471_v30 }
 0x139   : >> { %5498 = vmatmul.msk.bf16.gmra.mxu1 %vm910_vm2, %v887_v57  ;;  %5514 = vmatmul.msk.bf16.gmra.mxu2 %vm910_vm2, %v713_v59  ;;  %v891_v57 = vpack.c.bf16 %v752_v50, %v750_v54  ;;  %v717_v59 = vpack.c.bf16 %v578_v53, %v576_v56  ;;  %v1474_v53 = vsel %vm1459_vm10, %v1471_v30, %v1473_v47 }
 0x149   : >> { %5499 = vmatmul.msk.bf16.gmra.mxu1 %vm910_vm2, %v888_v15  ;;  %5515 = vmatmul.msk.bf16.gmra.mxu2 %vm910_vm2, %v714_v31  ;;  %v580_v15 = vsel %vm464_vm0, %v577_v45, %v579_v5  ;;  %v892_v31 = vpack.c.bf16 %v884_v34, %v754_v13  ;;  %v1475_v45 = vrot.slane %v6226_v7, 2  ;;  %v1481_v13 = vrot.slane %v6254_v26, 2 }
 0x14a   : >> { %v718_v9 = vpack.c.bf16 %v710_v12, %v580_v15  ;;  %v1483_v12 = vrot.slane %v6266_v33, 2 }
 0x14b   : >> { %v1476_v49 = vsel %vm1459_vm10, %v1473_v47, %v1475_v45 }
 0x14c   : >> { %v1624_v54 = vpack.c.bf16 %v1476_v49, %v1474_v53  ;;  %v1484_v15 = vsel %vm1459_vm10, %v1481_v13, %v1483_v12 }
 0x159   : >> { %5500 = vmatmul.msk.bf16.gmra.mxu1 %vm910_vm2, %v889_v24  ;;  %5516 = vmatmul.msk.bf16.gmra.mxu2 %vm910_vm2, %v715_v25  ;;  %v1465_v24 = vrot.slane %v6192_v48, 2 }
 0x15b   : >> { %v1468_v25 = vsel %vm1459_vm10, %v1465_v24, %v1467_v23  ;;  %v1466_v28 = vsel %vm1459_vm10, %v1463_v10, %v1465_v24 }
 0x15c   : >> { %v1622_v42 = vpack.c.bf16 %v1468_v25, %v1466_v28  ;;  %v1403_v25 = vpop.f32.mrf.mxu0 }
 0x164   : >> { %v1405_v47 = vpop.f32.mrf.mxu0 }
 0x169   : >> { %5501 = vmatmul.msk.bf16.gmra.mxu1 %vm910_vm2, %v890_v41  ;;  %5517 = vmatmul.msk.bf16.gmra.mxu2 %vm910_vm2, %v716_v43  ;;  %v1470_v41 = vsel %vm1459_vm10, %v1467_v23, %v1469_v35  ;;  %v1485_v23 = vrot.slane %v6277_v46, 2 }
 0x16a   : >> { %v1623_v43 = vpack.c.bf16 %v1472_v38, %v1470_v41  ;;  %v1489_v41 = vrot.slane %v6302_v1, 2 }
 0x16b   : >> { %v1488_v24 = vsel %vm1459_vm10, %v1485_v23, %v1487_v20  ;;  %v1486_v30 = vsel %vm1459_vm10, %v1483_v12, %v1485_v23 }
 0x16c   : >> { %v1627_v35 = vpack.c.bf16 %v1488_v24, %v1486_v30  ;;  %v1508_v53 = vsel %vm1459_vm10, %v1489_v41, %v1460_v16 }
 0x179   : >> { %5502 = vmatmul.msk.bf16.gmra.mxu1 %vm910_vm2, %v891_v57  ;;  %5518 = vmatmul.msk.bf16.gmra.mxu2 %vm910_vm2, %v717_v59  ;;  %v1479_v57 = vrot.slane %v6240_v17, 2  ;;  %v1477_v59 = vrot.slane %v6234_v14, 2 }
 0x17b   : >> { %v1480_v3 = vsel %vm1459_vm10, %v1477_v59, %v1479_v57  ;;  %v1478_v6 = vsel %vm1459_vm10, %v1475_v45, %v1477_v59 }
 0x17c   : >> { %v1625_v8 = vpack.c.bf16 %v1480_v3, %v1478_v6  ;;  %v1408_v6 = vpop.f32.mrf.mxu0 }
 0x189   : >> { %5503 = vmatmul.msk.bf16.gmra.mxu1 %vm910_vm2, %v892_v31  ;;  %5519 = vmatmul.msk.bf16.gmra.mxu2 %vm910_vm2, %v718_v9  ;;  %v1482_v9 = vsel %vm1459_vm10, %v1479_v57, %v1481_v13 }
 0x18a   : >> { %v1626_v10 = vpack.c.bf16 %v1484_v15, %v1482_v9  ;;  %v1410_v15 = vpop.f32.mrf.mxu0 }
 0x196   : >> { %v6434_v19 = vpop.f32.mrf.mxu1 }
 0x199   : >> { %5572 = vmatmul.msk.bf16.vlgmr.msrb.gmra.mxu1 %vm910_vm2, %v1621_v21  ;;  %v1127_v21 = vpop.f32.mrf.mxu3 }
 0x19c   : >> { %v1029_v32 = vpop.f32.mrf.mxu2 }
 0x19d   : >> { %v1030_v16 = vadd.f32 %v1029_v32, %v6434_v19 }
 0x19e   : >> { %v6440_v22 = vpop.f32.mrf.mxu1 }
 0x19f   : >> { %v1167_v9 = vadd.f32 %v1127_v21, %v1030_v16 }
 0x1a1   : >> { %v1129_v38 = vpop.f32.mrf.mxu3  ;;  %v1443_v24 = vadd.f32 %v1403_v25, %v1167_v9 }
 0x1a4   : >> { %v1031_v28 = vpop.f32.mrf.mxu2 }
 0x1a6   : >> { %v6445_v27 = vpop.f32.mrf.mxu1 }
 0x1a9   : >> { %5573 = vmatmul.msk.bf16.gmra.mxu1 %vm910_vm2, %v1622_v42  ;;  %v1132_v59 = vpop.f32.mrf.mxu3 }
 0x1ac   : >> { %v1034_v49 = vpop.f32.mrf.mxu2 }
 0x1ae   : >> { %v6449_v29 = vpop.f32.mrf.mxu1 }
 0x1b1   : >> { %v1134_v13 = vpop.f32.mrf.mxu3 }
 0x1b6   : >> { %v6454_v39 = vpop.f32.mrf.mxu1 }
 0x1b9   : >> { %5574 = vmatmul.msk.bf16.gmra.mxu1 %vm910_vm2, %v1623_v43  ;;  %v6496_v43 = vadd.s32 2, %v6299_v0  ;;  %v1137_v30 = vpop.f32.mrf.mxu3 }
 0x1bb   : >> { %vm1556_vm11 = vcmp.lt.s32.totalorder %v6496_v43, 124 }
 0x1bc   : >> { %v1620_v57 = vsel %vm1556_vm11, %v1508_v53, 0.0  ;;  %v6517_v53 = vld [vmem:[%s8009_s4] ss:$0 sm:$0xff] }
 0x1be   : >> { %v6458_v44 = vpop.f32.mrf.mxu1 }
 0x1c6   : >> { %v6463_v50 = vpop.f32.mrf.mxu1 }
 0x1c9   : >> { %5575 = vmatmul.msk.bf16.gmra.mxu1 %vm910_vm2, %v1624_v54  ;;  %v1490_v54 = vsel %vm1459_vm10, %v1487_v20, %v1489_v41  ;;  %v1032_v20 = vadd.f32 %v1031_v28, %v6440_v22 }
 0x1ca   : >> { %v1628_v0 = vpack.c.bf16 %v1620_v57, %v1490_v54  ;;  %v1413_v54 = vpop.f32.mrf.mxu0  ;;  %v1035_v57 = vadd.f32 %v1034_v49, %v6445_v27 }
 0x1cc   : >> { %v1169_v22 = vadd.f32 %v1132_v59, %v1035_v57 }
 0x1ce   : >> { %v6467_v56 = vpop.f32.mrf.mxu1 }
 0x1d6   : >> { %v6472_v5 = vpop.f32.mrf.mxu1 }
 0x1d9   : >> { %5576 = vmatmul.msk.bf16.gmra.mxu1 %vm910_vm2, %v1625_v8  ;;  %v1036_v8 = vpop.f32.mrf.mxu2 }
 0x1de   : >> { %v6476_v34 = vpop.f32.mrf.mxu1 }
 0x1e6   : >> { %v6481_v31 = vpop.f32.mrf.mxu1 }
 0x1e9   : >> { %5577 = vmatmul.msk.bf16.gmra.mxu1 %vm910_vm2, %v1626_v10  ;;  %v1039_v10 = vpop.f32.mrf.mxu2 }
 0x1ee   : >> { %v6485_v18 = vpop.f32.mrf.mxu1 }
 0x1f6   : >> { %v6490_v42 = vpop.f32.mrf.mxu1 }
 0x1f9   : >> { %5578 = vmatmul.msk.bf16.gmra.mxu1 %vm910_vm2, %v1627_v35  ;;  %v1168_v35 = vadd.f32 %v1129_v38, %v1032_v20  ;;  %v1139_v38 = vpop.f32.mrf.mxu3  ;;  %v1037_v20 = vadd.f32 %v1036_v8, %v6449_v29 }
 0x1fb   : >> { %v1444_v32 = vadd.f32 %v1405_v47, %v1168_v35  ;;  %v1170_v29 = vadd.f32 %v1134_v13, %v1037_v20 }
 0x1fe   : >> { %v6498_v45 = vpop.f32.mrf.mxu1 }
 0x206   : >> { %v6507_v3 = vpop.f32.mrf.mxu1 }
 0x209   : >> { %5579 = vmatmul.msk.bf16.gmra.mxu1 %vm910_vm2, %v1628_v0  ;;  %v1041_v0 = vpop.f32.mrf.mxu2 }
 0x20e   : >> { %v6510_v12 = vpop.f32.mrf.mxu1 }
 0x211   : >> { %v1044_v59 = vpop.f32.mrf.mxu2 }
 0x216   : >> { %v1679_v23 = vpop.f32.mrf.mxu1 }
 0x217   : >> { %v1719_v41 = vadd.f32 %v1679_v23, %v1443_v24  ;;  %v1445_v24 = vadd.f32 %v1408_v6, %v1169_v22 }
 0x219   : >> { %v1739_v19 = vadd.f32 %v6517_v53, %v1719_v41  ;;  %v1415_v41 = vpop.f32.mrf.mxu0 }
 0x21b   : >> { %v6521_v28 = vmax.f32 %v1739_v19, 0.0 }
 0x21d   : >> { %v8019_v27 = vrot.slane %v6521_v28, 7  ;;  %v8022_v47 = vrot.slane %v6521_v28, 6  ;;  %v8025_v20 = vrot.slane %v6521_v28, 2 }
 0x21e   : >> { %v1681_v21 = vpop.f32.mrf.mxu1 }
 0x21f   : >> { %v1720_v16 = vadd.f32 %v1681_v21, %v1444_v32 }
 0x221   : >> { %v1740_v25 = vadd.f32 %v6517_v53, %v1720_v16  ;;  %v1040_v16 = vadd.f32 %v1039_v10, %v6454_v39 }
 0x223   : >> { %v1756_v9 = vmax.f32 %v1740_v25, 0.0  ;;  %v1446_v25 = vadd.f32 %v1410_v15, %v1170_v29  ;;  %v1171_v10 = vadd.f32 %v1137_v30, %v1040_v16  ;;  %v1042_v30 = vadd.f32 %v1041_v0, %v6458_v44 }
 0x225   : >> { %v2079_v23 = vpack.c.bf16 %v1756_v9, %v6521_v28  ;;  %v1863_v49 = vrot.slane %v1756_v9, 7  ;;  %v1790_v35 = vrot.slane %v1756_v9, 6  ;;  %v2177_v32 = vrot.slane %v1756_v9, 1 }
 0x226   : >> { %v1684_v55 = vpop.f32.mrf.mxu1  ;;  %v2339_v22 = vrot.slane %v1756_v9, 2  ;;  %v1447_v16 = vadd.f32 %v1413_v54, %v1171_v10  ;;  %v1172_v44 = vadd.f32 %v1139_v38, %v1042_v30 }
 0x227   : >> { %v1721_v57 = vadd.f32 %v1684_v55, %v1445_v24  ;;  %5596 = vmatmul.msk.bf16.vlgmr.msra.gmra.mxu0 %vm910_vm2, %v2079_v23  ;;  %v6532_v19 = vsel %vm725_vm4, %v8019_v27, %v1863_v49  ;;  %v6537_v6 = vsel %vm464_vm0, %v8022_v47, %v1790_v35  ;;  %v8024_v55 = vrot.slane %v6521_v28, 1  ;;  %v1142_v23 = vpop.f32.mrf.mxu3 }
 0x228   : >> { %v6556_v29 = vsel %vm1459_vm10, %v8025_v20, %v2339_v22 }
 0x229   : >> { %v1741_v8 = vadd.f32 %v6517_v53, %v1721_v57  ;;  %v2178_v57 = vsel %vm1183_vm3, %v8024_v55, %v2177_v32  ;;  %v1418_v55 = vpop.f32.mrf.mxu0 }
 0x22b   : >> { %v1757_v21 = vmax.f32 %v1741_v8, 0.0 }
 0x22d   : >> { %v2179_v24 = vrot.slane %v1757_v21, 1  ;;  %v2341_v27 = vrot.slane %v1757_v21, 2  ;;  %v1865_v1 = vrot.slane %v1757_v21, 7  ;;  %v1792_v13 = vrot.slane %v1757_v21, 6 }
 0x22e   : >> { %v1686_v52 = vpop.f32.mrf.mxu1 }
 0x22f   : >> { %v1722_v47 = vadd.f32 %v1686_v52, %v1446_v25  ;;  %v2180_v8 = vsel %vm1183_vm3, %v2177_v32, %v2179_v24  ;;  %v6548_v39 = vsel %vm725_vm4, %v1863_v49, %v1865_v1  ;;  %v6551_v15 = vsel %vm464_vm0, %v1790_v35, %v1792_v13  ;;  %v1046_v52 = vpop.f32.mrf.mxu2  ;;  %v1144_v26 = vpop.f32.mrf.mxu3 }
 0x230   : >> { %v2241_v9 = vpack.c.bf16 %v2180_v8, %v2178_v57  ;;  %v6559_v46 = vsel %vm1459_vm10, %v2339_v22, %v2341_v27 }
 0x231   : >> { %v1742_v32 = vadd.f32 %v6517_v53, %v1722_v47  ;;  %v1420_v10 = vpop.f32.mrf.mxu0 }
 0x232   : >> { %5604 = vmatmul.msk.bf16.vlgmr.msra.gmra.mxu1 %vm910_vm2, %v2241_v9 }
 0x233   : >> { %v1758_v35 = vmax.f32 %v1742_v32, 0.0 }
 0x235   : >> { %v2080_v25 = vpack.c.bf16 %v1758_v35, %v1757_v21  ;;  %v2181_v57 = vrot.slane %v1758_v35, 1  ;;  %v1867_v8 = vrot.slane %v1758_v35, 7  ;;  %v1794_v20 = vrot.slane %v1758_v35, 6 }
 0x236   : >> { %v1689_v33 = vpop.f32.mrf.mxu1  ;;  %v2343_v22 = vrot.slane %v1758_v35, 2  ;;  %v1448_v35 = vadd.f32 %v1415_v41, %v1172_v44 }
 0x237   : >> { %v1723_v17 = vadd.f32 %v1689_v33, %v1447_v16  ;;  %5597 = vmatmul.msk.bf16.gmra.mxu0 %vm910_vm2, %v2080_v25  ;;  %v2182_v47 = vsel %vm1183_vm3, %v2179_v24, %v2181_v57  ;;  %v6569_v49 = vsel %vm725_vm4, %v1865_v1, %v1867_v8  ;;  %v6572_v9 = vsel %vm464_vm0, %v1792_v13, %v1794_v20  ;;  %v1049_v24 = vpop.f32.mrf.mxu2 }
 0x238   : >> { %v6579_v21 = vsel %vm1459_vm10, %v2341_v27, %v2343_v22  ;;  %v1045_v1 = vadd.f32 %v1044_v59, %v6463_v50  ;;  %v1147_v50 = vpop.f32.mrf.mxu3  ;;  %v8073_v2 = vpack.c.bf16 %v6572_v9, %v6551_v15 }
 0x239   : >> { %v1743_v33 = vadd.f32 %v6517_v53, %v1723_v17 }
 0x23a   : >> { %v1173_v17 = vadd.f32 %v1142_v23, %v1045_v1 }
 0x23b   : >> { %v1759_v32 = vmax.f32 %v1743_v33, 0.0 }
 0x23c   : >> { %v1449_v44 = vadd.f32 %v1418_v55, %v1173_v17 }
 0x23d   : >> { %v2183_v13 = vrot.slane %v1759_v32, 1  ;;  %v1869_v16 = vrot.slane %v1759_v32, 7  ;;  %v1796_v38 = vrot.slane %v1759_v32, 6  ;;  %v2345_v30 = vrot.slane %v1759_v32, 2 }
 0x23e   : >> { %v1691_v25 = vpop.f32.mrf.mxu1 }
 0x23f   : >> { %v1724_v54 = vadd.f32 %v1691_v25, %v1448_v35  ;;  %v2184_v14 = vsel %vm1183_vm3, %v2181_v57, %v2183_v13  ;;  %v6585_v0 = vsel %vm725_vm4, %v1867_v8, %v1869_v16  ;;  %v6588_v27 = vsel %vm464_vm0, %v1794_v20, %v1796_v38  ;;  %v1423_v35 = vpop.f32.mrf.mxu0  ;;  %v1051_v20 = vpop.f32.mrf.mxu2 }
 0x240   : >> { %v2242_v7 = vpack.c.bf16 %v2184_v14, %v2182_v47  ;;  %v6591_v33 = vsel %vm1459_vm10, %v2343_v22, %v2345_v30  ;;  %v1047_v8 = vadd.f32 %v1046_v52, %v6467_v56 }
 0x241   : >> { %v1744_v41 = vadd.f32 %v6517_v53, %v1724_v54 }
 0x242   : >> { %5605 = vmatmul.msk.bf16.gmra.mxu1 %vm910_vm2, %v2242_v7  ;;  %v1174_v56 = vadd.f32 %v1144_v26, %v1047_v8 }
 0x243   : >> { %v1760_v57 = vmax.f32 %v1744_v41, 0.0  ;;  %v1149_v41 = vpop.f32.mrf.mxu3 }
 0x245   : >> { %v2081_v25 = vpack.c.bf16 %v1760_v57, %v1759_v32  ;;  %v2185_v23 = vrot.slane %v1760_v57, 1  ;;  %v1871_v14 = vrot.slane %v1760_v57, 7  ;;  %v1798_v47 = vrot.slane %v1760_v57, 6 }
 0x246   : >> { %v1694_v22 = vpop.f32.mrf.mxu1  ;;  %v2347_v1 = vrot.slane %v1760_v57, 2  ;;  %v1450_v57 = vadd.f32 %v1420_v10, %v1174_v56 }
 0x247   : >> { %v1725_v4 = vadd.f32 %v1694_v22, %v1449_v44  ;;  %5598 = vmatmul.msk.bf16.gmra.mxu0 %vm910_vm2, %v2081_v25  ;;  %v2186_v54 = vsel %vm1183_vm3, %v2183_v13, %v2185_v23  ;;  %v6601_v59 = vsel %vm725_vm4, %v1869_v16, %v1871_v14  ;;  %v6604_v7 = vsel %vm464_vm0, %v1796_v38, %v1798_v47  ;;  %v1425_v22 = vpop.f32.mrf.mxu0  ;;  %v1054_v55 = vpop.f32.mrf.mxu2 }
 0x248   : >> { %v6611_v32 = vsel %vm1459_vm10, %v2345_v30, %v2347_v1  ;;  %v1050_v16 = vadd.f32 %v1049_v24, %v6472_v5  ;;  %v8074_v43 = vpack.c.bf16 %v6601_v59, %v6585_v0  ;;  %v8075_v11 = vpack.c.bf16 %v6604_v7, %v6588_v27 }
 0x249   : >> { %8062 = vst [vmem:[#allocation21_spill] sm:$0xff] %v6611_v32  ;;  %v1745_v17 = vadd.f32 %v6517_v53, %v1725_v4  ;;  %v8084_v7 = vpack.c.bf16 %v6559_v46, %v6556_v29 }
 0x24b   : >> { %v1761_v13 = vmax.f32 %v1745_v17, 0.0  ;;  %v1175_v17 = vadd.f32 %v1147_v50, %v1050_v16 }
 0x24d   : >> { %v2187_v44 = vrot.slane %v1761_v13, 1  ;;  %v1873_v38 = vrot.slane %v1761_v13, 7  ;;  %v1800_v25 = vrot.slane %v1761_v13, 6  ;;  %v2349_v26 = vrot.slane %v1761_v13, 2 }
 0x24e   : >> { %v1696_v8 = vpop.f32.mrf.mxu1 }
 0x24f   : >> { %v1726_v61 = vadd.f32 %v1696_v8, %v1450_v57  ;;  %v2188_v52 = vsel %vm1183_vm3, %v2185_v23, %v2187_v44  ;;  %v6617_v30 = vsel %vm725_vm4, %v1871_v14, %v1873_v38  ;;  %v6620_v4 = vsel %vm464_vm0, %v1798_v47, %v1800_v25  ;;  %v1152_v57 = vpop.f32.mrf.mxu3 }
 0x250   : >> { %v2243_v58 = vpack.c.bf16 %v2188_v52, %v2186_v54  ;;  %v6623_v5 = vsel %vm1459_vm10, %v2347_v1, %v2349_v26  ;;  %v1052_v23 = vadd.f32 %v1051_v20, %v6476_v34  ;;  %v1451_v14 = vadd.f32 %v1423_v35, %v1175_v17  ;;  %v1428_v17 = vpop.f32.mrf.mxu0 }
 0x251   : >> { %v1746_v10 = vadd.f32 %v6517_v53, %v1726_v61 }
 0x252   : >> { %5606 = vmatmul.msk.bf16.gmra.mxu1 %vm910_vm2, %v2243_v58  ;;  %v1176_v34 = vadd.f32 %v1149_v41, %v1052_v23 }
 0x253   : >> { %v1762_v56 = vmax.f32 %v1746_v10, 0.0  ;;  %v1056_v10 = vpop.f32.mrf.mxu2 }
 0x255   : >> { %v2082_v8 = vpack.c.bf16 %v1762_v56, %v1761_v13  ;;  %v2189_v47 = vrot.slane %v1762_v56, 1  ;;  %v1875_v51 = vrot.slane %v1762_v56, 7  ;;  %v1802_v50 = vrot.slane %v1762_v56, 6 }
 0x256   : >> { %v1699_v54 = vpop.f32.mrf.mxu1  ;;  %v2351_v52 = vrot.slane %v1762_v56, 2 }
 0x257   : >> { %v1727_v1 = vadd.f32 %v1699_v54, %v1451_v14  ;;  %5599 = vmatmul.msk.bf16.gmra.mxu0 %vm910_vm2, %v2082_v8  ;;  %v2190_v61 = vsel %vm1183_vm3, %v2187_v44, %v2189_v47  ;;  %v6633_v16 = vsel %vm725_vm4, %v1873_v38, %v1875_v51  ;;  %v6636_v58 = vsel %vm464_vm0, %v1800_v25, %v1802_v50  ;;  %v1154_v24 = vpop.f32.mrf.mxu3 }
 0x258   : >> { %v6643_v13 = vsel %vm1459_vm10, %v2349_v26, %v2351_v52  ;;  %v1055_v38 = vadd.f32 %v1054_v55, %v6481_v31  ;;  %v1452_v14 = vadd.f32 %v1425_v22, %v1176_v34  ;;  %v1430_v34 = vpop.f32.mrf.mxu0  ;;  %v8077_v15 = vpack.c.bf16 %v6636_v58, %v6620_v4 }
 0x259   : >> { %8063 = vst [vmem:[#allocation22_spill] sm:$0xff] %v6643_v13  ;;  %v1747_v44 = vadd.f32 %v6517_v53, %v1727_v1 }
 0x25a   : >> { %v1177_v31 = vadd.f32 %v1152_v57, %v1055_v38 }
 0x25b   : >> { %v1763_v56 = vmax.f32 %v1747_v44, 0.0 }
 0x25d   : >> { %v2191_v25 = vrot.slane %v1763_v56, 1  ;;  %v1877_v8 = vrot.slane %v1763_v56, 7  ;;  %v1804_v41 = vrot.slane %v1763_v56, 6  ;;  %v2353_v23 = vrot.slane %v1763_v56, 2 }
 0x25e   : >> { %v1701_v54 = vpop.f32.mrf.mxu1 }
 0x25f   : >> { %v1728_v35 = vadd.f32 %v1701_v54, %v1452_v14  ;;  %v2192_v20 = vsel %vm1183_vm3, %v2189_v47, %v2191_v25  ;;  %v6649_v26 = vsel %vm725_vm4, %v1875_v51, %v1877_v8  ;;  %v6652_v48 = vsel %vm464_vm0, %v1802_v50, %v1804_v41  ;;  %v1059_v47 = vpop.f32.mrf.mxu2 }
 0x260   : >> { %v2244_v1 = vpack.c.bf16 %v2192_v20, %v2190_v61  ;;  %v6655_v44 = vsel %vm1459_vm10, %v2351_v52, %v2353_v23  ;;  %v1057_v51 = vadd.f32 %v1056_v10, %v6485_v18  ;;  %v1453_v54 = vadd.f32 %v1428_v17, %v1177_v31  ;;  %v1157_v10 = vpop.f32.mrf.mxu3  ;;  %v8089_v29 = vld [vmem:[#allocation22_spill] sm:$0xff] }
 0x261   : >> { %8064 = vst [vmem:[#allocation23_spill] sm:$0xff] %v6655_v44  ;;  %v1748_v55 = vadd.f32 %v6517_v53, %v1728_v35 }
 0x262   : >> { %5607 = vmatmul.msk.bf16.gmra.mxu1 %vm910_vm2, %v2244_v1  ;;  %v1178_v38 = vadd.f32 %v1154_v24, %v1057_v51 }
 0x263   : >> { %v1764_v14 = vmax.f32 %v1748_v55, 0.0 }
 0x265   : >> { %v2083_v50 = vpack.c.bf16 %v1764_v14, %v1763_v56  ;;  %v1879_v40 = vrot.slane %v1764_v14, 7  ;;  %v1806_v61 = vrot.slane %v1764_v14, 6  ;;  %v2355_v52 = vrot.slane %v1764_v14, 2 }
 0x266   : >> { %v1704_v20 = vpop.f32.mrf.mxu1  ;;  %v2193_v31 = vrot.slane %v1764_v14, 1 }
 0x267   : >> { %v1729_v37 = vadd.f32 %v1704_v20, %v1453_v54  ;;  %5600 = vmatmul.msk.bf16.gmra.mxu0 %vm910_vm2, %v2083_v50  ;;  %v6664_v57 = vsel %vm725_vm4, %v1877_v8, %v1879_v40  ;;  %v6667_v35 = vsel %vm464_vm0, %v1804_v41, %v1806_v61  ;;  %v6674_v17 = vsel %vm1459_vm10, %v2353_v23, %v2355_v52  ;;  %v1433_v41 = vpop.f32.mrf.mxu0  ;;  %v1061_v50 = vpop.f32.mrf.mxu2 }
 0x268   : >> { %8065 = vst [vmem:[#allocation24_spill] sm:$0xff] %v6674_v17  ;;  %v1060_v8 = vadd.f32 %v1059_v47, %v6490_v42  ;;  %v1454_v54 = vadd.f32 %v1430_v34, %v1178_v38  ;;  %v2194_v18 = vsel %vm1183_vm3, %v2191_v25, %v2193_v31  ;;  %v1159_v25 = vpop.f32.mrf.mxu3  ;;  %v8079_v9 = vpack.c.bf16 %v6667_v35, %v6652_v48  ;;  %v8088_v46 = vld [vmem:[#allocation23_spill] sm:$0xff] }
 0x269   : >> { %v1749_v56 = vadd.f32 %v6517_v53, %v1729_v37 }
 0x26a   : >> { %v1179_v47 = vadd.f32 %v1157_v10, %v1060_v8 }
 0x26b   : >> { %v1765_v55 = vmax.f32 %v1749_v56, 0.0 }
 0x26c   : >> { %v1455_v56 = vadd.f32 %v1433_v41, %v1179_v47 }
 0x26d   : >> { %v2195_v24 = vrot.slane %v1765_v55, 1  ;;  %v1881_v51 = vrot.slane %v1765_v55, 7  ;;  %v1808_v20 = vrot.slane %v1765_v55, 6  ;;  %v2357_v22 = vrot.slane %v1765_v55, 2 }
 0x26e   : >> { %v1706_v1 = vpop.f32.mrf.mxu1 }
 0x26f   : >> { %v1730_v36 = vadd.f32 %v1706_v1, %v1454_v54  ;;  %v2196_v23 = vsel %vm1183_vm3, %v2193_v31, %v2195_v24  ;;  %v6681_v13 = vsel %vm725_vm4, %v1879_v40, %v1881_v51  ;;  %v6684_v37 = vsel %vm464_vm0, %v1806_v61, %v1808_v20  ;;  %v1064_v44 = vpop.f32.mrf.mxu2 }
 0x270   : >> { %v2245_v42 = vpack.c.bf16 %v2196_v23, %v2194_v18  ;;  %v6687_v34 = vsel %vm1459_vm10, %v2355_v52, %v2357_v22  ;;  %v1062_v40 = vadd.f32 %v1061_v50, %v6498_v45  ;;  %v1435_v52 = vpop.f32.mrf.mxu0 }
 0x271   : >> { %8066 = vst [vmem:[#allocation25_spill] sm:$0xff] %v6687_v34  ;;  %v1750_v14 = vadd.f32 %v6517_v53, %v1730_v36 }
 0x272   : >> { %5608 = vmatmul.msk.bf16.gmra.mxu1 %vm910_vm2, %v2245_v42  ;;  %v1180_v42 = vadd.f32 %v1159_v25, %v1062_v40 }
 0x273   : >> { %v1766_v1 = vmax.f32 %v1750_v14, 0.0 }
 0x275   : >> { %v2084_v31 = vpack.c.bf16 %v1766_v1, %v1765_v55  ;;  %v1883_v61 = vrot.slane %v1766_v1, 7  ;;  %v1810_v54 = vrot.slane %v1766_v1, 6  ;;  %v2359_v23 = vrot.slane %v1766_v1, 2 }
 0x276   : >> { %v1709_v18 = vpop.f32.mrf.mxu1  ;;  %v2197_v47 = vrot.slane %v1766_v1, 1 }
 0x277   : >> { %v1731_v10 = vadd.f32 %v1709_v18, %v1455_v56  ;;  %5601 = vmatmul.msk.bf16.gmra.mxu0 %vm910_vm2, %v2084_v31  ;;  %v6696_v36 = vsel %vm725_vm4, %v1881_v51, %v1883_v61  ;;  %v6699_v8 = vsel %vm464_vm0, %v1808_v20, %v1810_v54  ;;  %v6706_v41 = vsel %vm1459_vm10, %v2357_v22, %v2359_v23  ;;  %v1162_v31 = vpop.f32.mrf.mxu3 }
 0x278   : >> { %8067 = vst [vmem:[#allocation26_spill] sm:$0xff] %v6706_v41  ;;  %v1065_v51 = vadd.f32 %v1064_v44, %v6507_v3  ;;  %v1456_v56 = vadd.f32 %v1435_v52, %v1180_v42  ;;  %v2198_v45 = vsel %vm1183_vm3, %v2195_v24, %v2197_v47  ;;  %v1438_v44 = vpop.f32.mrf.mxu0  ;;  %v1066_v42 = vpop.f32.mrf.mxu2  ;;  %v8080_v0 = vpack.c.bf16 %v6696_v36, %v6681_v13 }
 0x279   : >> { %v1751_v50 = vadd.f32 %v6517_v53, %v1731_v10  ;;  %v8081_v27 = vpack.c.bf16 %v6699_v8, %v6684_v37  ;;  %v8090_v36 = vpack.c.bf16 %v8088_v46, %v8089_v29 }
 0x27a   : >> { %v1181_v52 = vadd.f32 %v1162_v31, %v1065_v51 }
 0x27b   : >> { %v1767_v14 = vmax.f32 %v1751_v50, 0.0 }
 0x27d   : >> { %v2199_v20 = vrot.slane %v1767_v14, 1  ;;  %v1885_v18 = vrot.slane %v1767_v14, 7  ;;  %v1812_v25 = vrot.slane %v1767_v14, 6  ;;  %v2361_v40 = vrot.slane %v1767_v14, 2 }
 0x27e   : >> { %v1711_v38 = vpop.f32.mrf.mxu1 }
 0x27f   : >> { %v1732_v17 = vadd.f32 %v1711_v38, %v1456_v56  ;;  %v2200_v55 = vsel %vm1183_vm3, %v2197_v47, %v2199_v20  ;;  %v6713_v22 = vsel %vm725_vm4, %v1883_v61, %v1885_v18  ;;  %v6716_v1 = vsel %vm464_vm0, %v1810_v54, %v1812_v25  ;;  %v1164_v34 = vpop.f32.mrf.mxu3 }
 0x280   : >> { %v2246_v10 = vpack.c.bf16 %v2200_v55, %v2198_v45  ;;  %v6719_v3 = vsel %vm1459_vm10, %v2359_v23, %v2361_v40  ;;  %v1067_v61 = vadd.f32 %v1066_v42, %v6510_v12  ;;  %v1457_v47 = vadd.f32 %v1438_v44, %v1181_v52  ;;  %v1440_v42 = vpop.f32.mrf.mxu0 }
 0x281   : >> { %v1752_v50 = vadd.f32 %v6517_v53, %v1732_v17 }
 0x282   : >> { %5609 = vmatmul.msk.bf16.gmra.mxu1 %vm910_vm2, %v2246_v10  ;;  %v1182_v31 = vadd.f32 %v1164_v34, %v1067_v61 }
 0x283   : >> { %v1768_v38 = vmax.f32 %v1752_v50, 0.0 }
 0x285   : >> { %v2085_v54 = vpack.c.bf16 %v1768_v38, %v1767_v14  ;;  %v1887_v56 = vrot.slane %v1768_v38, 7  ;;  %v1814_v45 = vrot.slane %v1768_v38, 6  ;;  %v2363_v23 = vrot.slane %v1768_v38, 2 }
 0x286   : >> { %v1714_v55 = vpop.f32.mrf.mxu1  ;;  %v2201_v52 = vrot.slane %v1768_v38, 1 }
 0x287   : >> { %v1733_v32 = vadd.f32 %v1714_v55, %v1457_v47  ;;  %5602 = vmatmul.msk.bf16.gmra.mxu0 %vm910_vm2, %v2085_v54  ;;  %v6728_v17 = vsel %vm725_vm4, %v1885_v18, %v1887_v56  ;;  %v6731_v51 = vsel %vm464_vm0, %v1812_v25, %v1814_v45  ;;  %v6738_v10 = vsel %vm1459_vm10, %v2361_v40, %v2363_v23 }
 0x288   : >> { %v1458_v18 = vadd.f32 %v1440_v42, %v1182_v31  ;;  %v2202_v61 = vsel %vm1183_vm3, %v2199_v20, %v2201_v52  ;;  %v8082_v59 = vpack.c.bf16 %v6728_v17, %v6713_v22  ;;  %v8083_v48 = vpack.c.bf16 %v6731_v51, %v6716_v1  ;;  %v8092_v22 = vld [vmem:[#allocation24_spill] sm:$0xff]  ;;  %v8094_v51 = vld [vmem:[#allocation26_spill] sm:$0xff] }
 0x289   : >> { %v1753_v44 = vadd.f32 %v6517_v53, %v1733_v32 }
 0x28b   : >> { %v1769_v50 = vmax.f32 %v1753_v44, 0.0 }
 0x28d   : >> { %v2203_v47 = vrot.slane %v1769_v50, 1  ;;  %v1889_v54 = vrot.slane %v1769_v50, 7  ;;  %v1816_v25 = vrot.slane %v1769_v50, 6  ;;  %v2365_v55 = vrot.slane %v1769_v50, 2 }
 0x28e   : >> { %v1716_v34 = vpop.f32.mrf.mxu1 }
 0x28f   : >> { %v1734_v24 = vadd.f32 %v1716_v34, %v1458_v18  ;;  %v2204_v12 = vsel %vm1183_vm3, %v2201_v52, %v2203_v47  ;;  %v1890_v14 = vsel %vm725_vm4, %v1887_v56, %v1889_v54  ;;  %v1817_v40 = vsel %vm464_vm0, %v1814_v45, %v1816_v25 }
 0x290   : >> { %v2247_v41 = vpack.c.bf16 %v2204_v12, %v2202_v61  ;;  %v6746_v32 = vsel %vm1459_vm10, %v2363_v23, %v2365_v55  ;;  %v8068_v56 = vrot.slane %v6521_v28, 7  ;;  %v8069_v23 = vrot.slane %v6521_v28, 6 }
 0x291   : >> { %v1754_v38 = vadd.f32 %v6517_v53, %v1734_v24 }
 0x292   : >> { %5610 = vmatmul.msk.bf16.gmra.mxu1 %vm910_vm2, %v2247_v41 }
 0x293   : >> { %v1770_v44 = vmax.f32 %v1754_v38, 0.0 }
 0x295   : >> { %v2086_v20 = vpack.c.bf16 %v1770_v44, %v1769_v50  ;;  %v1860_v42 = vrot.slane %v1770_v44, 7  ;;  %v1772_v18 = vrot.slane %v1770_v44, 6  ;;  %v2205_v52 = vrot.slane %v1770_v44, 1 }
 0x296   : >> { %v2367_v34 = vrot.slane %v1770_v44, 2  ;;  %v8070_v44 = vrot.slane %v6521_v28, 1 }
 0x297   : >> { %5603 = vmatmul.msk.bf16.gmra.mxu0 %vm910_vm2, %v2086_v20  ;;  %v1908_v45 = vsel %vm725_vm4, %v1860_v42, %v8068_v56  ;;  %v1835_v24 = vsel %vm464_vm0, %v1772_v18, %v8069_v23  ;;  %v1891_v50 = vsel %vm725_vm4, %v1889_v54, %v1860_v42  ;;  %v1818_v31 = vsel %vm464_vm0, %v1816_v25, %v1772_v18 }
 0x298   : >> { %v1909_v12 = vsel %vm789_vm5, %v1908_v45, 0.0  ;;  %v1836_v41 = vsel %vm615_vm6, %v1835_v24, 0.0  ;;  %v2224_v20 = vsel %vm1183_vm3, %v2205_v52, %v8070_v44  ;;  %v1924_v56 = vsel %vm820_vm8, %v1891_v50, 0.0 }
 0x299   : >> { %v1925_v61 = vpack.c.bf16 %v6532_v19, %v1909_v12  ;;  %v1852_v38 = vpack.c.bf16 %v6537_v6, %v1836_v41  ;;  %v1932_v23 = vpack.c.bf16 %v1924_v56, %v1890_v14  ;;  %v2368_v45 = vsel %vm1459_vm10, %v2365_v55, %v2367_v34 }
 0x29a   : >> { %v8071_v24 = vrot.slane %v6521_v28, 2  ;;  %v1851_v19 = vsel %vm646_vm9, %v1818_v31, 0.0  ;;  %v2206_v25 = vsel %vm1183_vm3, %v2203_v47, %v2205_v52  ;;  %v2240_v55 = vsel %vm1280_vm7, %v2224_v20, 0.0 }
 0x29b   : >> { %5580 = vmatmul.msk.bf16.vlgmr.msrb.gmra.mxu2 %vm910_vm2, %v1925_v61  ;;  %5588 = vmatmul.msk.bf16.vlgmr.msrb.gmra.mxu3 %vm910_vm2, %v1852_v38  ;;  %v1859_v6 = vpack.c.bf16 %v1851_v19, %v1817_v40  ;;  %v2248_v28 = vpack.c.bf16 %v2240_v55, %v2206_v25  ;;  %v8072_v42 = vpack.c.bf16 %v6569_v49, %v6548_v39 }
 0x29c   : >> { %v2386_v54 = vsel %vm1459_vm10, %v2367_v34, %v8071_v24  ;;  %v8076_v39 = vpack.c.bf16 %v6633_v16, %v6617_v30  ;;  %v8078_v49 = vpack.c.bf16 %v6664_v57, %v6649_v26  ;;  %v8085_v16 = vpack.c.bf16 %v6591_v33, %v6579_v21  ;;  %v8086_v26 = vld [vmem:[#allocation21_spill] sm:$0xff] }
 0x29d   : >> { %v2402_v63 = vsel %vm1556_vm11, %v2386_v54, 0.0  ;;  %v8087_v57 = vpack.c.bf16 %v6623_v5, %v8086_v26  ;;  %v8091_v33 = vld [vmem:[#allocation25_spill] sm:$0xff]  ;;  %v8095_v47 = vpack.c.bf16 %v6719_v3, %v8094_v51  ;;  %v8096_v34 = vpack.c.bf16 %v6746_v32, %v6738_v10 }
 0x29e   : >> { %v2410_v14 = vpack.c.bf16 %v2402_v63, %v2368_v45  ;;  %v8093_v1 = vpack.c.bf16 %v8091_v33, %v8092_v22 }
 0x2a2   : >> { %5611 = vmatmul.msk.bf16.gmra.mxu1 %vm910_vm2, %v2248_v28 }
 0x2a4   : >> { %v2120_v52 = vpop.f32.mrf.mxu0 }
 0x2ab   : >> { %5581 = vmatmul.msk.bf16.gmra.mxu2 %vm910_vm2, %v8072_v42  ;;  %5589 = vmatmul.msk.bf16.gmra.mxu3 %vm910_vm2, %v8073_v2 }
 0x2ac   : >> { %v2122_v61 = vpop.f32.mrf.mxu0 }
 0x2af   : >> { %v2282_v12 = vpop.f32.mrf.mxu1 }
 0x2b4   : >> { %v2125_v20 = vpop.f32.mrf.mxu0 }
 0x2b7   : >> { %v2284_v3 = vpop.f32.mrf.mxu1 }
 0x2bb   : >> { %5582 = vmatmul.msk.bf16.gmra.mxu2 %vm910_vm2, %v8074_v43  ;;  %5590 = vmatmul.msk.bf16.gmra.mxu3 %vm910_vm2, %v8075_v11 }
 0x2bc   : >> { %v2127_v32 = vpop.f32.mrf.mxu0 }
 0x2c4   : >> { %v2130_v42 = vpop.f32.mrf.mxu0 }
 0x2cb   : >> { %5583 = vmatmul.msk.bf16.gmra.mxu2 %vm910_vm2, %v8076_v39  ;;  %5591 = vmatmul.msk.bf16.gmra.mxu3 %vm910_vm2, %v8077_v15 }
 0x2db   : >> { %5584 = vmatmul.msk.bf16.gmra.mxu2 %vm910_vm2, %v8078_v49  ;;  %5592 = vmatmul.msk.bf16.gmra.mxu3 %vm910_vm2, %v8079_v9  ;;  %v8097_v9 = vld [vmem:[#allocation4_spill] sm:$0xff] }
 0x2eb   : >> { %5585 = vmatmul.msk.bf16.gmra.mxu2 %vm910_vm2, %v8080_v0  ;;  %5593 = vmatmul.msk.bf16.gmra.mxu3 %vm910_vm2, %v8081_v27 }
 0x2fb   : >> { %5586 = vmatmul.msk.bf16.gmra.mxu2 %vm910_vm2, %v8082_v59  ;;  %5594 = vmatmul.msk.bf16.gmra.mxu3 %vm910_vm2, %v8083_v48 }
 0x30b   : >> { %5587 = vmatmul.msk.bf16.gmra.mxu2 %vm910_vm2, %v1932_v23  ;;  %5595 = vmatmul.msk.bf16.gmra.mxu3 %vm910_vm2, %v1859_v6  ;;  %v2287_v23 = vpop.f32.mrf.mxu1 }
 0x313   : >> { %v2289_v19 = vpop.f32.mrf.mxu1 }
 0x31b   : >> { %5612 = vmatmul.msk.bf16.vlgmr.msra.gmra.mxu2 %vm910_vm2, %v8084_v7  ;;  %v6890_v43 = vpop.f32.mrf.mxu1  ;;  %v6899_v7 = vld [vmem:[%s8008_s3 + $0x18] sm:$0xff] }
 0x31c   : >> { %3041 = vmatpush.bf16.msra.mxu3 %v6899_v7 }
 0x31e   : >> { %v1966_v30 = vpop.f32.mrf.mxu2  ;;  %v2039_v31 = vpop.f32.mrf.mxu3 }
 0x31f   : >> { %v2040_v24 = vadd.f32 %v2039_v31, %v1966_v30  ;;  %v6901_v30 = vpop.f32.mrf.mxu0 }
 0x321   : >> { %v2160_v54 = vadd.f32 %v2120_v52, %v2040_v24 }
 0x323   : >> { %v2322_v25 = vadd.f32 %v2282_v12, %v2160_v54 }
 0x326   : >> { %v1968_v4 = vpop.f32.mrf.mxu2  ;;  %v2041_v41 = vpop.f32.mrf.mxu3 }
 0x327   : >> { %v2042_v6 = vadd.f32 %v2041_v41, %v1968_v4  ;;  %v2135_v54 = vpop.f32.mrf.mxu0 }
 0x329   : >> { %v2161_v2 = vadd.f32 %v2122_v61, %v2042_v6  ;;  %v8099_v61 = vld [vmem:[#allocation6_spill] sm:$0xff] }
 0x32b   : >> { %5613 = vmatmul.msk.bf16.gmra.mxu2 %vm910_vm2, %v8085_v16  ;;  %v2323_v15 = vadd.f32 %v2284_v3, %v2161_v2  ;;  %v8098_v16 = vld [vmem:[#allocation5_spill] sm:$0xff] }
 0x32e   : >> { %v1971_v58 = vpop.f32.mrf.mxu2  ;;  %v2044_v44 = vpop.f32.mrf.mxu3 }
 0x32f   : >> { %v2045_v11 = vadd.f32 %v2044_v44, %v1971_v58 }
 0x331   : >> { %v2162_v59 = vadd.f32 %v2125_v20, %v2045_v11 }
 0x333   : >> { %v2324_v26 = vadd.f32 %v2287_v23, %v2162_v59 }
 0x336   : >> { %v1973_v13 = vpop.f32.mrf.mxu2  ;;  %v2046_v45 = vpop.f32.mrf.mxu3 }
 0x33b   : >> { %5614 = vmatmul.msk.bf16.gmra.mxu2 %vm910_vm2, %v8087_v57  ;;  %v2047_v57 = vadd.f32 %v2046_v45, %v1973_v13 }
 0x33d   : >> { %v2163_v52 = vadd.f32 %v2127_v32, %v2047_v57 }
 0x33e   : >> { %v6848_v35 = vpop.f32.mrf.mxu2  ;;  %v2049_v63 = vpop.f32.mrf.mxu3 }
 0x33f   : >> { %v2050_v44 = vadd.f32 %v2049_v63, %v6848_v35  ;;  %v6931_v35 = vld [vmem:[%s8008_s3 + $0x28] sm:$0xff] }
 0x340   : >> { %3155 = vmatpush.bf16.msrb.mxu0 %v6931_v35 }
 0x346   : >> { %v6850_v37 = vpop.f32.mrf.mxu2  ;;  %v6892_v39 = vpop.f32.mrf.mxu3 }
 0x34b   : >> { %5615 = vmatmul.msk.bf16.gmra.mxu2 %vm910_vm2, %v8090_v36  ;;  %v6907_v36 = vpop.f32.mrf.mxu1 }
 0x34e   : >> { %v6856_v8 = vpop.f32.mrf.mxu2  ;;  %v6909_v22 = vpop.f32.mrf.mxu3 }
 0x356   : >> { %v6858_v21 = vpop.f32.mrf.mxu2 }
 0x35b   : >> { %5616 = vmatmul.msk.bf16.gmra.mxu2 %vm910_vm2, %v8093_v1 }
 0x35e   : >> { %v6864_v5 = vpop.f32.mrf.mxu2 }
 0x366   : >> { %v6866_v17 = vpop.f32.mrf.mxu2 }
 0x36b   : >> { %5617 = vmatmul.msk.bf16.gmra.mxu2 %vm910_vm2, %v8095_v47 }
 0x36e   : >> { %v6872_v40 = vpop.f32.mrf.mxu2 }
 0x376   : >> { %v6874_v18 = vpop.f32.mrf.mxu2 }
 0x37b   : >> { %5618 = vmatmul.msk.bf16.gmra.mxu2 %vm910_vm2, %v8096_v34 }
 0x37e   : >> { %v6880_v50 = vpop.f32.mrf.mxu2 }
 0x386   : >> { %v6882_v38 = vpop.f32.mrf.mxu2 }
 0x38b   : >> { %5619 = vmatmul.msk.bf16.gmra.mxu2 %vm910_vm2, %v2410_v14 }
 0x38e   : >> { %v6885_v56 = vpop.f32.mrf.mxu2 }
 0x396   : >> { %v6887_v10 = vpop.f32.mrf.mxu2 }
 0x39e   : >> { %v2444_v55 = vpop.f32.mrf.mxu2 }
 0x39f   : >> { %v2484_v28 = vadd.f32 %v2444_v55, %v2322_v25  ;;  %v2325_v55 = vadd.f32 %v2289_v19, %v2163_v52  ;;  %v6937_v19 = vpop.f32.mrf.mxu1 }
 0x3a1   : >> { %v2500_v14 = vadd.f32 %v6517_v53, %v2484_v28 }
 0x3a3   : >> { %v2516_v0 = vadd.f32 %v2500_v14, %v8097_v9 }
 0x3a5   : >> { %v6903_v4 = vmax.f32 %v2516_v0, 0.0 }
 0x3a6   : >> { %v2446_v49 = vpop.f32.mrf.mxu2 }
 0x3a7   : >> { %v2485_v27 = vadd.f32 %v2446_v49, %v2323_v15  ;;  %v2564_v1 = vrot.slane %v6903_v4, 1  ;;  %v2629_v34 = vrot.slane %v6903_v4, 2  ;;  %v2695_v20 = vrot.slane %v6903_v4, 3 }
 0x3a8   : >> { %v2761_v6 = vrot.slane %v6903_v4, 4  ;;  %v2164_v15 = vadd.f32 %v2130_v42, %v2050_v44 }
 0x3a9   : >> { %v2501_v48 = vadd.f32 %v6517_v53, %v2485_v27 }
 0x3ab   : >> { %v2517_v58 = vadd.f32 %v2501_v48, %v8098_v16 }
 0x3ad   : >> { %v2533_v46 = vmax.f32 %v2517_v58, 0.0  ;;  %v6942_v58 = vpop.f32.mrf.mxu3 }
 0x3ae   : >> { %v2449_v29 = vpop.f32.mrf.mxu2 }
 0x3af   : >> { %v2486_v33 = vadd.f32 %v2449_v29, %v2324_v26  ;;  %v2565_v51 = vrot.slane %v2533_v46, 1  ;;  %v2630_v47 = vrot.slane %v2533_v46, 2  ;;  %v2696_v12 = vrot.slane %v2533_v46, 3  ;;  %v6949_v29 = vld [vmem:[%s8008_s3 + $0x20] sm:$0xff] }
 0x3b0   : >> { %v2762_v45 = vrot.slane %v2533_v46, 4  ;;  %3156 = vmatpush.bf16.msrb.mxu0 %v6949_v29 }
 0x3b1   : >> { %v2502_v31 = vadd.f32 %v6517_v53, %v2486_v33  ;;  %v2566_v13 = vsel %vm1183_vm3, %v2564_v1, %v2565_v51  ;;  %v2631_v23 = vsel %vm1459_vm10, %v2629_v34, %v2630_v47  ;;  %v2697_v25 = vsel %vm2694_vm12, %v2695_v20, %v2696_v12 }
 0x3b2   : >> { %v2613_v41 = vmax.f32 %v6903_v4, %v2566_v13  ;;  %v2763_v49 = vsel %vm2760_vm13, %v2761_v6, %v2762_v45 }
 0x3b3   : >> { %v2518_v3 = vadd.f32 %v2502_v31, %v8099_v61  ;;  %v6957_v61 = vpop.f32.mrf.mxu0 }
 0x3b4   : >> { %v2678_v24 = vmax.f32 %v2613_v41, %v2631_v23 }
 0x3b5   : >> { %v2534_v32 = vmax.f32 %v2518_v3, 0.0 }
 0x3b6   : >> { %v2451_v28 = vpop.f32.mrf.mxu2  ;;  %v2744_v63 = vmax.f32 %v2678_v24, %v2697_v25 }
 0x3b7   : >> { %v2567_v2 = vrot.slane %v2534_v32, 1  ;;  %v2632_v14 = vrot.slane %v2534_v32, 2  ;;  %v2698_v11 = vrot.slane %v2534_v32, 3  ;;  %v2764_v9 = vrot.slane %v2534_v32, 4 }
 0x3b8   : >> { %v2487_v0 = vadd.f32 %v2451_v28, %v2325_v55  ;;  %v2810_v27 = vmax.f32 %v2744_v63, %v2763_v49  ;;  %v6965_v28 = vpop.f32.mrf.mxu1  ;;  %v8101_v49 = vld [vmem:[#allocation8_spill] sm:$0xff] }
 0x3b9   : >> { %v2568_v59 = vsel %vm1183_vm3, %v2565_v51, %v2567_v2  ;;  %v2633_v48 = vsel %vm1459_vm10, %v2630_v47, %v2632_v14  ;;  %v2699_v16 = vsel %vm2694_vm12, %v2696_v12, %v2698_v11  ;;  %v2765_v26 = vsel %vm2760_vm13, %v2762_v45, %v2764_v9  ;;  %v8100_v51 = vld [vmem:[#allocation7_spill] sm:$0xff] }
 0x3ba   : >> { %v2614_v42 = vmax.f32 %v2533_v46, %v2568_v59  ;;  %v2503_v57 = vadd.f32 %v6517_v53, %v2487_v0  ;;  %2826 = vst.msk [vmem:[#allocation2] sm:$0xff] %vm910_vm2, %v2810_v27  ;;  %v2326_v47 = vadd.f32 %v6890_v43, %v2164_v15  ;;  %v2052_v46 = vadd.f32 %v6892_v39, %v6850_v37  ;;  %v2059_v59 = vpop.f32.mrf.mxu3 }
 0x3bb   : >> { %v2055_v27 = vadd.f32 %v6909_v22, %v6856_v8  ;;  %v5946_v22 = vld [vmem:[%s8008_s3 + $0x38] sm:$0xff] }
 0x3bc   : >> { %v2679_v33 = vmax.f32 %v2614_v42, %v2633_v48  ;;  %v2519_v31 = vadd.f32 %v2503_v57, %v8100_v51  ;;  %v2165_v55 = vadd.f32 %v6901_v30, %v2052_v46  ;;  %3289 = vmatpush.bf16.msrb.mxu1 %v5946_v22 }
 0x3bd   : >> { %v2166_v57 = vadd.f32 %v2135_v54, %v2055_v27 }
 0x3be   : >> { %v2745_v52 = vmax.f32 %v2679_v33, %v2699_v16  ;;  %v2535_v13 = vmax.f32 %v2519_v31, 0.0  ;;  %v2454_v12 = vpop.f32.mrf.mxu2  ;;  %v2327_v16 = vadd.f32 %v6907_v36, %v2165_v55  ;;  %v6981_v36 = vld [vmem:[%s8008_s3 + $0x48] sm:$0xff] }
 0x3bf   : >> { %v2488_v41 = vadd.f32 %v2454_v12, %v2326_v47  ;;  %v2140_v47 = vpop.f32.mrf.mxu0  ;;  %3423 = vmatpush.bf16.msrb.mxu2 %v6981_v36 }
 0x3c0   : >> { %v2811_v3 = vmax.f32 %v2745_v52, %v2765_v26  ;;  %v2569_v44 = vrot.slane %v2535_v13, 1  ;;  %v2634_v23 = vrot.slane %v2535_v13, 2  ;;  %v2700_v45 = vrot.slane %v2535_v13, 3 }
 0x3c1   : >> { %v2766_v24 = vrot.slane %v2535_v13, 4  ;;  %v2504_v25 = vadd.f32 %v6517_v53, %v2488_v41  ;;  %v8102_v41 = vld [vmem:[#allocation9_spill] sm:$0xff] }
 0x3c2   : >> { %2827 = vst.msk [vmem:[#allocation2 + $0x8] sm:$0xff] %vm910_vm2, %v2811_v3  ;;  %v2570_v43 = vsel %vm1183_vm3, %v2567_v2, %v2569_v44  ;;  %v2635_v37 = vsel %vm1459_vm10, %v2632_v14, %v2634_v23  ;;  %v2701_v39 = vsel %vm2694_vm12, %v2698_v11, %v2700_v45 }
 0x3c3   : >> { %v2615_v63 = vmax.f32 %v2534_v32, %v2570_v43  ;;  %v2767_v15 = vsel %vm2760_vm13, %v2764_v9, %v2766_v24  ;;  %v2520_v0 = vadd.f32 %v2504_v25, %v8101_v49 }
 0x3c5   : >> { %v2680_v30 = vmax.f32 %v2615_v63, %v2635_v37  ;;  %v2536_v48 = vmax.f32 %v2520_v0, 0.0 }
 0x3c6   : >> { %v2456_v2 = vpop.f32.mrf.mxu2 }
 0x3c7   : >> { %v2746_v42 = vmax.f32 %v2680_v30, %v2701_v39  ;;  %v2571_v14 = vrot.slane %v2536_v48, 1  ;;  %v2636_v26 = vrot.slane %v2536_v48, 2  ;;  %v2702_v11 = vrot.slane %v2536_v48, 3 }
 0x3c8   : >> { %v2768_v33 = vrot.slane %v2536_v48, 4  ;;  %v2489_v32 = vadd.f32 %v2456_v2, %v2327_v16 }
 0x3c9   : >> { %v2812_v51 = vmax.f32 %v2746_v42, %v2767_v15  ;;  %v2572_v9 = vsel %vm1183_vm3, %v2569_v44, %v2571_v14  ;;  %v2637_v31 = vsel %vm1459_vm10, %v2634_v23, %v2636_v26  ;;  %v2703_v8 = vsel %vm2694_vm12, %v2700_v45, %v2702_v11  ;;  %v2302_v44 = vpop.f32.mrf.mxu1  ;;  %v5945_v45 = vld [vmem:[%s8008_s3 + $0x30] sm:$0xff]  ;;  %v8103_v42 = vld [vmem:[#allocation10_spill] sm:$0xff] }
 0x3ca   : >> { %v2616_v54 = vmax.f32 %v2535_v13, %v2572_v9  ;;  %v2769_v46 = vsel %vm2760_vm13, %v2766_v24, %v2768_v33  ;;  %v2505_v52 = vadd.f32 %v6517_v53, %v2489_v32  ;;  %v2328_v23 = vadd.f32 %v6937_v19, %v2166_v57  ;;  %v6995_v13 = vld [vmem:[%s8008_s3 + $0x40] sm:$0xff]  ;;  %v2061_v24 = vpop.f32.mrf.mxu3  ;;  %3290 = vmatpush.bf16.msrb.mxu1 %v5945_v45  ;;  %v2142_v32 = vpop.f32.mrf.mxu0 }
 0x3cb   : >> { %2828 = vst.msk [vmem:[#allocation2 + $0x10] sm:$0xff] %vm910_vm2, %v2812_v51  ;;  %v2057_v53 = vadd.f32 %v6942_v58, %v6858_v21  ;;  %3424 = vmatpush.bf16.msrb.mxu2 %v6995_v13  ;;  %v7004_v21 = vld [vmem:[%s8009_s4] ss:$0 sm:$0xff]  ;;  %v2060_v51 = vadd.f32 %v2059_v59, %v6864_v5 }
 0x3cc   : >> { %v2681_v12 = vmax.f32 %v2616_v54, %v2637_v31  ;;  %v2521_v3 = vadd.f32 %v2505_v52, %v8102_v41  ;;  %v7020_v41 = vld [vmem:[#allocation2] ss:$2 sm:$0xff] }
 0x3cd   : >> { %v2167_v0 = vadd.f32 %v6957_v61, %v2057_v53  ;;  %v2168_v54 = vadd.f32 %v2140_v47, %v2060_v51 }
 0x3ce   : >> { %v2747_v25 = vmax.f32 %v2681_v12, %v2703_v8  ;;  %v2537_v55 = vmax.f32 %v2521_v3, 0.0  ;;  %v2459_v43 = vpop.f32.mrf.mxu2  ;;  %3660 = vmatpush.bf16.msra.mxu1 %v6931_v35 }
 0x3cf   : >> { %v2490_v37 = vadd.f32 %v2459_v43, %v2328_v23  ;;  %3746 = vmatpush.bf16.msra.mxu2 %v5946_v22  ;;  %v2329_v31 = vadd.f32 %v6965_v28, %v2167_v0 }
 0x3d0   : >> { %v2813_v19 = vmax.f32 %v2747_v25, %v2769_v46  ;;  %v2573_v39 = vrot.slane %v2537_v55, 1  ;;  %v2638_v63 = vrot.slane %v2537_v55, 2  ;;  %v2704_v15 = vrot.slane %v2537_v55, 3  ;;  %v8104_v25 = vld [vmem:[#allocation11_spill] sm:$0xff] }
 0x3d1   : >> { %v2770_v49 = vrot.slane %v2537_v55, 4  ;;  %v2506_v58 = vadd.f32 %v7004_v21, %v2490_v37  ;;  %v2304_v8 = vpop.f32.mrf.mxu1  ;;  %v2062_v37 = vadd.f32 %v2061_v24, %v6866_v17 }
 0x3d2   : >> { %2829 = vst.msk [vmem:[#allocation2 + $0x18] sm:$0xff] %vm910_vm2, %v2813_v19  ;;  %v2574_v27 = vsel %vm1183_vm3, %v2571_v14, %v2573_v39  ;;  %v2639_v30 = vsel %vm1459_vm10, %v2636_v26, %v2638_v63  ;;  %v2705_v16 = vsel %vm2694_vm12, %v2702_v11, %v2704_v15  ;;  %3661 = vmatpush.bf16.msra.mxu1 %v6949_v29 }
 0x3d3   : >> { %v2617_v35 = vmax.f32 %v2536_v48, %v2574_v27  ;;  %v2771_v2 = vsel %vm2760_vm13, %v2768_v33, %v2770_v49  ;;  %v2522_v57 = vadd.f32 %v2506_v58, %v8103_v42  ;;  %3747 = vmatpush.bf16.msra.mxu2 %v5945_v45  ;;  %v2064_v33 = vpop.f32.mrf.mxu3  ;;  %v2330_v19 = vadd.f32 %v2302_v44, %v2168_v54 }
 0x3d5   : >> { %v2682_v61 = vmax.f32 %v2617_v35, %v2639_v30  ;;  %v2538_v9 = vmax.f32 %v2522_v57, 0.0  ;;  %v2169_v35 = vadd.f32 %v2142_v32, %v2062_v37  ;;  %v2065_v57 = vadd.f32 %v2064_v33, %v6872_v40 }
 0x3d6   : >> { %v2461_v14 = vpop.f32.mrf.mxu2  ;;  %v3186_v33 = vrot.slane %v7020_v41, 1 }
 0x3d7   : >> { %v2748_v26 = vmax.f32 %v2682_v61, %v2705_v16  ;;  %v2575_v22 = vrot.slane %v2538_v9, 1  ;;  %v2640_v11 = vrot.slane %v2538_v9, 2  ;;  %v2706_v48 = vrot.slane %v2538_v9, 3 }
 0x3d8   : >> { %v2772_v46 = vrot.slane %v2538_v9, 4  ;;  %v2491_v52 = vadd.f32 %v2461_v14, %v2329_v31  ;;  %v8105_v14 = vld [vmem:[#allocation12_spill] sm:$0xff] }
 0x3d9   : >> { %v2814_v12 = vmax.f32 %v2748_v26, %v2771_v2  ;;  %v2576_v5 = vsel %vm1183_vm3, %v2573_v39, %v2575_v22  ;;  %v2641_v29 = vsel %vm1459_vm10, %v2638_v63, %v2640_v11  ;;  %v2707_v59 = vsel %vm2694_vm12, %v2704_v15, %v2706_v48  ;;  %v7022_v28 = vld [vmem:[#allocation2 + $0x10] ss:$2 sm:$0xff]  ;;  %v2145_v39 = vpop.f32.mrf.mxu0  ;;  %v2307_v16 = vpop.f32.mrf.mxu1 }
 0x3da   : >> { %v2618_v3 = vmax.f32 %v2537_v55, %v2576_v5  ;;  %v2773_v23 = vsel %vm2760_vm13, %v2770_v49, %v2772_v46  ;;  %v2507_v45 = vadd.f32 %v7004_v21, %v2491_v52  ;;  %v3117_v47 = vpack.c.bf16 %v7022_v28, %v7020_v41 }
 0x3db   : >> { %2830 = vst.msk [vmem:[#allocation2 + $0x20] sm:$0xff] %vm910_vm2, %v2814_v12  ;;  %v2066_v51 = vpop.f32.mrf.mxu3  ;;  %v2170_v52 = vadd.f32 %v2145_v39, %v2065_v57  ;;  %v2331_v12 = vadd.f32 %v2304_v8, %v2169_v35 }
 0x3dc   : >> { %v2683_v53 = vmax.f32 %v2618_v3, %v2641_v29  ;;  %v2523_v43 = vadd.f32 %v2507_v45, %v8104_v25  ;;  %5660 = vmatmul.msk.bf16.vlgmr.msrb.gmra.mxu0 %vm910_vm2, %v3117_v47  ;;  %v3321_v3 = vrot.slane %v7022_v28, 2 }
 0x3de   : >> { %v2749_v63 = vmax.f32 %v2683_v53, %v2707_v59  ;;  %v2539_v55 = vmax.f32 %v2523_v43, 0.0  ;;  %v2464_v15 = vpop.f32.mrf.mxu2  ;;  %v3187_v59 = vrot.slane %v7022_v28, 1 }
 0x3df   : >> { %v2492_v49 = vadd.f32 %v2464_v15, %v2330_v19 }
 0x3e0   : >> { %v2815_v58 = vmax.f32 %v2749_v63, %v2773_v23  ;;  %v2577_v0 = vrot.slane %v2539_v55, 1  ;;  %v2642_v27 = vrot.slane %v2539_v55, 2  ;;  %v2708_v30 = vrot.slane %v2539_v55, 3 }
 0x3e1   : >> { %v2774_v2 = vrot.slane %v2539_v55, 4  ;;  %v2508_v42 = vadd.f32 %v7004_v21, %v2492_v49  ;;  %v2309_v39 = vpop.f32.mrf.mxu1  ;;  %v3320_v63 = vrot.slane %v7020_v41, 2  ;;  %v7063_v49 = vld [vmem:[%s8008_s3 + $0x10] sm:$0xff] }
 0x3e2   : >> { %2831 = vst.msk [vmem:[#allocation2 + $0x28] sm:$0xff] %vm910_vm2, %v2815_v58  ;;  %v2578_v17 = vsel %vm1183_vm3, %v2575_v22, %v2577_v0  ;;  %v2643_v44 = vsel %vm1459_vm10, %v2640_v11, %v2642_v27  ;;  %v2709_v24 = vsel %vm2694_vm12, %v2706_v48, %v2708_v30  ;;  %3042 = vmatpush.bf16.msra.mxu3 %v7063_v49 }
 0x3e3   : >> { %v2619_v61 = vmax.f32 %v2538_v9, %v2578_v17  ;;  %v2775_v31 = vsel %vm2760_vm13, %v2772_v46, %v2774_v2  ;;  %v2524_v26 = vadd.f32 %v2508_v42, %v8105_v14  ;;  %v2147_v9 = vpop.f32.mrf.mxu0  ;;  %v2069_v58 = vpop.f32.mrf.mxu3  ;;  %v3322_v57 = vsel %vm1459_vm10, %v3320_v63, %v3321_v3 }
 0x3e5   : >> { %v2684_v32 = vmax.f32 %v2619_v61, %v2643_v44  ;;  %v7040_v54 = vmax.f32 %v2524_v26, 0.0  ;;  %v2067_v44 = vadd.f32 %v2066_v51, %v6874_v18 }
 0x3e6   : >> { %v2466_v40 = vpop.f32.mrf.mxu2 }
 0x3e7   : >> { %v2750_v5 = vmax.f32 %v2684_v32, %v2709_v24  ;;  %v2579_v22 = vrot.slane %v7040_v54, 1  ;;  %v2644_v11 = vrot.slane %v7040_v54, 2  ;;  %v2710_v48 = vrot.slane %v7040_v54, 3 }
 0x3e8   : >> { %v2776_v46 = vrot.slane %v7040_v54, 4  ;;  %v2493_v29 = vadd.f32 %v2466_v40, %v2331_v12 }
 0x3e9   : >> { %v2816_v23 = vmax.f32 %v2750_v5, %v2775_v31  ;;  %v2580_v8 = vsel %vm1183_vm3, %v2577_v0, %v2579_v22  ;;  %v2645_v45 = vsel %vm1459_vm10, %v2642_v27, %v2644_v11  ;;  %v2711_v47 = vsel %vm2694_vm12, %v2708_v30, %v2710_v48  ;;  %v7052_v53 = vld [vmem:[#allocation2 + $0x20] ss:$2 sm:$0xff] }
 0x3ea   : >> { %v2620_v25 = vmax.f32 %v2539_v55, %v2580_v8  ;;  %v2777_v43 = vsel %vm2760_vm13, %v2774_v2, %v2776_v46  ;;  %v2509_v37 = vadd.f32 %v7004_v21, %v2493_v29  ;;  %v3189_v19 = vrot.slane %v7052_v53, 1  ;;  %v8106_v0 = vld [vmem:[#allocation13_spill] sm:$0xff] }
 0x3eb   : >> { %2832 = vst.msk [vmem:[#allocation2 + $0x30] sm:$0xff] %vm910_vm2, %v2816_v23  ;;  %v3323_v15 = vrot.slane %v7052_v53, 2  ;;  %v3188_v30 = vsel %vm1183_vm3, %v3186_v33, %v3187_v59  ;;  %v2332_v2 = vadd.f32 %v2307_v16, %v2170_v52  ;;  %v2150_v40 = vpop.f32.mrf.mxu0  ;;  %v2171_v5 = vadd.f32 %v2147_v9, %v2067_v44 }
 0x3ec   : >> { %v2685_v55 = vmax.f32 %v2620_v25, %v2645_v45  ;;  %v2525_v27 = vadd.f32 %v2509_v37, %v8106_v0  ;;  %v3190_v35 = vsel %vm1183_vm3, %v3187_v59, %v3189_v19  ;;  %v8107_v59 = vld [vmem:[#allocation14_spill] sm:$0xff]  ;;  %v2312_v45 = vpop.f32.mrf.mxu1  ;;  %v2071_v37 = vpop.f32.mrf.mxu3 }
 0x3ed   : >> { %v3251_v42 = vpack.c.bf16 %v3190_v35, %v3188_v30  ;;  %v3324_v17 = vsel %vm1459_vm10, %v3321_v3, %v3323_v15 }
 0x3ee   : >> { %v2751_v24 = vmax.f32 %v2685_v55, %v2711_v47  ;;  %v2541_v61 = vmax.f32 %v2525_v27, 0.0  ;;  %v2469_v31 = vpop.f32.mrf.mxu2  ;;  %v3385_v14 = vpack.c.bf16 %v3324_v17, %v3322_v57  ;;  %v2070_v47 = vadd.f32 %v2069_v58, %v6880_v50 }
 0x3ef   : >> { %v2494_v26 = vadd.f32 %v2469_v31, %v2332_v2  ;;  %5676 = vmatmul.msk.bf16.vlgmr.msrb.gmra.mxu1 %vm910_vm2, %v3251_v42  ;;  %v2333_v55 = vadd.f32 %v2309_v39, %v2171_v5  ;;  %v8108_v31 = vld [vmem:[#allocation15_spill] sm:$0xff] }
 0x3f0   : >> { %v2817_v16 = vmax.f32 %v2751_v24, %v2777_v43  ;;  %v2581_v32 = vrot.slane %v2541_v61, 1  ;;  %v2646_v52 = vrot.slane %v2541_v61, 2  ;;  %5692 = vmatmul.msk.bf16.vlgmr.msrb.gmra.mxu2 %vm910_vm2, %v3385_v14  ;;  %v2712_v51 = vrot.slane %v2541_v61, 3 }
 0x3f1   : >> { %v2510_v12 = vadd.f32 %v7004_v21, %v2494_v26  ;;  %v2778_v8 = vrot.slane %v2541_v61, 4  ;;  %v2172_v2 = vadd.f32 %v2150_v40, %v2070_v47 }
 0x3f2   : >> { %2833 = vst.msk [vmem:[#allocation2 + $0x38] sm:$0xff] %vm910_vm2, %v2817_v16  ;;  %v2582_v18 = vsel %vm1183_vm3, %v2579_v22, %v2581_v32  ;;  %v2647_v23 = vsel %vm1459_vm10, %v2644_v11, %v2646_v52  ;;  %v2713_v9 = vsel %vm2694_vm12, %v2710_v48, %v2712_v51 }
 0x3f3   : >> { %v2621_v29 = vmax.f32 %v7040_v54, %v2582_v18  ;;  %v2526_v3 = vadd.f32 %v2510_v12, %v8107_v59  ;;  %v2779_v54 = vsel %vm2760_vm13, %v2776_v46, %v2778_v8  ;;  %v2152_v46 = vpop.f32.mrf.mxu0  ;;  %v2334_v16 = vadd.f32 %v2312_v45, %v2172_v2 }
 0x3f5   : >> { %v2686_v25 = vmax.f32 %v2621_v29, %v2647_v23  ;;  %v2542_v43 = vmax.f32 %v2526_v3, 0.0  ;;  %v2314_v29 = vpop.f32.mrf.mxu1 }
 0x3f6   : >> { %v2471_v0 = vpop.f32.mrf.mxu2 }
 0x3f7   : >> { %v2752_v27 = vmax.f32 %v2686_v25, %v2713_v9  ;;  %v2583_v22 = vrot.slane %v2542_v43, 1  ;;  %v2648_v30 = vrot.slane %v2542_v43, 2  ;;  %v2495_v35 = vadd.f32 %v2471_v0, %v2333_v55  ;;  %v8109_v9 = vld [vmem:[#allocation16_spill] sm:$0xff] }
 0x3f8   : >> { %v2714_v57 = vrot.slane %v2542_v43, 3  ;;  %v2780_v44 = vrot.slane %v2542_v43, 4 }
 0x3f9   : >> { %v2818_v42 = vmax.f32 %v2752_v27, %v2779_v54  ;;  %v2584_v11 = vsel %vm1183_vm3, %v2581_v32, %v2583_v22  ;;  %v7092_v17 = vld [vmem:[#allocation2 + $0x30] ss:$2 sm:$0xff]  ;;  %v2511_v58 = vadd.f32 %v7004_v21, %v2495_v35  ;;  %v2649_v39 = vsel %vm1459_vm10, %v2646_v52, %v2648_v30  ;;  %v2074_v52 = vpop.f32.mrf.mxu3 }
 0x3fa   : >> { %v2622_v50 = vmax.f32 %v2541_v61, %v2584_v11  ;;  %v3118_v48 = vpack.c.bf16 %v7092_v17, %v7052_v53  ;;  %v2715_v26 = vsel %vm2694_vm12, %v2712_v51, %v2714_v57  ;;  %v2072_v61 = vadd.f32 %v2071_v37, %v6882_v38 }
 0x3fb   : >> { %2834 = vst.msk [vmem:[#allocation2 + $0x40] sm:$0xff] %vm910_vm2, %v2818_v42  ;;  %v2527_v14 = vadd.f32 %v2511_v58, %v8108_v31  ;;  %v2781_v5 = vsel %vm2760_vm13, %v2778_v8, %v2780_v44  ;;  %v2075_v38 = vadd.f32 %v2074_v52, %v6885_v56  ;;  %v2155_v35 = vpop.f32.mrf.mxu0  ;;  %v8110_v52 = vld [vmem:[#allocation17_spill] sm:$0xff] }
 0x3fc   : >> { %v2687_v24 = vmax.f32 %v2622_v50, %v2649_v39  ;;  %5661 = vmatmul.msk.bf16.gmra.mxu0 %vm910_vm2, %v3118_v48  ;;  %v2173_v25 = vadd.f32 %v2152_v46, %v2072_v61 }
 0x3fd   : >> { %v2543_v12 = vmax.f32 %v2527_v14, 0.0  ;;  %v2174_v50 = vadd.f32 %v2155_v35, %v2075_v38  ;;  %v2317_v14 = vpop.f32.mrf.mxu1 }
 0x3fe   : >> { %v2753_v32 = vmax.f32 %v2687_v24, %v2715_v26  ;;  %v2474_v40 = vpop.f32.mrf.mxu2  ;;  %v2335_v42 = vadd.f32 %v2314_v29, %v2173_v25 }
 0x3ff   : >> { %v2496_v18 = vadd.f32 %v2474_v40, %v2334_v16  ;;  %v2585_v3 = vrot.slane %v2543_v12, 1  ;;  %v2650_v23 = vrot.slane %v2543_v12, 2  ;;  %v2716_v45 = vrot.slane %v2543_v12, 3 }
 0x400   : >> { %v2819_v59 = vmax.f32 %v2753_v32, %v2781_v5  ;;  %v2782_v0 = vrot.slane %v2543_v12, 4  ;;  %v2336_v5 = vadd.f32 %v2317_v14, %v2174_v50 }
 0x401   : >> { %v2512_v47 = vadd.f32 %v7004_v21, %v2496_v18  ;;  %v2586_v51 = vsel %vm1183_vm3, %v2583_v22, %v2585_v3  ;;  %v2651_v8 = vsel %vm1459_vm10, %v2648_v30, %v2650_v23  ;;  %v2717_v2 = vsel %vm2694_vm12, %v2714_v57, %v2716_v45  ;;  %v2076_v32 = vpop.f32.mrf.mxu3 }
 0x402   : >> { %2835 = vst.msk [vmem:[#allocation2 + $0x48] sm:$0xff] %vm910_vm2, %v2819_v59  ;;  %v2623_v37 = vmax.f32 %v2542_v43, %v2586_v51  ;;  %v2783_v43 = vsel %vm2760_vm13, %v2780_v44, %v2782_v0  ;;  %v3191_v30 = vrot.slane %v7092_v17, 1  ;;  %v3325_v57 = vrot.slane %v7092_v17, 2 }
 0x403   : >> { %v2528_v55 = vadd.f32 %v2512_v47, %v8109_v9  ;;  %v2077_v38 = vadd.f32 %v2076_v32, %v6887_v10 }
 0x404   : >> { %v2688_v27 = vmax.f32 %v2623_v37, %v2651_v8 }
 0x405   : >> { %v7110_v54 = vmax.f32 %v2528_v55, 0.0 }
 0x406   : >> { %v2476_v11 = vpop.f32.mrf.mxu2  ;;  %v2754_v58 = vmax.f32 %v2688_v27, %v2717_v2 }
 0x407   : >> { %v2587_v22 = vrot.slane %v7110_v54, 1  ;;  %v2652_v56 = vrot.slane %v7110_v54, 2  ;;  %v2497_v48 = vadd.f32 %v2476_v11, %v2335_v42  ;;  %v2718_v24 = vrot.slane %v7110_v54, 3 }
 0x408   : >> { %v2820_v39 = vmax.f32 %v2754_v58, %v2783_v43  ;;  %v2784_v40 = vrot.slane %v7110_v54, 4 }
 0x409   : >> { %v2588_v46 = vsel %vm1183_vm3, %v2585_v3, %v2587_v22  ;;  %v7119_v31 = vld [vmem:[#allocation2 + $0x40] ss:$2 sm:$0xff]  ;;  %v2513_v16 = vadd.f32 %v7004_v21, %v2497_v48  ;;  %v2653_v44 = vsel %vm1459_vm10, %v2650_v23, %v2652_v56  ;;  %v2719_v47 = vsel %vm2694_vm12, %v2716_v45, %v2718_v24 }
 0x40a   : >> { %v2624_v26 = vmax.f32 %v2543_v12, %v2588_v46  ;;  %v3193_v61 = vrot.slane %v7119_v31, 1  ;;  %2836 = vst.msk [vmem:[#allocation2 + $0x50] sm:$0xff] %vm910_vm2, %v2820_v39  ;;  %v3327_v18 = vrot.slane %v7119_v31, 2  ;;  %v3192_v12 = vsel %vm1183_vm3, %v3189_v19, %v3191_v30  ;;  %v2319_v39 = vpop.f32.mrf.mxu1 }
 0x40b   : >> { %v2529_v59 = vadd.f32 %v2513_v16, %v8110_v52  ;;  %v3326_v23 = vsel %vm1459_vm10, %v3323_v15, %v3325_v57  ;;  %v2785_v8 = vsel %vm2760_vm13, %v2782_v0, %v2784_v40  ;;  %v2157_v15 = vpop.f32.mrf.mxu0  ;;  %v8111_v0 = vld [vmem:[#allocation18_spill] sm:$0xff] }
 0x40c   : >> { %v2689_v29 = vmax.f32 %v2624_v26, %v2653_v44  ;;  %v3194_v3 = vsel %vm1183_vm3, %v3191_v30, %v3193_v61  ;;  %v3328_v51 = vsel %vm1459_vm10, %v3325_v57, %v3327_v18  ;;  %v2175_v11 = vadd.f32 %v2157_v15, %v2077_v38 }
 0x40d   : >> { %v3252_v25 = vpack.c.bf16 %v3194_v3, %v3192_v12  ;;  %v2545_v9 = vmax.f32 %v2529_v59, 0.0  ;;  %v3386_v55 = vpack.c.bf16 %v3328_v51, %v3326_v23  ;;  %v8112_v51 = vld [vmem:[#allocation20_spill] sm:$0xff] }
 0x40e   : >> { %v2755_v37 = vmax.f32 %v2689_v29, %v2719_v47  ;;  %v2479_v19 = vpop.f32.mrf.mxu2  ;;  %v2337_v26 = vadd.f32 %v2319_v39, %v2175_v11  ;;  %v5940_v47 = vld [vmem:[%s8008_s3 + $0x8] sm:$0xff] }
 0x40f   : >> { %v2498_v27 = vadd.f32 %v2479_v19, %v2336_v5  ;;  %5677 = vmatmul.msk.bf16.gmra.mxu1 %vm910_vm2, %v3252_v25  ;;  %v2589_v35 = vrot.slane %v2545_v9, 1  ;;  %v2654_v2 = vrot.slane %v2545_v9, 2  ;;  %5693 = vmatmul.msk.bf16.gmra.mxu2 %vm910_vm2, %v3386_v55  ;;  %v2720_v50 = vrot.slane %v2545_v9, 3 }
 0x410   : >> { %v2821_v45 = vmax.f32 %v2755_v37, %v2785_v8  ;;  %v2786_v30 = vrot.slane %v2545_v9, 4  ;;  %3094 = vmatpush.bf16.msrb.mxu3 %v5940_v47  ;;  %3615 = vmatpush.bf16.msra.mxu0 %v5940_v47 }
 0x411   : >> { %v2514_v42 = vadd.f32 %v7004_v21, %v2498_v27  ;;  %v2590_v10 = vsel %vm1183_vm3, %v2587_v22, %v2589_v35  ;;  %v2655_v48 = vsel %vm1459_vm10, %v2652_v56, %v2654_v2  ;;  %v2721_v14 = vsel %vm2694_vm12, %v2718_v24, %v2720_v50 }
 0x412   : >> { %2837 = vst.msk [vmem:[#allocation2 + $0x58] sm:$0xff] %vm910_vm2, %v2821_v45  ;;  %v2625_v58 = vmax.f32 %v7110_v54, %v2590_v10  ;;  %v2787_v22 = vsel %vm2760_vm13, %v2784_v40, %v2786_v30 }
 0x413   : >> { %v2530_v43 = vadd.f32 %v2514_v42, %v8111_v0 }
 0x414   : >> { %v2690_v46 = vmax.f32 %v2625_v58, %v2655_v48 }
 0x415   : >> { %v2546_v57 = vmax.f32 %v2530_v43, 0.0 }
 0x416   : >> { %v2481_v16 = vpop.f32.mrf.mxu2  ;;  %v2756_v32 = vmax.f32 %v2690_v46, %v2721_v14 }
 0x417   : >> { %v2591_v44 = vrot.slane %v2546_v57, 1  ;;  %v2656_v5 = vrot.slane %v2546_v57, 2  ;;  %v2499_v29 = vadd.f32 %v2481_v16, %v2337_v26  ;;  %v2722_v59 = vrot.slane %v2546_v57, 3 }
 0x418   : >> { %v2822_v52 = vmax.f32 %v2756_v32, %v2787_v22  ;;  %v2788_v25 = vrot.slane %v2546_v57, 4 }
 0x419   : >> { %v2592_v54 = vsel %vm1183_vm3, %v2589_v35, %v2591_v44  ;;  %v7155_v12 = vld [vmem:[#allocation2 + $0x50] ss:$2 sm:$0xff]  ;;  %v2515_v3 = vadd.f32 %v7004_v21, %v2499_v29  ;;  %v2657_v40 = vsel %vm1459_vm10, %v2654_v2, %v2656_v5  ;;  %v2723_v21 = vsel %vm2694_vm12, %v2720_v50, %v2722_v59 }
 0x41a   : >> { %v2626_v56 = vmax.f32 %v2545_v9, %v2592_v54  ;;  %v3119_v24 = vpack.c.bf16 %v7155_v12, %v7119_v31  ;;  %2838 = vst.msk [vmem:[#allocation2 + $0x60] sm:$0xff] %vm910_vm2, %v2822_v52  ;;  %v2789_v19 = vsel %vm2760_vm13, %v2786_v30, %v2788_v25  ;;  %v8113_v52 = vld [vmem:[#allocation19_spill] sm:$0xff] }
 0x41b   : >> { %v2531_v38 = vadd.f32 %v2515_v3, %v8112_v51  ;;  %v7203_v54 = vadd.s32 56, %v8113_v52 }
 0x41c   : >> { %v2691_v23 = vmax.f32 %v2626_v56, %v2657_v40  ;;  %5662 = vmatmul.msk.bf16.gmra.mxu0 %vm910_vm2, %v3119_v24 }
 0x41d   : >> { %v2547_v9 = vmax.f32 %v2531_v38, 0.0  ;;  %v7215_v3 = vadd.s32 2, %v7203_v54 }
 0x41e   : >> { %v2757_v37 = vmax.f32 %v2691_v23, %v2723_v21 }
 0x41f   : >> { %v2593_v8 = vrot.slane %v2547_v9, 1  ;;  %v2658_v27 = vrot.slane %v2547_v9, 2  ;;  %v2724_v2 = vrot.slane %v2547_v9, 3  ;;  %v2790_v50 = vrot.slane %v2547_v9, 4 }
 0x420   : >> { %v2823_v55 = vmax.f32 %v2757_v37, %v2789_v19  ;;  %vm3352_vm15 = vcmp.lt.s32.totalorder %v7215_v3, 60 }
 0x421   : >> { %v2594_v45 = vsel %vm1183_vm3, %v2591_v44, %v2593_v8  ;;  %v2612_v35 = vsel %vm1183_vm3, %v2593_v8, %v2564_v1  ;;  %v2659_v11 = vsel %vm1459_vm10, %v2656_v5, %v2658_v27  ;;  %v2677_v10 = vsel %vm1459_vm10, %v2658_v27, %v2629_v34 }
 0x422   : >> { %2839 = vst.msk [vmem:[#allocation2 + $0x68] sm:$0xff] %vm910_vm2, %v2823_v55  ;;  %v2627_v15 = vmax.f32 %v2546_v57, %v2594_v45  ;;  %v2628_v42 = vmax.f32 %v2547_v9, %v2612_v35  ;;  %v2725_v43 = vsel %vm2694_vm12, %v2722_v59, %v2724_v2  ;;  %v2743_v48 = vsel %vm2694_vm12, %v2724_v2, %v2695_v20 }
 0x423   : >> { %v2791_v39 = vsel %vm2760_vm13, %v2788_v25, %v2790_v50  ;;  %v2809_v46 = vsel %vm2760_vm13, %v2790_v50, %v2761_v6  ;;  %v3195_v57 = vrot.slane %v7155_v12, 1  ;;  %v3329_v34 = vrot.slane %v7155_v12, 2 }
 0x424   : >> { %v2692_v58 = vmax.f32 %v2627_v15, %v2659_v11  ;;  %v2693_v0 = vmax.f32 %v2628_v42, %v2677_v10  ;;  %v2941_v59 = vrot.slane %v7022_v28, 7  ;;  %v2945_v35 = vrot.slane %v7092_v17, 7 }
 0x425   : >> { %v3196_v4 = vsel %vm1183_vm3, %v3193_v61, %v3195_v57  ;;  %v3330_v44 = vsel %vm1459_vm10, %v3327_v18, %v3329_v34  ;;  %v7209_v61 = vadd.s32 1, %v7203_v54  ;;  %v2940_v18 = vrot.slane %v7020_v41, 7 }
 0x426   : >> { %v2758_v30 = vmax.f32 %v2692_v58, %v2725_v43  ;;  %v2759_v1 = vmax.f32 %v2693_v0, %v2743_v48  ;;  %v2943_v2 = vrot.slane %v7052_v53, 7  ;;  %v2949_v10 = vrot.slane %v7155_v12, 7 }
 0x427   : >> { %v2942_v23 = vsel %vm725_vm4, %v2940_v18, %v2941_v59  ;;  %vm3218_vm14 = vcmp.lt.s32.totalorder %v7209_v61, 60 }
 0x428   : >> { %v2824_v14 = vmax.f32 %v2758_v30, %v2791_v39  ;;  %v2825_v26 = vmax.f32 %v2759_v1, %v2809_v46  ;;  %v2946_v15 = vsel %vm725_vm4, %v2943_v2, %v2945_v35  ;;  %v2944_v42 = vsel %vm725_vm4, %v2941_v59, %v2943_v2 }
 0x429   : >> { %v7188_v16 = vld [vmem:[#allocation2 + $0x60] ss:$2 sm:$0xff]  ;;  %v3004_v11 = vpack.c.bf16 %v2946_v15, %v2944_v42 }
 0x42a   : >> { %v3197_v32 = vrot.slane %v7188_v16, 1  ;;  %v3331_v20 = vrot.slane %v7188_v16, 2  ;;  %2840 = vst.msk [vmem:[#allocation2 + $0x70] sm:$0xff] %vm910_vm2, %v2824_v14  ;;  %v2951_v43 = vrot.slane %v7188_v16, 7  ;;  %v2868_v14 = vrot.slane %v7022_v28, 6 }
 0x42b   : >> { %2841 = vst.msk [vmem:[#allocation2 + $0x78] sm:$0xff] %vm910_vm2, %v2825_v26 }
 0x42c   : >> { %v3198_v6 = vsel %vm1183_vm3, %v3195_v57, %v3197_v32  ;;  %v3332_v5 = vsel %vm1459_vm10, %v3329_v34, %v3331_v20  ;;  %v2952_v1 = vsel %vm725_vm4, %v2949_v10, %v2951_v43  ;;  %v2867_v57 = vrot.slane %v7020_v41, 6 }
 0x42d   : >> { %v3253_v22 = vpack.c.bf16 %v3198_v6, %v3196_v4  ;;  %v3387_v29 = vpack.c.bf16 %v3332_v5, %v3330_v44  ;;  %v2872_v4 = vrot.slane %v7092_v17, 6  ;;  %v2870_v41 = vrot.slane %v7052_v53, 6 }
 0x42e   : >> { %v2876_v5 = vrot.slane %v7155_v12, 6  ;;  %v7290_v53 = vadd.s32 4294967294, %v7203_v54  ;;  %v2878_v17 = vrot.slane %v7188_v16, 6 }
 0x42f   : >> { %5678 = vmatmul.msk.bf16.gmra.mxu1 %vm910_vm2, %v3253_v22  ;;  %5694 = vmatmul.msk.bf16.gmra.mxu2 %vm910_vm2, %v3387_v29  ;;  %v2873_v6 = vsel %vm464_vm0, %v2870_v41, %v2872_v4  ;;  %v2871_v28 = vsel %vm464_vm0, %v2868_v14, %v2870_v41  ;;  %v2874_v22 = vrot.slane %v7119_v31, 6 }
 0x430   : >> { %v2931_v44 = vpack.c.bf16 %v2873_v6, %v2871_v28  ;;  %vm2897_vm7 = vcmp.lt.s32.totalorder %v7290_v53, 60 }
 0x431   : >> { %v2877_v29 = vsel %vm464_vm0, %v2874_v22, %v2876_v5 }
 0x432   : >> { %v7211_v56 = vld [vmem:[#allocation2 + $0x70] ss:$2 sm:$0xff] }
 0x433   : >> { %v3120_v24 = vpack.c.bf16 %v7211_v56, %v7188_v16  ;;  %v2938_v47 = vrot.slane %v7211_v56, 7  ;;  %v3199_v40 = vrot.slane %v7211_v56, 1  ;;  %v3333_v25 = vrot.slane %v7211_v56, 2 }
 0x434   : >> { %v2858_v46 = vrot.slane %v7211_v56, 6 }
 0x435   : >> { %5663 = vmatmul.msk.bf16.gmra.mxu0 %vm910_vm2, %v3120_v24  ;;  %v2962_v51 = vsel %vm725_vm4, %v2938_v47, %v2940_v18  ;;  %v3210_v21 = vsel %vm1183_vm3, %v3199_v40, %v3186_v33  ;;  %v3344_v37 = vsel %vm1459_vm10, %v3333_v25, %v3320_v63  ;;  %v3200_v19 = vsel %vm1183_vm3, %v3197_v32, %v3199_v40  ;;  %v5939_v33 = vld [vmem:[%s8008_s3] sm:$0xff] }
 0x436   : >> { %v2995_v38 = vsel %vm789_vm5, %v2962_v51, 0.0  ;;  %v3250_v55 = vsel %vm3218_vm14, %v3210_v21, 0.0  ;;  %v3334_v8 = vsel %vm1459_vm10, %v3331_v20, %v3333_v25  ;;  %v3384_v27 = vsel %vm3352_vm15, %v3344_v37, 0.0  ;;  %3095 = vmatpush.bf16.msrb.mxu3 %v5939_v33  ;;  %3616 = vmatpush.bf16.msra.mxu0 %v5939_v33 }
 0x437   : >> { %v3003_v9 = vpack.c.bf16 %v2942_v23, %v2995_v38  ;;  %v3254_v63 = vpack.c.bf16 %v3250_v55, %v3200_v19  ;;  %v3388_v45 = vpack.c.bf16 %v3384_v27, %v3334_v8  ;;  %v2953_v48 = vsel %vm725_vm4, %v2951_v43, %v2938_v47 }
 0x438   : >> { %v2889_v34 = vsel %vm464_vm0, %v2858_v46, %v2867_v57  ;;  %v2869_v32 = vsel %vm464_vm0, %v2867_v57, %v2868_v14  ;;  %v2880_v59 = vsel %vm464_vm0, %v2878_v17, %v2858_v46  ;;  %v2879_v24 = vsel %vm464_vm0, %v2876_v5, %v2878_v17 }
 0x439   : >> { %5632 = vmatmul.msk.bf16.vlgmr.msra.gmra.mxu3 %vm910_vm2, %v3003_v9  ;;  %v2922_v26 = vsel %vm615_vm6, %v2889_v34, 0.0  ;;  %v2929_v18 = vsel %vm2897_vm7, %v2880_v59, 0.0 }
 0x43a   : >> { %3574 = vmatpush.bf16.msra.mxu3 %v6899_v7  ;;  %v2947_v7 = vrot.slane %v7119_v31, 7  ;;  %v2930_v20 = vpack.c.bf16 %v2869_v32, %v2922_v26  ;;  %v2933_v47 = vpack.c.bf16 %v2929_v18, %v2879_v24 }
 0x43c   : >> { %v2950_v50 = vsel %vm725_vm4, %v2947_v7, %v2949_v10  ;;  %v2948_v58 = vsel %vm725_vm4, %v2945_v35, %v2947_v7  ;;  %v7308_v10 = vld [vmem:[%s8009_s4] ss:$0 sm:$0xff] }
 0x43d   : >> { %v3005_v0 = vpack.c.bf16 %v2950_v50, %v2948_v58 }
 0x43e   : >> { %3575 = vmatpush.bf16.msra.mxu3 %v7063_v49  ;;  %v7260_v49 = vadd.s32 4294967295, %v7203_v54 }
 0x43f   : >> { %5679 = vmatmul.msk.bf16.gmra.mxu1 %vm910_vm2, %v3254_v63  ;;  %5695 = vmatmul.msk.bf16.gmra.mxu2 %vm910_vm2, %v3388_v45 }
 0x440   : >> { %vm2970_vm1 = vcmp.lt.s32.totalorder %v7260_v49, 60 }
 0x441   : >> { %v3002_v30 = vsel %vm2970_vm1, %v2953_v48, 0.0 }
 0x442   : >> { %v3006_v39 = vpack.c.bf16 %v3002_v30, %v2952_v1 }
 0x449   : >> { %5633 = vmatmul.msk.bf16.gmra.mxu3 %vm910_vm2, %v3004_v11 }
 0x459   : >> { %5634 = vmatmul.msk.bf16.gmra.mxu3 %vm910_vm2, %v3005_v0  ;;  %v3158_v9 = vpop.f32.mrf.mxu0 }
 0x461   : >> { %v3160_v33 = vpop.f32.mrf.mxu0 }
 0x469   : >> { %5635 = vmatmul.msk.bf16.gmra.mxu3 %vm910_vm2, %v3006_v39 }
 0x46c   : >> { %v3292_v19 = vpop.f32.mrf.mxu1 }
 0x473   : >> { %v3426_v55 = vpop.f32.mrf.mxu2 }
 0x474   : >> { %v3294_v45 = vpop.f32.mrf.mxu1 }
 0x479   : >> { %5644 = vmatmul.msk.bf16.vlgmr.msrb.gmra.mxu3 %vm910_vm2, %v2930_v20  ;;  %v3163_v7 = vpop.f32.mrf.mxu0 }
 0x47a   : >> { %3832 = vmatpush.bf16.msrb.mxu3 %v6981_v36  ;;  %v2875_v36 = vsel %vm464_vm0, %v2872_v4, %v2874_v22 }
 0x47b   : >> { %v3428_v35 = vpop.f32.mrf.mxu2 }
 0x47e   : >> { %3833 = vmatpush.bf16.msrb.mxu3 %v6995_v13  ;;  %v2932_v13 = vpack.c.bf16 %v2877_v29, %v2875_v36 }
 0x481   : >> { %v3165_v26 = vpop.f32.mrf.mxu0 }
 0x489   : >> { %5645 = vmatmul.msk.bf16.gmra.mxu3 %vm910_vm2, %v2931_v44 }
 0x48c   : >> { %v3297_v58 = vpop.f32.mrf.mxu1 }
 0x492   : >> { %v3431_v0 = vpop.f32.mrf.mxu2 }
 0x494   : >> { %v3299_v20 = vpop.f32.mrf.mxu1 }
 0x499   : >> { %5646 = vmatmul.msk.bf16.gmra.mxu3 %vm910_vm2, %v2932_v13  ;;  %v3168_v18 = vpop.f32.mrf.mxu0 }
 0x49a   : >> { %v3433_v44 = vpop.f32.mrf.mxu2 }
 0x4a9   : >> { %5647 = vmatmul.msk.bf16.gmra.mxu3 %vm910_vm2, %v2933_v47 }
 0x4bc   : >> { %v3044_v40 = vpop.f32.mrf.mxu3 }
 0x4c4   : >> { %v3046_v25 = vpop.f32.mrf.mxu3 }
 0x4cc   : >> { %v3049_v23 = vpop.f32.mrf.mxu3 }
 0x4d4   : >> { %v3051_v51 = vpop.f32.mrf.mxu3 }
 0x4dc   : >> { %v3054_v54 = vpop.f32.mrf.mxu3 }
 0x4e4   : >> { %v7299_v38 = vpop.f32.mrf.mxu3 }
 0x4ec   : >> { %v7301_v21 = vpop.f32.mrf.mxu3 }
 0x4f4   : >> { %v7303_v37 = vpop.f32.mrf.mxu3 }
 0x4fc   : >> { %v3097_v8 = vpop.f32.mrf.mxu3 }
 0x4fd   : >> { %v3098_v27 = vadd.f32 %v3097_v8, %v3044_v40  ;;  %v3436_v8 = vpop.f32.mrf.mxu2 }
 0x4ff   : >> { %v3178_v63 = vadd.f32 %v3158_v9, %v3098_v27 }
 0x501   : >> { %v3312_v2 = vadd.f32 %v3292_v19, %v3178_v63 }
 0x503   : >> { %v3446_v11 = vadd.f32 %v3426_v55, %v3312_v2 }
 0x504   : >> { %v3099_v15 = vpop.f32.mrf.mxu3 }
 0x505   : >> { %v3100_v42 = vadd.f32 %v3099_v15, %v3046_v25  ;;  %v3458_v43 = vadd.f32 %v7308_v10, %v3446_v11 }
 0x507   : >> { %v3179_v50 = vadd.f32 %v3160_v33, %v3100_v42  ;;  %v7311_v46 = vmax.f32 %v3458_v43, 0.0 }
 0x509   : >> { %v3313_v48 = vadd.f32 %v3294_v45, %v3179_v50  ;;  %v3777_v4 = vrot.slane %v7311_v46, 2  ;;  %v3691_v24 = vrot.slane %v7311_v46, 1  ;;  %v3170_v50 = vpop.f32.mrf.mxu0 }
 0x50b   : >> { %v3447_v30 = vadd.f32 %v3428_v35, %v3313_v48 }
 0x50c   : >> { %v3102_v1 = vpop.f32.mrf.mxu3 }
 0x50d   : >> { %v3103_v39 = vadd.f32 %v3102_v1, %v3049_v23  ;;  %v3459_v57 = vadd.f32 %v7308_v10, %v3447_v30  ;;  %v3302_v23 = vpop.f32.mrf.mxu1  ;;  %v3438_v1 = vpop.f32.mrf.mxu2 }
 0x50f   : >> { %v3180_v34 = vadd.f32 %v3163_v7, %v3103_v39  ;;  %v7314_v14 = vmax.f32 %v3459_v57, 0.0 }
 0x511   : >> { %v3314_v32 = vadd.f32 %v3297_v58, %v3180_v34  ;;  %v3778_v41 = vrot.slane %v7314_v14, 2  ;;  %v3638_v28 = vpack.c.bf16 %v7314_v14, %v7311_v46  ;;  %v3692_v13 = vrot.slane %v7314_v14, 1 }
 0x513   : >> { %v3448_v6 = vadd.f32 %v3431_v0, %v3314_v32  ;;  %v7323_v22 = vsel %vm1459_vm10, %v3777_v4, %v3778_v41  ;;  %5704 = vmatmul.msk.bf16.vlgmr.msra.gmra.mxu1 %vm910_vm2, %v3638_v28  ;;  %v3693_v19 = vsel %vm1183_vm3, %v3691_v24, %v3692_v13 }
 0x514   : >> { %v3104_v5 = vpop.f32.mrf.mxu3 }
 0x515   : >> { %v3460_v29 = vadd.f32 %v7308_v10, %v3448_v6  ;;  %v3105_v36 = vadd.f32 %v3104_v5, %v3051_v51  ;;  %v3304_v0 = vpop.f32.mrf.mxu1 }
 0x517   : >> { %v7328_v17 = vmax.f32 %v3460_v29, 0.0  ;;  %v3181_v59 = vadd.f32 %v3165_v26, %v3105_v36 }
 0x519   : >> { %v3694_v47 = vrot.slane %v7328_v17, 1  ;;  %v3780_v40 = vrot.slane %v7328_v17, 2  ;;  %v3315_v25 = vadd.f32 %v3299_v20, %v3181_v59 }
 0x51b   : >> { %v3449_v9 = vadd.f32 %v3433_v44, %v3315_v25  ;;  %v3695_v51 = vsel %vm1183_vm3, %v3692_v13, %v3694_v47  ;;  %v7338_v55 = vsel %vm1459_vm10, %v3778_v41, %v3780_v40  ;;  %v3173_v44 = vpop.f32.mrf.mxu0  ;;  %v3441_v25 = vpop.f32.mrf.mxu2 }
 0x51c   : >> { %v3107_v27 = vpop.f32.mrf.mxu3  ;;  %v3724_v33 = vpack.c.bf16 %v3695_v51, %v3693_v19  ;;  %v3810_v63 = vpack.c.bf16 %v7338_v55, %v7323_v22 }
 0x51d   : >> { %v3461_v45 = vadd.f32 %v7308_v10, %v3449_v9  ;;  %v3108_v35 = vadd.f32 %v3107_v27, %v3054_v54 }
 0x51e   : >> { %5708 = vmatmul.msk.bf16.vlgmr.msra.gmra.mxu2 %vm910_vm2, %v3724_v33 }
 0x51f   : >> { %v7344_v2 = vmax.f32 %v3461_v45, 0.0  ;;  %v3182_v15 = vadd.f32 %v3168_v18, %v3108_v35  ;;  %v3307_v18 = vpop.f32.mrf.mxu1 }
 0x521   : >> { %v3316_v42 = vadd.f32 %v3302_v23, %v3182_v15  ;;  %v3639_v11 = vpack.c.bf16 %v7344_v2, %v7328_v17  ;;  %v3782_v7 = vrot.slane %v7344_v2, 2  ;;  %v3696_v34 = vrot.slane %v7344_v2, 1 }
 0x523   : >> { %v3450_v58 = vadd.f32 %v3436_v8, %v3316_v42  ;;  %v7350_v48 = vsel %vm1459_vm10, %v3780_v40, %v3782_v7  ;;  %5705 = vmatmul.msk.bf16.gmra.mxu1 %vm910_vm2, %v3639_v11  ;;  %v3697_v6 = vsel %vm1183_vm3, %v3694_v47, %v3696_v34  ;;  %v3175_v45 = vpop.f32.mrf.mxu0 }
 0x524   : >> { %v3109_v43 = vpop.f32.mrf.mxu3 }
 0x525   : >> { %v3462_v54 = vadd.f32 %v7308_v10, %v3450_v58  ;;  %v3110_v30 = vadd.f32 %v3109_v43, %v7299_v38  ;;  %v3443_v58 = vpop.f32.mrf.mxu2 }
 0x527   : >> { %v7355_v39 = vmax.f32 %v3462_v54, 0.0  ;;  %v3183_v57 = vadd.f32 %v3170_v50, %v3110_v30  ;;  %v3309_v11 = vpop.f32.mrf.mxu1 }
 0x529   : >> { %v3317_v26 = vadd.f32 %v3304_v0, %v3183_v57  ;;  %v3698_v32 = vrot.slane %v7355_v39, 1  ;;  %v3784_v20 = vrot.slane %v7355_v39, 2 }
 0x52b   : >> { %v3451_v41 = vadd.f32 %v3438_v1, %v3317_v26  ;;  %v3699_v28 = vsel %vm1183_vm3, %v3696_v34, %v3698_v32  ;;  %v7363_v38 = vsel %vm1459_vm10, %v3782_v7, %v3784_v20  ;;  %v3522_v26 = vrot.slane %v7314_v14, 7 }
 0x52c   : >> { %v3112_v5 = vpop.f32.mrf.mxu3  ;;  %v3725_v29 = vpack.c.bf16 %v3699_v28, %v3697_v6  ;;  %v3811_v59 = vpack.c.bf16 %v7363_v38, %v7350_v48  ;;  %v3485_v6 = vrot.slane %v7314_v14, 6 }
 0x52d   : >> { %v3463_v36 = vadd.f32 %v7308_v10, %v3451_v41  ;;  %v3113_v13 = vadd.f32 %v3112_v5, %v7301_v21  ;;  %v3484_v41 = vrot.slane %v7311_v46, 6 }
 0x52e   : >> { %5709 = vmatmul.msk.bf16.gmra.mxu2 %vm910_vm2, %v3725_v29 }
 0x52f   : >> { %v7370_v40 = vmax.f32 %v3463_v36, 0.0  ;;  %v3184_v47 = vadd.f32 %v3173_v44, %v3113_v13 }
 0x531   : >> { %v3318_v23 = vadd.f32 %v3307_v18, %v3184_v47  ;;  %v3640_v9 = vpack.c.bf16 %v7370_v40, %v7355_v39  ;;  %v3786_v19 = vrot.slane %v7370_v40, 2  ;;  %v3700_v42 = vrot.slane %v7370_v40, 1 }
 0x533   : >> { %v3452_v51 = vadd.f32 %v3441_v25, %v3318_v23  ;;  %v7376_v21 = vsel %vm1459_vm10, %v3784_v20, %v3786_v19  ;;  %5706 = vmatmul.msk.bf16.gmra.mxu1 %vm910_vm2, %v3640_v9  ;;  %v3701_v54 = vsel %vm1183_vm3, %v3698_v32, %v3700_v42  ;;  %v3521_v32 = vrot.slane %v7311_v46, 7 }
 0x534   : >> { %v3114_v8 = vpop.f32.mrf.mxu3  ;;  %v3486_v9 = vsel %vm464_vm0, %v3484_v41, %v3485_v6  ;;  %v3487_v46 = vrot.slane %v7328_v17, 6 }
 0x535   : >> { %v3464_v27 = vadd.f32 %v7308_v10, %v3452_v51  ;;  %v3115_v33 = vadd.f32 %v3114_v8, %v7303_v37  ;;  %v3523_v36 = vsel %vm725_vm4, %v3521_v32, %v3522_v26 }
 0x536   : >> { %v3488_v3 = vsel %vm464_vm0, %v3485_v6, %v3487_v46 }
 0x537   : >> { %v7381_v35 = vmax.f32 %v3464_v27, 0.0  ;;  %v3185_v15 = vadd.f32 %v3175_v45, %v3115_v33 }
 0x539   : >> { %v3319_v7 = vadd.f32 %v3309_v11, %v3185_v15  ;;  %v3702_v50 = vrot.slane %v7381_v35, 1  ;;  %v3788_v0 = vrot.slane %v7381_v35, 2  ;;  %v3489_v11 = vrot.slane %v7344_v2, 6 }
 0x53a   : >> { %v3495_v6 = vrot.slane %v7381_v35, 6 }
 0x53b   : >> { %v3453_v43 = vadd.f32 %v3443_v58, %v3319_v7  ;;  %v3703_v30 = vsel %vm1183_vm3, %v3700_v42, %v3702_v50  ;;  %v7389_v37 = vsel %vm1459_vm10, %v3786_v19, %v3788_v0  ;;  %v3526_v42 = vrot.slane %v7344_v2, 7 }
 0x53c   : >> { %v3726_v1 = vpack.c.bf16 %v3703_v30, %v3701_v54  ;;  %v3812_v34 = vpack.c.bf16 %v7389_v37, %v7376_v21  ;;  %v3524_v7 = vrot.slane %v7328_v17, 7  ;;  %v3530_v2 = vrot.slane %v7370_v40, 7 }
 0x53d   : >> { %v3465_v57 = vadd.f32 %v7308_v10, %v3453_v43  ;;  %v3493_v54 = vrot.slane %v7370_v40, 6  ;;  %v3528_v17 = vrot.slane %v7355_v39, 7  ;;  %v3491_v30 = vrot.slane %v7355_v39, 6 }
 0x53e   : >> { %5710 = vmatmul.msk.bf16.gmra.mxu2 %vm910_vm2, %v3726_v1  ;;  %v3525_v58 = vsel %vm725_vm4, %v3522_v26, %v3524_v7  ;;  %v3532_v40 = vrot.slane %v7381_v35, 7 }
 0x53f   : >> { %v3473_v20 = vmax.f32 %v3465_v57, 0.0  ;;  %v3531_v1 = vsel %vm725_vm4, %v3528_v17, %v3530_v2  ;;  %v3494_v57 = vsel %vm464_vm0, %v3491_v30, %v3493_v54  ;;  %v3529_v26 = vsel %vm725_vm4, %v3526_v42, %v3528_v17 }
 0x541   : >> { %v3475_v28 = vrot.slane %v3473_v20, 6  ;;  %v3519_v44 = vrot.slane %v3473_v20, 7  ;;  %v3641_v5 = vpack.c.bf16 %v3473_v20, %v7381_v35  ;;  %v3704_v29 = vrot.slane %v3473_v20, 1 }
 0x542   : >> { %v3790_v13 = vrot.slane %v3473_v20, 2  ;;  %v3492_v20 = vsel %vm464_vm0, %v3489_v11, %v3491_v30 }
 0x543   : >> { %v3543_v18 = vsel %vm725_vm4, %v3519_v44, %v3521_v32  ;;  %v3506_v47 = vsel %vm464_vm0, %v3475_v28, %v3484_v41  ;;  %v3705_v25 = vsel %vm1183_vm3, %v3702_v50, %v3704_v29  ;;  %v3715_v23 = vsel %vm1183_vm3, %v3704_v29, %v3691_v24  ;;  %5707 = vmatmul.msk.bf16.gmra.mxu1 %vm910_vm2, %v3641_v5 }
 0x544   : >> { %v3544_v14 = vsel %vm789_vm5, %v3543_v18, 0.0  ;;  %v3507_v19 = vsel %vm615_vm6, %v3506_v47, 0.0  ;;  %v3723_v51 = vsel %vm3218_vm14, %v3715_v23, 0.0  ;;  %v3791_v45 = vsel %vm1459_vm10, %v3788_v0, %v3790_v13 }
 0x545   : >> { %v3552_v8 = vpack.c.bf16 %v3523_v36, %v3544_v14  ;;  %v3515_v27 = vpack.c.bf16 %v3486_v9, %v3507_v19  ;;  %v3727_v33 = vpack.c.bf16 %v3723_v51, %v3705_v25  ;;  %v3801_v24 = vsel %vm1459_vm10, %v3790_v13, %v3777_v4 }
 0x546   : >> { %v3809_v15 = vsel %vm3352_vm15, %v3801_v24, 0.0  ;;  %v3527_v4 = vsel %vm725_vm4, %v3524_v7, %v3526_v42  ;;  %v3490_v50 = vsel %vm464_vm0, %v3487_v46, %v3489_v11  ;;  %v3554_v41 = vpack.c.bf16 %v3531_v1, %v3529_v26  ;;  %v6003_v46 = vld [vmem:[#allocation2] ss:$2 sm:$0xff] }
 0x547   : >> { %5696 = vmatmul.msk.bf16.vlgmr.msra.gmra.mxu3 %vm910_vm2, %v3552_v8  ;;  %5700 = vmatmul.msk.bf16.vlgmr.msra.gmra.mxu0 %vm910_vm2, %v3515_v27  ;;  %v3813_v61 = vpack.c.bf16 %v3809_v15, %v3791_v45  ;;  %v3553_v0 = vpack.c.bf16 %v3527_v4, %v3525_v58  ;;  %v3516_v43 = vpack.c.bf16 %v3490_v50, %v3488_v3 }
 0x548   : >> { %v3517_v32 = vpack.c.bf16 %v3494_v57, %v3492_v20  ;;  %v3534_v39 = vsel %vm725_vm4, %v3532_v40, %v3519_v44  ;;  %v3497_v5 = vsel %vm464_vm0, %v3495_v6, %v3475_v28  ;;  %v3533_v13 = vsel %vm725_vm4, %v3530_v2, %v3532_v40 }
 0x549   : >> { %v3551_v29 = vsel %vm2970_vm1, %v3534_v39, 0.0  ;;  %v3514_v36 = vsel %vm2897_vm7, %v3497_v5, 0.0  ;;  %v3496_v18 = vsel %vm464_vm0, %v3493_v54, %v3495_v6  ;;  %v6004_v54 = vld [vmem:[#allocation2 + $0x10] ss:$2 sm:$0xff] }
 0x54a   : >> { %v3555_v47 = vpack.c.bf16 %v3551_v29, %v3533_v13  ;;  %v3518_v25 = vpack.c.bf16 %v3514_v36, %v3496_v18 }
 0x54e   : >> { %5711 = vmatmul.msk.bf16.gmra.mxu2 %vm910_vm2, %v3727_v33 }
 0x557   : >> { %5697 = vmatmul.msk.bf16.gmra.mxu3 %vm910_vm2, %v3553_v0  ;;  %5701 = vmatmul.msk.bf16.gmra.mxu0 %vm910_vm2, %v3516_v43  ;;  %v7480_v43 = vld [vmem:[%s8008_s3 + $0x18] sm:$0xff] }
 0x558   : >> { %4145 = vmatpush.bf16.msrb.mxu0 %v7480_v43 }
 0x567   : >> { %5698 = vmatmul.msk.bf16.gmra.mxu3 %vm910_vm2, %v3554_v41  ;;  %5702 = vmatmul.msk.bf16.gmra.mxu0 %vm910_vm2, %v3517_v32 }
 0x577   : >> { %5699 = vmatmul.msk.bf16.gmra.mxu3 %vm910_vm2, %v3555_v47  ;;  %5703 = vmatmul.msk.bf16.gmra.mxu0 %vm910_vm2, %v3518_v25 }
 0x587   : >> { %5712 = vmatmul.msk.bf16.vlgmr.msrb.gmra.mxu3 %vm910_vm2, %v3810_v63 }
 0x590   : >> { %v3663_v63 = vpop.f32.mrf.mxu1 }
 0x597   : >> { %5713 = vmatmul.msk.bf16.gmra.mxu3 %vm910_vm2, %v3811_v59 }
 0x598   : >> { %v3665_v59 = vpop.f32.mrf.mxu1 }
 0x5a0   : >> { %v3668_v27 = vpop.f32.mrf.mxu1 }
 0x5a1   : >> { %v3749_v48 = vpop.f32.mrf.mxu2 }
 0x5a7   : >> { %5714 = vmatmul.msk.bf16.gmra.mxu3 %vm910_vm2, %v3812_v34 }
 0x5a8   : >> { %v3670_v58 = vpop.f32.mrf.mxu1 }
 0x5a9   : >> { %v3751_v37 = vpop.f32.mrf.mxu2 }
 0x5b0   : >> { %v3673_v47 = vpop.f32.mrf.mxu1 }
 0x5b1   : >> { %v3754_v24 = vpop.f32.mrf.mxu2 }
 0x5b7   : >> { %5715 = vmatmul.msk.bf16.gmra.mxu3 %vm910_vm2, %v3813_v61 }
 0x5b9   : >> { %v3756_v30 = vpop.f32.mrf.mxu2 }
 0x5c4   : >> { %v3618_v55 = vpop.f32.mrf.mxu0 }
 0x5ca   : >> { %v3577_v49 = vpop.f32.mrf.mxu3 }
 0x5cb   : >> { %v3619_v14 = vadd.f32 %v3618_v55, %v3577_v49  ;;  %v6005_v49 = vld [vmem:[#allocation2 + $0x20] ss:$2 sm:$0xff] }
 0x5cc   : >> { %v3620_v38 = vpop.f32.mrf.mxu0 }
 0x5cd   : >> { %v3683_v34 = vadd.f32 %v3663_v63, %v3619_v14 }
 0x5cf   : >> { %v3769_v51 = vadd.f32 %v3749_v48, %v3683_v34 }
 0x5d2   : >> { %v3579_v53 = vpop.f32.mrf.mxu3 }
 0x5d3   : >> { %v3621_v19 = vadd.f32 %v3620_v38, %v3579_v53 }
 0x5d4   : >> { %v3623_v9 = vpop.f32.mrf.mxu0 }
 0x5d5   : >> { %v3684_v45 = vadd.f32 %v3665_v59, %v3621_v19  ;;  %v3759_v19 = vpop.f32.mrf.mxu2 }
 0x5d7   : >> { %v3770_v11 = vadd.f32 %v3751_v37, %v3684_v45 }
 0x5da   : >> { %v3582_v35 = vpop.f32.mrf.mxu3 }
 0x5db   : >> { %v3624_v61 = vadd.f32 %v3623_v9, %v3582_v35  ;;  %v7505_v9 = vld [vmem:[%s8008_s3 + $0x28] sm:$0xff] }
 0x5dc   : >> { %v3625_v42 = vpop.f32.mrf.mxu0  ;;  %4225 = vmatpush.bf16.msrb.mxu2 %v7505_v9 }
 0x5dd   : >> { %v3685_v3 = vadd.f32 %v3668_v27, %v3624_v61 }
 0x5df   : >> { %v3771_v1 = vadd.f32 %v3754_v24, %v3685_v3  ;;  %v6006_v3 = vld [vmem:[#allocation2 + $0x30] ss:$2 sm:$0xff] }
 0x5e2   : >> { %v3584_v28 = vpop.f32.mrf.mxu3 }
 0x5e3   : >> { %v3626_v57 = vadd.f32 %v3625_v42, %v3584_v28 }
 0x5e4   : >> { %v3628_v41 = vpop.f32.mrf.mxu0 }
 0x5e5   : >> { %v3686_v29 = vadd.f32 %v3670_v58, %v3626_v57 }
 0x5e7   : >> { %v3772_v37 = vadd.f32 %v3756_v30, %v3686_v29  ;;  %v3761_v29 = vpop.f32.mrf.mxu2 }
 0x5ea   : >> { %v3587_v44 = vpop.f32.mrf.mxu3 }
 0x5eb   : >> { %v3629_v63 = vadd.f32 %v3628_v41, %v3587_v44 }
 0x5ec   : >> { %v3630_v24 = vpop.f32.mrf.mxu0 }
 0x5ed   : >> { %v3687_v45 = vadd.f32 %v3673_v47, %v3629_v63 }
 0x5ef   : >> { %v3773_v30 = vadd.f32 %v3759_v19, %v3687_v45 }
 0x5f2   : >> { %v7469_v22 = vpop.f32.mrf.mxu3 }
 0x5fa   : >> { %v7471_v23 = vpop.f32.mrf.mxu3 }
 0x602   : >> { %v7473_v21 = vpop.f32.mrf.mxu3 }
 0x60a   : >> { %v3835_v8 = vpop.f32.mrf.mxu3 }
 0x60b   : >> { %v3855_v33 = vadd.f32 %v3835_v8, %v3769_v51 }
 0x60d   : >> { %v3863_v15 = vadd.f32 %v7308_v10, %v3855_v33 }
 0x60f   : >> { %v3871_v4 = vadd.f32 %v6003_v46, %v3863_v15  ;;  %v7519_v46 = vld [vmem:[%s8008_s3 + $0x20] sm:$0xff] }
 0x610   : >> { %4226 = vmatpush.bf16.msrb.mxu2 %v7519_v46 }
 0x611   : >> { %v7482_v2 = vmax.f32 %v3871_v4, 0.0 }
 0x612   : >> { %v3837_v7 = vpop.f32.mrf.mxu3 }
 0x613   : >> { %v3856_v50 = vadd.f32 %v3837_v7, %v3770_v11  ;;  %v3895_v40 = vrot.slane %v7482_v2, 1  ;;  %v3928_v36 = vrot.slane %v7482_v2, 2  ;;  %v3961_v35 = vrot.slane %v7482_v2, 3 }
 0x614   : >> { %v3994_v59 = vrot.slane %v7482_v2, 4 }
 0x615   : >> { %v3864_v0 = vadd.f32 %v7308_v10, %v3856_v50 }
 0x617   : >> { %v3872_v17 = vadd.f32 %v6004_v54, %v3864_v0  ;;  %v3675_v54 = vpop.f32.mrf.mxu1 }
 0x619   : >> { %v3880_v26 = vmax.f32 %v3872_v17, 0.0 }
 0x61a   : >> { %v3840_v20 = vpop.f32.mrf.mxu3 }
 0x61b   : >> { %v3857_v32 = vadd.f32 %v3840_v20, %v3771_v1  ;;  %v3896_v6 = vrot.slane %v3880_v26, 1  ;;  %v3929_v39 = vrot.slane %v3880_v26, 2  ;;  %v3962_v18 = vrot.slane %v3880_v26, 3 }
 0x61c   : >> { %v3995_v55 = vrot.slane %v3880_v26, 4  ;;  %v3631_v1 = vadd.f32 %v3630_v24, %v7469_v22  ;;  %v7534_v22 = vld [vmem:[%s8008_s3 + $0x38] sm:$0xff] }
 0x61d   : >> { %v3865_v5 = vadd.f32 %v7308_v10, %v3857_v32  ;;  %v3897_v13 = vsel %vm1183_vm3, %v3895_v40, %v3896_v6  ;;  %v3930_v28 = vsel %vm1459_vm10, %v3928_v36, %v3929_v39  ;;  %v3963_v14 = vsel %vm2694_vm12, %v3961_v35, %v3962_v18  ;;  %4305 = vmatpush.bf16.msra.mxu3 %v7534_v22 }
 0x61e   : >> { %v3920_v25 = vmax.f32 %v7482_v2, %v3897_v13  ;;  %v3996_v27 = vsel %vm2760_vm13, %v3994_v59, %v3995_v55  ;;  %v3688_v47 = vadd.f32 %v3675_v54, %v3631_v1  ;;  %v7563_v54 = vld [vmem:[%s8008_s3 + $0x30] sm:$0xff] }
 0x61f   : >> { %v3873_v53 = vadd.f32 %v6005_v49, %v3865_v5  ;;  %v5950_v49 = vld [vmem:[%s8008_s3 + $0x8] sm:$0xff] }
 0x620   : >> { %v3953_v48 = vmax.f32 %v3920_v25, %v3930_v28  ;;  %4182 = vmatpush.bf16.msrb.mxu1 %v5950_v49  ;;  %4493 = vmatpush.bf16.msra.mxu2 %v5950_v49 }
 0x621   : >> { %v7496_v38 = vmax.f32 %v3873_v53, 0.0  ;;  %v3633_v53 = vpop.f32.mrf.mxu0  ;;  %4306 = vmatpush.bf16.msra.mxu3 %v7563_v54 }
 0x622   : >> { %v3842_v34 = vpop.f32.mrf.mxu3  ;;  %v3986_v51 = vmax.f32 %v3953_v48, %v3963_v14  ;;  %v3634_v14 = vadd.f32 %v3633_v53, %v7471_v23 }
 0x623   : >> { %v3898_v44 = vrot.slane %v7496_v38, 1  ;;  %v3931_v8 = vrot.slane %v7496_v38, 2  ;;  %v3858_v33 = vadd.f32 %v3842_v34, %v3772_v37  ;;  %v3964_v42 = vrot.slane %v7496_v38, 3 }
 0x624   : >> { %v4019_v15 = vmax.f32 %v3986_v51, %v3996_v27  ;;  %v3997_v50 = vrot.slane %v7496_v38, 4  ;;  %v3774_v51 = vadd.f32 %v3761_v29, %v3688_v47  ;;  %v3678_v27 = vpop.f32.mrf.mxu1 }
 0x625   : >> { %v3899_v61 = vsel %vm1183_vm3, %v3896_v6, %v3898_v44  ;;  %v3866_v7 = vadd.f32 %v7308_v10, %v3858_v33  ;;  %v3932_v4 = vsel %vm1459_vm10, %v3929_v39, %v3931_v8  ;;  %v3965_v17 = vsel %vm2694_vm12, %v3962_v18, %v3964_v42  ;;  %4520 = vmatpush.bf16.msrb.mxu3 %v7505_v9 }
 0x626   : >> { %v3921_v11 = vmax.f32 %v3880_v26, %v3899_v61  ;;  %4027 = vst.msk [vmem:[#allocation2] sm:$0xff] %vm910_vm2, %v4019_v15  ;;  %v3998_v41 = vsel %vm2760_vm13, %v3995_v55, %v3997_v50  ;;  %v3689_v24 = vadd.f32 %v3678_v27, %v3634_v14 }
 0x627   : >> { %v3874_v0 = vadd.f32 %v6006_v3, %v3866_v7  ;;  %v3764_v7 = vpop.f32.mrf.mxu2 }
 0x628   : >> { %v3954_v58 = vmax.f32 %v3921_v11, %v3932_v4  ;;  %v3775_v1 = vadd.f32 %v3764_v7, %v3689_v24 }
 0x629   : >> { %v3882_v26 = vmax.f32 %v3874_v0, 0.0  ;;  %v5951_v0 = vld [vmem:[%s8008_s3 + $0x10] sm:$0xff]  ;;  %4521 = vmatpush.bf16.msrb.mxu3 %v7519_v46 }
 0x62a   : >> { %v3987_v57 = vmax.f32 %v3954_v58, %v3965_v17  ;;  %v3845_v20 = vpop.f32.mrf.mxu3  ;;  %v3635_v17 = vpop.f32.mrf.mxu0  ;;  %4146 = vmatpush.bf16.msrb.mxu0 %v5951_v0 }
 0x62b   : >> { %v3859_v32 = vadd.f32 %v3845_v20, %v3773_v30  ;;  %v3900_v39 = vrot.slane %v3882_v26, 1  ;;  %v3933_v5 = vrot.slane %v3882_v26, 2  ;;  %v3966_v25 = vrot.slane %v3882_v26, 3 }
 0x62c   : >> { %v4020_v6 = vmax.f32 %v3987_v57, %v3998_v41  ;;  %v3999_v48 = vrot.slane %v3882_v26, 4  ;;  %v3636_v57 = vadd.f32 %v3635_v17, %v7473_v21 }
 0x62d   : >> { %v3867_v13 = vadd.f32 %v7308_v10, %v3859_v32  ;;  %v3901_v18 = vsel %vm1183_vm3, %v3898_v44, %v3900_v39  ;;  %v3934_v63 = vsel %vm1459_vm10, %v3931_v8, %v3933_v5  ;;  %v3967_v19 = vsel %vm2694_vm12, %v3964_v42, %v3966_v25 }
 0x62e   : >> { %4028 = vst.msk [vmem:[#allocation2 + $0x8] sm:$0xff] %vm910_vm2, %v4020_v6  ;;  %v3922_v28 = vmax.f32 %v7496_v38, %v3901_v18  ;;  %v4000_v33 = vsel %vm2760_vm13, %v3997_v50, %v3999_v48  ;;  %v5949_v6 = vld [vmem:[%s8008_s3] sm:$0xff] }
 0x62f   : >> { %v3875_v55 = vadd.f32 %v3867_v13, %v7119_v31  ;;  %v3680_v13 = vpop.f32.mrf.mxu1  ;;  %4183 = vmatpush.bf16.msrb.mxu1 %v5949_v6  ;;  %4494 = vmatpush.bf16.msra.mxu2 %v5949_v6 }
 0x630   : >> { %v3955_v37 = vmax.f32 %v3922_v28, %v3934_v63  ;;  %v3690_v47 = vadd.f32 %v3680_v13, %v3636_v57 }
 0x631   : >> { %v7544_v34 = vmax.f32 %v3875_v55, 0.0  ;;  %v3766_v55 = vpop.f32.mrf.mxu2 }
 0x632   : >> { %v3847_v44 = vpop.f32.mrf.mxu3  ;;  %v3988_v38 = vmax.f32 %v3955_v37, %v3967_v19  ;;  %v3776_v37 = vadd.f32 %v3766_v55, %v3690_v47 }
 0x633   : >> { %v3902_v31 = vrot.slane %v7544_v34, 1  ;;  %v3935_v8 = vrot.slane %v7544_v34, 2  ;;  %v3860_v45 = vadd.f32 %v3847_v44, %v3774_v51  ;;  %v3968_v61 = vrot.slane %v7544_v34, 3  ;;  %4468 = vmatpush.bf16.msra.mxu1 %v7480_v43 }
 0x634   : >> { %v4021_v15 = vmax.f32 %v3988_v38, %v4000_v33  ;;  %v4001_v58 = vrot.slane %v7544_v34, 4 }
 0x635   : >> { %v3903_v23 = vsel %vm1183_vm3, %v3900_v39, %v3902_v31  ;;  %v3868_v42 = vadd.f32 %v7308_v10, %v3860_v45  ;;  %v3936_v4 = vsel %vm1459_vm10, %v3933_v5, %v3935_v8  ;;  %v3969_v30 = vsel %vm2694_vm12, %v3966_v25, %v3968_v61 }
 0x636   : >> { %v3923_v11 = vmax.f32 %v3882_v26, %v3903_v23  ;;  %4029 = vst.msk [vmem:[#allocation2 + $0x10] sm:$0xff] %vm910_vm2, %v4021_v15  ;;  %v7594_v15 = vld [vmem:[%s8008_s3 + $0x48] sm:$0xff] }
 0x637   : >> { %v3876_v50 = vadd.f32 %v3868_v42, %v7155_v12  ;;  %v4002_v12 = vsel %vm2760_vm13, %v3999_v48, %v4001_v58  ;;  %4469 = vmatpush.bf16.msra.mxu1 %v5951_v0  ;;  %4385 = vmatpush.bf16.msra.mxu0 %v7594_v15 }
 0x638   : >> { %v3956_v3 = vmax.f32 %v3923_v11, %v3936_v4 }
 0x639   : >> { %v3884_v20 = vmax.f32 %v3876_v50, 0.0 }
 0x63a   : >> { %v3989_v26 = vmax.f32 %v3956_v3, %v3969_v30  ;;  %v3850_v41 = vpop.f32.mrf.mxu3 }
 0x63b   : >> { %v3861_v32 = vadd.f32 %v3850_v41, %v3775_v1  ;;  %v3904_v5 = vrot.slane %v3884_v20, 1  ;;  %v3937_v29 = vrot.slane %v3884_v20, 2  ;;  %v3970_v25 = vrot.slane %v3884_v20, 3 }
 0x63c   : >> { %v4022_v39 = vmax.f32 %v3989_v26, %v4002_v12  ;;  %v4003_v28 = vrot.slane %v3884_v20, 4 }
 0x63d   : >> { %v3869_v21 = vadd.f32 %v7308_v10, %v3861_v32  ;;  %v3905_v18 = vsel %vm1183_vm3, %v3902_v31, %v3904_v5  ;;  %v3938_v53 = vsel %vm1459_vm10, %v3935_v8, %v3937_v29  ;;  %v3971_v14 = vsel %vm2694_vm12, %v3968_v61, %v3970_v25  ;;  %v7584_v31 = vld [vmem:[#allocation2] ss:$2 sm:$0xff] }
 0x63e   : >> { %4030 = vst.msk [vmem:[#allocation2 + $0x18] sm:$0xff] %vm910_vm2, %v4022_v39  ;;  %v3924_v49 = vmax.f32 %v7544_v34, %v3905_v18  ;;  %v4004_v34 = vsel %vm2760_vm13, %v4001_v58, %v4003_v28 }
 0x63f   : >> { %v3877_v9 = vadd.f32 %v3869_v21, %v7188_v16 }
 0x640   : >> { %v3957_v63 = vmax.f32 %v3924_v49, %v3938_v53  ;;  %v521_v53 = vadd.s32 24, %v8113_v52 }
 0x641   : >> { %v3885_v48 = vmax.f32 %v3877_v9, 0.0 }
 0x642   : >> { %v3852_v19 = vpop.f32.mrf.mxu3  ;;  %v3990_v51 = vmax.f32 %v3957_v63, %v3971_v14  ;;  %v7635_v55 = vadd.s32 1, %v521_v53  ;;  %v4045_v14 = vrot.slane %v7584_v31, 6 }
 0x643   : >> { %v3906_v44 = vrot.slane %v3885_v48, 1  ;;  %v3939_v43 = vrot.slane %v3885_v48, 2  ;;  %v3862_v27 = vadd.f32 %v3852_v19, %v3776_v37  ;;  %v3972_v38 = vrot.slane %v3885_v48, 3 }
 0x644   : >> { %v4023_v16 = vmax.f32 %v3990_v51, %v4004_v34  ;;  %v4005_v61 = vrot.slane %v3885_v48, 4  ;;  %vm4258_vm8 = vcmp.lt.s32.totalorder %v7635_v55, 28 }
 0x645   : >> { %v3907_v46 = vsel %vm1183_vm3, %v3904_v5, %v3906_v44  ;;  %v7586_v8 = vld [vmem:[#allocation2 + $0x10] ss:$2 sm:$0xff]  ;;  %v3870_v45 = vadd.f32 %v7308_v10, %v3862_v27  ;;  %v3940_v23 = vsel %vm1459_vm10, %v3937_v29, %v3939_v43  ;;  %v3973_v10 = vsel %vm2694_vm12, %v3970_v25, %v3972_v38 }
 0x646   : >> { %v3925_v33 = vmax.f32 %v3884_v20, %v3907_v46  ;;  %v4195_v24 = vpack.c.bf16 %v7586_v8, %v7584_v31  ;;  %4031 = vst.msk [vmem:[#allocation2 + $0x20] sm:$0xff] %vm910_vm2, %v4023_v16  ;;  %v4006_v58 = vsel %vm2760_vm13, %v4003_v28, %v4005_v61  ;;  %v4243_v21 = vrot.slane %v7586_v8, 1 }
 0x647   : >> { %v3878_v42 = vadd.f32 %v3870_v45, %v7211_v56  ;;  %v4242_v25 = vrot.slane %v7584_v31, 1  ;;  %v4085_v28 = vrot.slane %v7586_v8, 7  ;;  %v4046_v37 = vrot.slane %v7586_v8, 6 }
 0x648   : >> { %v3958_v11 = vmax.f32 %v3925_v33, %v3940_v23  ;;  %5752 = vmatmul.msk.bf16.vlgmr.msrb.gmra.mxu2 %vm910_vm2, %v4195_v24 }
 0x649   : >> { %v3886_v4 = vmax.f32 %v3878_v42, 0.0  ;;  %v4244_v2 = vsel %vm1183_vm3, %v4242_v25, %v4243_v21 }
 0x64a   : >> { %v3991_v7 = vmax.f32 %v3958_v11, %v3973_v10  ;;  %v7665_v10 = vadd.s32 4294967295, %v521_v53 }
 0x64b   : >> { %v3908_v50 = vrot.slane %v3886_v4, 1  ;;  %v3941_v0 = vrot.slane %v3886_v4, 2  ;;  %v3974_v30 = vrot.slane %v3886_v4, 3  ;;  %v4007_v41 = vrot.slane %v3886_v4, 4 }
 0x64c   : >> { %v4024_v3 = vmax.f32 %v3991_v7, %v4006_v58  ;;  %v7667_v7 = vadd.s32 4294967294, %v521_v53  ;;  %vm4098_vm9 = vcmp.lt.s32.totalorder %v7665_v10, 28 }
 0x64d   : >> { %v3909_v17 = vsel %vm1183_vm3, %v3906_v44, %v3908_v50  ;;  %v3919_v56 = vsel %vm1183_vm3, %v3908_v50, %v3895_v40  ;;  %v3942_v26 = vsel %vm1459_vm10, %v3939_v43, %v3941_v0  ;;  %v3952_v20 = vsel %vm1459_vm10, %v3941_v0, %v3928_v36 }
 0x64e   : >> { %4032 = vst.msk [vmem:[#allocation2 + $0x28] sm:$0xff] %vm910_vm2, %v4024_v3  ;;  %v3926_v1 = vmax.f32 %v3885_v48, %v3909_v17  ;;  %v3927_v57 = vmax.f32 %v3886_v4, %v3919_v56  ;;  %v3975_v6 = vsel %vm2694_vm12, %v3972_v38, %v3974_v30  ;;  %v3985_v39 = vsel %vm2694_vm12, %v3974_v30, %v3961_v35  ;;  %v5957_v35 = vld [vmem:[%s8008_s3 + $0x40] sm:$0xff] }
 0x64f   : >> { %v4008_v29 = vsel %vm2760_vm13, %v4005_v61, %v4007_v41  ;;  %v4018_v13 = vsel %vm2760_vm13, %v4007_v41, %v3994_v59  ;;  %4386 = vmatpush.bf16.msra.mxu0 %v5957_v35  ;;  %v4084_v48 = vrot.slane %v7584_v31, 7  ;;  %v4047_v38 = vsel %vm464_vm0, %v4045_v14, %v4046_v37 }
 0x650   : >> { %v3959_v12 = vmax.f32 %v3926_v1, %v3942_v26  ;;  %v3960_v32 = vmax.f32 %v3927_v57, %v3952_v20  ;;  %vm4059_vm11 = vcmp.lt.s32.totalorder %v7667_v7, 28  ;;  %v4323_v1 = vrot.slane %v7586_v8, 2 }
 0x651   : >> { %v4086_v34 = vsel %vm725_vm4, %v4084_v48, %v4085_v28  ;;  %v4322_v57 = vrot.slane %v7584_v31, 2 }
 0x652   : >> { %v3992_v5 = vmax.f32 %v3959_v12, %v3975_v6  ;;  %v3993_v40 = vmax.f32 %v3960_v32, %v3985_v39  ;;  %v7691_v12 = vadd.s32 2, %v521_v53 }
 0x653   : >> { %v4324_v20 = vsel %vm1459_vm10, %v4322_v57, %v4323_v1 }
 0x654   : >> { %v4025_v36 = vmax.f32 %v3992_v5, %v4008_v29  ;;  %v4026_v47 = vmax.f32 %v3993_v40, %v4018_v13  ;;  %vm4338_vm14 = vcmp.lt.s32.totalorder %v7691_v12, 28 }
 0x655   : >> { %v7621_v18 = vld [vmem:[#allocation2 + $0x20] ss:$2 sm:$0xff] }
 0x656   : >> { %v4245_v49 = vrot.slane %v7621_v18, 1  ;;  %4033 = vst.msk [vmem:[#allocation2 + $0x30] sm:$0xff] %vm910_vm2, %v4025_v36  ;;  %v4087_v4 = vrot.slane %v7621_v18, 7  ;;  %v4048_v58 = vrot.slane %v7621_v18, 6  ;;  %v4325_v30 = vrot.slane %v7621_v18, 2 }
 0x657   : >> { %4034 = vst.msk [vmem:[#allocation2 + $0x38] sm:$0xff] %vm910_vm2, %v4026_v47 }
 0x658   : >> { %v4246_v59 = vsel %vm1183_vm3, %v4243_v21, %v4245_v49  ;;  %v4049_v0 = vsel %vm464_vm0, %v4046_v37, %v4048_v58  ;;  %v4326_v26 = vsel %vm1459_vm10, %v4323_v1, %v4325_v30 }
 0x659   : >> { %v4275_v9 = vpack.c.bf16 %v4246_v59, %v4244_v2  ;;  %v4355_v41 = vpack.c.bf16 %v4326_v26, %v4324_v20 }
 0x65b   : >> { %5766 = vmatmul.msk.bf16.vlgmr.msra.gmra.mxu3 %vm910_vm2, %v4275_v9 }
 0x65e   : >> { %v7637_v63 = vld [vmem:[#allocation2 + $0x30] ss:$2 sm:$0xff] }
 0x65f   : >> { %v4196_v19 = vpack.c.bf16 %v7637_v63, %v7621_v18  ;;  %v4082_v51 = vrot.slane %v7637_v63, 7  ;;  %v4040_v44 = vrot.slane %v7637_v63, 6  ;;  %v4247_v43 = vrot.slane %v7637_v63, 1 }
 0x660   : >> { %v4327_v32 = vrot.slane %v7637_v63, 2 }
 0x661   : >> { %5753 = vmatmul.msk.bf16.gmra.mxu2 %vm910_vm2, %v4196_v19  ;;  %v4094_v27 = vsel %vm725_vm4, %v4082_v51, %v4084_v48  ;;  %v4055_v16 = vsel %vm464_vm0, %v4040_v44, %v4045_v14  ;;  %v4254_v45 = vsel %vm1183_vm3, %v4247_v43, %v4242_v25  ;;  %v4248_v61 = vsel %vm1183_vm3, %v4245_v49, %v4247_v43 }
 0x662   : >> { %v4111_v46 = vsel %vm789_vm5, %v4094_v27, 0.0  ;;  %v4072_v33 = vsel %vm615_vm6, %v4055_v16, 0.0  ;;  %v4274_v11 = vsel %vm4258_vm8, %v4254_v45, 0.0  ;;  %v4089_v3 = vsel %vm725_vm4, %v4087_v4, %v4082_v51 }
 0x663   : >> { %v4115_v24 = vpack.c.bf16 %v4086_v34, %v4111_v46  ;;  %v4076_v23 = vpack.c.bf16 %v4047_v38, %v4072_v33  ;;  %v4276_v42 = vpack.c.bf16 %v4274_v11, %v4248_v61  ;;  %v4334_v6 = vsel %vm1459_vm10, %v4327_v32, %v4322_v57 }
 0x664   : >> { %v4328_v39 = vsel %vm1459_vm10, %v4325_v30, %v4327_v32  ;;  %v4354_v5 = vsel %vm4338_vm14, %v4334_v6, 0.0 }
 0x665   : >> { %5728 = vmatmul.msk.bf16.vlgmr.msrb.gmra.mxu0 %vm910_vm2, %v4115_v24  ;;  %5738 = vmatmul.msk.bf16.vlgmr.msrb.gmra.mxu1 %vm910_vm2, %v4076_v23  ;;  %v4356_v40 = vpack.c.bf16 %v4354_v5, %v4328_v39 }
 0x666   : >> { %4568 = vmatpush.bf16.msrb.mxu0 %v7534_v22  ;;  %4616 = vmatpush.bf16.msrb.mxu1 %v7594_v15  ;;  %v4050_v22 = vsel %vm464_vm0, %v4048_v58, %v4040_v44  ;;  %v4114_v15 = vsel %vm4098_vm9, %v4089_v3, 0.0  ;;  %v7703_v44 = vld [vmem:[%s8009_s4] ss:$0 sm:$0xff] }
 0x667   : >> { %v4075_v50 = vsel %vm4059_vm11, %v4050_v22, 0.0 }
 0x668   : >> { %v4077_v56 = vpack.c.bf16 %v4075_v50, %v4049_v0 }
 0x66a   : >> { %4569 = vmatpush.bf16.msrb.mxu0 %v7563_v54  ;;  %4617 = vmatpush.bf16.msrb.mxu1 %v5957_v35  ;;  %v4088_v54 = vsel %vm725_vm4, %v4085_v28, %v4087_v4 }
 0x66b   : >> { %5767 = vmatmul.msk.bf16.gmra.mxu3 %vm910_vm2, %v4276_v42  ;;  %v4116_v17 = vpack.c.bf16 %v4114_v15, %v4088_v54 }
 0x675   : >> { %5729 = vmatmul.msk.bf16.gmra.mxu0 %vm910_vm2, %v4116_v17  ;;  %5739 = vmatmul.msk.bf16.gmra.mxu1 %vm910_vm2, %v4077_v56 }
 0x685   : >> { %5780 = vmatmul.msk.bf16.vlgmr.msra.gmra.mxu0 %vm910_vm2, %v4355_v41 }
 0x695   : >> { %5781 = vmatmul.msk.bf16.gmra.mxu0 %vm910_vm2, %v4356_v40 }
 0x6cb   : >> { %v4228_v47 = vpop.f32.mrf.mxu2 }
 0x6d3   : >> { %v4230_v53 = vpop.f32.mrf.mxu2 }
 0x6de   : >> { %v4308_v25 = vpop.f32.mrf.mxu3 }
 0x6e2   : >> { %v4148_v29 = vpop.f32.mrf.mxu0  ;;  %v4185_v21 = vpop.f32.mrf.mxu1 }
 0x6e3   : >> { %v4186_v2 = vadd.f32 %v4185_v21, %v4148_v29 }
 0x6e4   : >> { %v4233_v27 = vpop.f32.mrf.mxu2 }
 0x6e5   : >> { %v4238_v59 = vadd.f32 %v4228_v47, %v4186_v2 }
 0x6e6   : >> { %v4310_v48 = vpop.f32.mrf.mxu3 }
 0x6e7   : >> { %v4318_v19 = vadd.f32 %v4308_v25, %v4238_v59 }
 0x6ea   : >> { %v4150_v13 = vpop.f32.mrf.mxu0  ;;  %v4187_v49 = vpop.f32.mrf.mxu1 }
 0x6eb   : >> { %v4188_v9 = vadd.f32 %v4187_v49, %v4150_v13 }
 0x6ec   : >> { %v4235_v15 = vpop.f32.mrf.mxu2 }
 0x6ed   : >> { %v4239_v37 = vadd.f32 %v4230_v53, %v4188_v9 }
 0x6ee   : >> { %v4313_v24 = vpop.f32.mrf.mxu3 }
 0x6ef   : >> { %v4319_v34 = vadd.f32 %v4310_v48, %v4239_v37 }
 0x6f2   : >> { %v4153_v36 = vpop.f32.mrf.mxu0  ;;  %v4190_v14 = vpop.f32.mrf.mxu1 }
 0x6f3   : >> { %v4191_v43 = vadd.f32 %v4190_v14, %v4153_v36 }
 0x6f5   : >> { %v4240_v33 = vadd.f32 %v4233_v27, %v4191_v43 }
 0x6f6   : >> { %v4315_v56 = vpop.f32.mrf.mxu3 }
 0x6f7   : >> { %v4320_v58 = vadd.f32 %v4313_v24, %v4240_v33 }
 0x6fa   : >> { %v4155_v35 = vpop.f32.mrf.mxu0  ;;  %v4192_v23 = vpop.f32.mrf.mxu1 }
 0x6fb   : >> { %v4193_v42 = vadd.f32 %v4192_v23, %v4155_v35 }
 0x6fd   : >> { %v4241_v50 = vadd.f32 %v4235_v15, %v4193_v42 }
 0x6ff   : >> { %v4321_v57 = vadd.f32 %v4315_v56, %v4241_v50 }
 0x702   : >> { %v4388_v28 = vpop.f32.mrf.mxu0 }
 0x703   : >> { %v4398_v51 = vadd.f32 %v4388_v28, %v4318_v19 }
 0x705   : >> { %v4406_v46 = vadd.f32 %v7703_v44, %v4398_v51 }
 0x707   : >> { %v7707_v61 = vmax.f32 %v4406_v46, 0.0 }
 0x709   : >> { %v4537_v30 = vrot.slane %v7707_v61, 1  ;;  %v4420_v40 = vrot.slane %v7707_v61, 6  ;;  %v4439_v21 = vrot.slane %v7707_v61, 7 }
 0x70a   : >> { %v4390_v16 = vpop.f32.mrf.mxu0 }
 0x70b   : >> { %v4399_v38 = vadd.f32 %v4390_v16, %v4319_v34 }
 0x70d   : >> { %v4407_v45 = vadd.f32 %v7703_v44, %v4399_v38 }
 0x70f   : >> { %v7709_v11 = vmax.f32 %v4407_v45, 0.0 }
 0x711   : >> { %v4506_v4 = vpack.c.bf16 %v7709_v11, %v7707_v61  ;;  %v4538_v0 = vrot.slane %v7709_v11, 1  ;;  %v4421_v29 = vrot.slane %v7709_v11, 6  ;;  %v4440_v13 = vrot.slane %v7709_v11, 7 }
 0x712   : >> { %v4393_v3 = vpop.f32.mrf.mxu0 }
 0x713   : >> { %v4400_v22 = vadd.f32 %v4393_v3, %v4320_v58  ;;  %5786 = vmatmul.msk.bf16.vlgmr.msrb.gmra.mxu3 %vm910_vm2, %v4506_v4  ;;  %v4539_v41 = vsel %vm1183_vm3, %v4537_v30, %v4538_v0  ;;  %v4441_v59 = vsel %vm725_vm4, %v4439_v21, %v4440_v13  ;;  %v4422_v53 = vsel %vm464_vm0, %v4420_v40, %v4421_v29 }
 0x714   : >> { %v4586_v4 = vrot.slane %v7709_v11, 2  ;;  %v4585_v58 = vrot.slane %v7707_v61, 2 }
 0x715   : >> { %v4408_v54 = vadd.f32 %v7703_v44, %v4400_v22 }
 0x716   : >> { %v4587_v7 = vsel %vm1459_vm10, %v4585_v58, %v4586_v4 }
 0x717   : >> { %v4412_v17 = vmax.f32 %v4408_v54, 0.0 }
 0x719   : >> { %v4540_v1 = vrot.slane %v4412_v17, 1  ;;  %v4442_v34 = vrot.slane %v4412_v17, 7  ;;  %v4423_v27 = vrot.slane %v4412_v17, 6  ;;  %v4588_v42 = vrot.slane %v4412_v17, 2 }
 0x71a   : >> { %v4395_v26 = vpop.f32.mrf.mxu0 }
 0x71b   : >> { %v4401_v20 = vadd.f32 %v4395_v26, %v4321_v57  ;;  %v4541_v32 = vsel %vm1183_vm3, %v4538_v0, %v4540_v1  ;;  %v4443_v45 = vsel %vm725_vm4, %v4440_v13, %v4442_v34  ;;  %v4424_v55 = vsel %vm464_vm0, %v4421_v29, %v4423_v27 }
 0x71c   : >> { %v4554_v6 = vpack.c.bf16 %v4541_v32, %v4539_v41  ;;  %v4589_v10 = vsel %vm1459_vm10, %v4586_v4, %v4588_v42 }
 0x71d   : >> { %v4409_v39 = vadd.f32 %v7703_v44, %v4401_v20  ;;  %v4602_v3 = vpack.c.bf16 %v4589_v10, %v4587_v7 }
 0x71e   : >> { %5788 = vmatmul.msk.bf16.vlgmr.msrb.gmra.mxu0 %vm910_vm2, %v4554_v6 }
 0x71f   : >> { %v4413_v5 = vmax.f32 %v4409_v39, 0.0 }
 0x721   : >> { %v4415_v36 = vrot.slane %v4413_v5, 6  ;;  %v4437_v47 = vrot.slane %v4413_v5, 7  ;;  %v4507_v25 = vpack.c.bf16 %v4413_v5, %v4412_v17  ;;  %v4542_v49 = vrot.slane %v4413_v5, 1 }
 0x722   : >> { %v4590_v22 = vrot.slane %v4413_v5, 2 }
 0x723   : >> { %5787 = vmatmul.msk.bf16.gmra.mxu3 %vm910_vm2, %v4507_v25  ;;  %v4449_v35 = vsel %vm725_vm4, %v4437_v47, %v4439_v21  ;;  %v4430_v2 = vsel %vm464_vm0, %v4415_v36, %v4420_v40  ;;  %v4549_v37 = vsel %vm1183_vm3, %v4542_v49, %v4537_v30  ;;  %v4543_v19 = vsel %vm1183_vm3, %v4540_v1, %v4542_v49 }
 0x724   : >> { %v4450_v9 = vsel %vm789_vm5, %v4449_v35, 0.0  ;;  %v4431_v28 = vsel %vm615_vm6, %v4430_v2, 0.0  ;;  %v4553_v51 = vsel %vm4258_vm8, %v4549_v37, 0.0  ;;  %v4444_v16 = vsel %vm725_vm4, %v4442_v34, %v4437_v47  ;;  %v5962_v37 = vld [vmem:[%s8008_s3 + $0x18] sm:$0xff] }
 0x725   : >> { %v4454_v48 = vpack.c.bf16 %v4441_v59, %v4450_v9  ;;  %v4435_v14 = vpack.c.bf16 %v4422_v53, %v4431_v28  ;;  %v4555_v43 = vpack.c.bf16 %v4553_v51, %v4543_v19  ;;  %v4425_v46 = vsel %vm464_vm0, %v4423_v27, %v4415_v36  ;;  %v7773_v19 = vld [vmem:[%s8008_s3 + $0x8] sm:$0xff]  ;;  %4790 = vmatpush.bf16.msrb.mxu2 %v5962_v37 }
 0x726   : >> { %v4453_v38 = vsel %vm4098_vm9, %v4444_v16, 0.0  ;;  %v4434_v33 = vsel %vm4059_vm11, %v4425_v46, 0.0  ;;  %v4597_v15 = vsel %vm1459_vm10, %v4590_v22, %v4585_v58  ;;  %v4591_v50 = vsel %vm1459_vm10, %v4588_v42, %v4590_v22  ;;  %v5968_v51 = vld [vmem:[%s8008_s3 + $0x48] sm:$0xff]  ;;  %4819 = vmatpush.bf16.msra.mxu3 %v7773_v19  ;;  %v7787_v46 = vld [vmem:[%s8008_s3] sm:$0xff] }
 0x727   : >> { %5782 = vmatmul.msk.bf16.vlgmr.msra.gmra.mxu1 %vm910_vm2, %v4454_v48  ;;  %5784 = vmatmul.msk.bf16.vlgmr.msra.gmra.mxu2 %vm910_vm2, %v4435_v14  ;;  %v4455_v24 = vpack.c.bf16 %v4453_v38, %v4443_v45  ;;  %v4436_v23 = vpack.c.bf16 %v4434_v33, %v4424_v55  ;;  %v4601_v54 = vsel %vm4338_vm14, %v4597_v15, 0.0  ;;  %v5967_v38 = vld [vmem:[%s8008_s3 + $0x40] sm:$0xff] }
 0x728   : >> { %v4603_v0 = vpack.c.bf16 %v4601_v54, %v4591_v50  ;;  %4959 = vmatpush.bf16.msra.mxu0 %v5968_v51  ;;  %5008 = vmatpush.bf16.msra.mxu1 %v5962_v37 }
 0x72a   : >> { %4820 = vmatpush.bf16.msra.mxu3 %v7787_v46 }
 0x72c   : >> { %4960 = vmatpush.bf16.msra.mxu0 %v5967_v38 }
 0x72e   : >> { %5789 = vmatmul.msk.bf16.gmra.mxu0 %vm910_vm2, %v4555_v43 }
 0x737   : >> { %5783 = vmatmul.msk.bf16.gmra.mxu1 %vm910_vm2, %v4455_v24  ;;  %5785 = vmatmul.msk.bf16.gmra.mxu2 %vm910_vm2, %v4436_v23 }
 0x747   : >> { %5790 = vmatmul.msk.bf16.vlgmr.msrb.gmra.mxu1 %vm910_vm2, %v4602_v3 }
 0x757   : >> { %5791 = vmatmul.msk.bf16.gmra.mxu1 %vm910_vm2, %v4603_v0 }
 0x796   : >> { %v4523_v30 = vpop.f32.mrf.mxu3 }
 0x79b   : >> { %v4571_v26 = vpop.f32.mrf.mxu0 }
 0x79e   : >> { %v4525_v32 = vpop.f32.mrf.mxu3 }
 0x7a3   : >> { %v4573_v12 = vpop.f32.mrf.mxu0 }
 0x7a4   : >> { %v4471_v11 = vpop.f32.mrf.mxu1 }
 0x7a6   : >> { %v4528_v49 = vpop.f32.mrf.mxu3 }
 0x7aa   : >> { %v4496_v17 = vpop.f32.mrf.mxu2 }
 0x7ab   : >> { %v4497_v1 = vadd.f32 %v4496_v17, %v4471_v11  ;;  %v4576_v53 = vpop.f32.mrf.mxu0 }
 0x7ac   : >> { %v4473_v61 = vpop.f32.mrf.mxu1 }
 0x7ad   : >> { %v4533_v41 = vadd.f32 %v4523_v30, %v4497_v1 }
 0x7ae   : >> { %v4530_v24 = vpop.f32.mrf.mxu3 }
 0x7af   : >> { %v4581_v39 = vadd.f32 %v4571_v26, %v4533_v41 }
 0x7b2   : >> { %v4498_v20 = vpop.f32.mrf.mxu2 }
 0x7b3   : >> { %v4499_v6 = vadd.f32 %v4498_v20, %v4473_v61  ;;  %v4578_v54 = vpop.f32.mrf.mxu0 }
 0x7b4   : >> { %v4476_v56 = vpop.f32.mrf.mxu1 }
 0x7b5   : >> { %v4534_v13 = vadd.f32 %v4525_v32, %v4499_v6 }
 0x7b7   : >> { %v4582_v47 = vadd.f32 %v4573_v12, %v4534_v13 }
 0x7ba   : >> { %v4501_v29 = vpop.f32.mrf.mxu2 }
 0x7bb   : >> { %v4502_v36 = vadd.f32 %v4501_v29, %v4476_v56 }
 0x7bc   : >> { %v4478_v57 = vpop.f32.mrf.mxu1 }
 0x7bd   : >> { %v4535_v59 = vadd.f32 %v4528_v49, %v4502_v36  ;;  %v5966_v36 = vld [vmem:[%s8008_s3 + $0x38] sm:$0xff] }
 0x7be   : >> { %4906 = vmatpush.bf16.msrb.mxu3 %v5966_v36  ;;  %5072 = vmatpush.bf16.msrb.mxu0 %v5966_v36 }
 0x7c2   : >> { %v4503_v28 = vpop.f32.mrf.mxu2 }
 0x7c3   : >> { %v4504_v43 = vadd.f32 %v4503_v28, %v4478_v57 }
 0x7c4   : >> { %v4619_v5 = vpop.f32.mrf.mxu1 }
 0x7c5   : >> { %v4629_v40 = vadd.f32 %v4619_v5, %v4581_v39  ;;  %v4536_v42 = vadd.f32 %v4530_v24, %v4504_v43 }
 0x7c7   : >> { %v4633_v21 = vadd.f32 %v7703_v44, %v4629_v40  ;;  %v4584_v56 = vadd.f32 %v4578_v54, %v4536_v42  ;;  %v7814_v40 = vld [vmem:[%s8008_s3 + $0x28] sm:$0xff]  ;;  %v519_v42 = vadd.s32 8, %v8113_v52 }
 0x7c9   : >> { %v4637_v35 = vadd.f32 %v4633_v21, %v7584_v31  ;;  %v4583_v31 = vadd.f32 %v4576_v53, %v4535_v59 }
 0x7cb   : >> { %v7764_v48 = vmax.f32 %v4637_v35, 0.0 }
 0x7cc   : >> { %v4621_v25 = vpop.f32.mrf.mxu1 }
 0x7cd   : >> { %v4630_v2 = vadd.f32 %v4621_v25, %v4582_v47  ;;  %v4649_v33 = vrot.slane %v7764_v48, 1  ;;  %v4666_v4 = vrot.slane %v7764_v48, 2  ;;  %v4683_v22 = vrot.slane %v7764_v48, 3 }
 0x7ce   : >> { %v4700_v61 = vrot.slane %v7764_v48, 4 }
 0x7cf   : >> { %v4634_v9 = vadd.f32 %v7703_v44, %v4630_v2 }
 0x7d1   : >> { %v4638_v14 = vadd.f32 %v4634_v9, %v7586_v8  ;;  %v5961_v8 = vld [vmem:[%s8008_s3 + $0x10] sm:$0xff] }
 0x7d2   : >> { %4791 = vmatpush.bf16.msrb.mxu2 %v5961_v8  ;;  %5009 = vmatpush.bf16.msra.mxu1 %v5961_v8 }
 0x7d3   : >> { %v7778_v34 = vmax.f32 %v4638_v14, 0.0 }
 0x7d4   : >> { %v4624_v27 = vpop.f32.mrf.mxu1 }
 0x7d5   : >> { %v4631_v16 = vadd.f32 %v4624_v27, %v4583_v31  ;;  %v4650_v45 = vrot.slane %v7778_v34, 1  ;;  %v4667_v55 = vrot.slane %v7778_v34, 2  ;;  %v4684_v10 = vrot.slane %v7778_v34, 3 }
 0x7d6   : >> { %v4701_v50 = vrot.slane %v7778_v34, 4  ;;  %5101 = vmatpush.bf16.msrb.mxu1 %v5968_v51  ;;  %4853 = vmatpush.bf16.msra.mxu2 %v7814_v40 }
 0x7d7   : >> { %v4635_v23 = vadd.f32 %v7703_v44, %v4631_v16  ;;  %v4651_v58 = vsel %vm1183_vm3, %v4649_v33, %v4650_v45  ;;  %v4668_v15 = vsel %vm1459_vm10, %v4666_v4, %v4667_v55  ;;  %v4685_v17 = vsel %vm2694_vm12, %v4683_v22, %v4684_v10 }
 0x7d8   : >> { %v4662_v7 = vmax.f32 %v7764_v48, %v4651_v58  ;;  %v4702_v26 = vsel %vm2760_vm13, %v4700_v61, %v4701_v50  ;;  %v7848_v58 = vadd.s32 4294967294, %v519_v42 }
 0x7d9   : >> { %v4639_v3 = vadd.f32 %v4635_v23, %v7621_v18 }
 0x7da   : >> { %v4679_v0 = vmax.f32 %v4662_v7, %v4668_v15  ;;  %5102 = vmatpush.bf16.msrb.mxu1 %v5967_v38  ;;  %v7852_v7 = vadd.s32 2, %v519_v42  ;;  %vm4733_vm1 = vcmp.lt.s32.totalorder %v7848_v58, 12 }
 0x7db   : >> { %v4643_v11 = vmax.f32 %v4639_v3, 0.0 }
 0x7dc   : >> { %v4626_v18 = vpop.f32.mrf.mxu1  ;;  %v4696_v30 = vmax.f32 %v4679_v0, %v4685_v17  ;;  %vm4924_vm7 = vcmp.lt.s32.totalorder %v7852_v7, 12 }
 0x7dd   : >> { %v4652_v1 = vrot.slane %v4643_v11, 1  ;;  %v4669_v57 = vrot.slane %v4643_v11, 2  ;;  %v4632_v20 = vadd.f32 %v4626_v18, %v4584_v56  ;;  %v4686_v6 = vrot.slane %v4643_v11, 3 }
 0x7de   : >> { %v4713_v41 = vmax.f32 %v4696_v30, %v4702_v26  ;;  %v4703_v29 = vrot.slane %v4643_v11, 4 }
 0x7df   : >> { %v4653_v32 = vsel %vm1183_vm3, %v4650_v45, %v4652_v1  ;;  %v4636_v5 = vadd.f32 %v7703_v44, %v4632_v20  ;;  %v4670_v12 = vsel %vm1459_vm10, %v4667_v55, %v4669_v57  ;;  %v7826_v44 = vld [vmem:[%s8008_s3 + $0x20] sm:$0xff]  ;;  %v4687_v47 = vsel %vm2694_vm12, %v4684_v10, %v4686_v6 }
 0x7e0   : >> { %v4663_v39 = vmax.f32 %v7778_v34, %v4653_v32  ;;  %4717 = vst.msk [vmem:[#allocation2] sm:$0xff] %vm910_vm2, %v4713_v41  ;;  %v4704_v35 = vsel %vm2760_vm13, %v4701_v50, %v4703_v29  ;;  %4854 = vmatpush.bf16.msra.mxu2 %v7826_v44 }
 0x7e1   : >> { %v4640_v21 = vadd.f32 %v4636_v5, %v7637_v63  ;;  %v5965_v63 = vld [vmem:[%s8008_s3 + $0x30] sm:$0xff]  ;;  %v1234_v5 = vadd.s32 1, %v519_v42 }
 0x7e2   : >> { %v4680_v13 = vmax.f32 %v4663_v39, %v4670_v12  ;;  %4907 = vmatpush.bf16.msrb.mxu3 %v5965_v63  ;;  %5073 = vmatpush.bf16.msrb.mxu0 %v5965_v63 }
 0x7e3   : >> { %v4644_v49 = vmax.f32 %v4640_v21, 0.0  ;;  %vm4871_vm8 = vcmp.lt.s32.totalorder %v1234_v5, 12 }
 0x7e4   : >> { %v4697_v25 = vmax.f32 %v4680_v13, %v4687_v47 }
 0x7e5   : >> { %v4654_v59 = vrot.slane %v4644_v49, 1  ;;  %v4671_v9 = vrot.slane %v4644_v49, 2  ;;  %v4688_v48 = vrot.slane %v4644_v49, 3  ;;  %v4705_v43 = vrot.slane %v4644_v49, 4 }
 0x7e6   : >> { %v4714_v2 = vmax.f32 %v4697_v25, %v4704_v35 }
 0x7e7   : >> { %v4655_v53 = vsel %vm1183_vm3, %v4652_v1, %v4654_v59  ;;  %v4661_v28 = vsel %vm1183_vm3, %v4654_v59, %v4649_v33  ;;  %v4672_v31 = vsel %vm1459_vm10, %v4669_v57, %v4671_v9  ;;  %v4678_v51 = vsel %vm1459_vm10, %v4671_v9, %v4666_v4 }
 0x7e8   : >> { %4718 = vst.msk [vmem:[#allocation2 + $0x8] sm:$0xff] %vm910_vm2, %v4714_v2  ;;  %v4664_v14 = vmax.f32 %v4643_v11, %v4655_v53  ;;  %v4665_v37 = vmax.f32 %v4644_v49, %v4661_v28  ;;  %v4689_v8 = vsel %vm2694_vm12, %v4686_v6, %v4688_v48  ;;  %v4695_v16 = vsel %vm2694_vm12, %v4688_v48, %v4683_v22  ;;  %v7900_v48 = vld [vmem:[%s8009_s4] ss:$0 sm:$0xff] }
 0x7e9   : >> { %v4706_v33 = vsel %vm2760_vm13, %v4703_v29, %v4705_v43  ;;  %v4712_v55 = vsel %vm2760_vm13, %v4705_v43, %v4700_v61  ;;  %v7846_v4 = vadd.s32 4294967295, %v519_v42 }
 0x7ea   : >> { %v4681_v34 = vmax.f32 %v4664_v14, %v4672_v31  ;;  %v4682_v27 = vmax.f32 %v4665_v37, %v4678_v51 }
 0x7eb   : >> { %vm4755_vm15 = vcmp.lt.s32.totalorder %v7846_v4, 12 }
 0x7ec   : >> { %v4698_v38 = vmax.f32 %v4681_v34, %v4689_v8  ;;  %v4699_v45 = vmax.f32 %v4682_v27, %v4695_v16 }
 0x7ee   : >> { %v4715_v24 = vmax.f32 %v4698_v38, %v4706_v33  ;;  %v4716_v23 = vmax.f32 %v4699_v45, %v4712_v55 }
 0x7ef   : >> { %v7850_v10 = vld [vmem:[#allocation2] ss:$2 sm:$0xff] }
 0x7f0   : >> { %4719 = vst.msk [vmem:[#allocation2 + $0x10] sm:$0xff] %vm910_vm2, %v4715_v24  ;;  %v4749_v22 = vrot.slane %v7850_v10, 7  ;;  %v4727_v50 = vrot.slane %v7850_v10, 6  ;;  %v4916_v0 = vrot.slane %v7850_v10, 2  ;;  %v4863_v29 = vrot.slane %v7850_v10, 1 }
 0x7f1   : >> { %4720 = vst.msk [vmem:[#allocation2 + $0x18] sm:$0xff] %vm910_vm2, %v4716_v23 }
 0x7f8   : >> { %v7854_v3 = vld [vmem:[#allocation2 + $0x10] ss:$2 sm:$0xff] }
 0x7f9   : >> { %v4747_v52 = vrot.slane %v7854_v3, 7  ;;  %v4724_v15 = vrot.slane %v7854_v3, 6  ;;  %v4917_v54 = vrot.slane %v7854_v3, 2  ;;  %v4864_v12 = vrot.slane %v7854_v3, 1 }
 0x7fb   : >> { %v4750_v11 = vsel %vm725_vm4, %v4749_v22, %v4747_v52  ;;  %v4753_v61 = vsel %vm725_vm4, %v4747_v52, %v4749_v22  ;;  %v4728_v17 = vsel %vm464_vm0, %v4727_v50, %v4724_v15  ;;  %v4731_v56 = vsel %vm464_vm0, %v4724_v15, %v4727_v50 }
 0x7fc   : >> { %v4762_v18 = vsel %vm789_vm5, %v4753_v61, 0.0  ;;  %v4763_v30 = vsel %vm4755_vm15, %v4750_v11, 0.0  ;;  %v4740_v1 = vsel %vm615_vm6, %v4731_v56, 0.0  ;;  %v4741_v57 = vsel %vm4733_vm1, %v4728_v17, 0.0 }
 0x7fd   : >> { %v4764_v26 = vpack.c.bf16 %v4763_v30, %v4762_v18  ;;  %v4742_v20 = vpack.c.bf16 %v4741_v57, %v4740_v1  ;;  %v4918_v41 = vsel %vm1459_vm10, %v4916_v0, %v4917_v54  ;;  %v4922_v32 = vsel %vm1459_vm10, %v4917_v54, %v4916_v0 }
 0x7fe   : >> { %v4932_v6 = vsel %vm4924_vm7, %v4922_v32, 0.0  ;;  %v4869_v13 = vsel %vm1183_vm3, %v4864_v12, %v4863_v29  ;;  %v4865_v21 = vsel %vm1183_vm3, %v4863_v29, %v4864_v12 }
 0x7ff   : >> { %5804 = vmatmul.msk.bf16.vlgmr.msrb.gmra.mxu2 %vm910_vm2, %v4764_v26  ;;  %5813 = vmatmul.msk.bf16.vlgmr.msra.gmra.mxu3 %vm910_vm2, %v4742_v20  ;;  %v4933_v39 = vpack.c.bf16 %v4932_v6, %v4918_v41 }
 0x800   : >> { %5025 = vmatpush.bf16.msrb.mxu2 %v7773_v19  ;;  %5043 = vmatpush.bf16.msra.mxu3 %v7814_v40  ;;  %v4879_v19 = vsel %vm4871_vm8, %v4869_v13, 0.0  ;;  %v4827_v40 = vpack.c.bf16 %v7854_v3, %v7850_v10 }
 0x801   : >> { %5852 = vmatmul.msk.bf16.vlgmr.msra.gmra.mxu0 %vm910_vm2, %v4933_v39  ;;  %v4880_v36 = vpack.c.bf16 %v4879_v19, %v4865_v21 }
 0x804   : >> { %5044 = vmatpush.bf16.msra.mxu3 %v7826_v44  ;;  %5026 = vmatpush.bf16.msrb.mxu2 %v7787_v46 }
 0x80f   : >> { %5826 = vmatmul.msk.bf16.vlgmr.msra.gmra.mxu2 %vm910_vm2, %v4827_v40  ;;  %5839 = vmatmul.msk.bf16.vlgmr.msrb.gmra.mxu3 %vm910_vm2, %v4880_v36 }
 0x87e   : >> { %v4962_v59 = vpop.f32.mrf.mxu0 }
 0x882   : >> { %v4793_v44 = vpop.f32.mrf.mxu2  ;;  %v4822_v47 = vpop.f32.mrf.mxu3 }
 0x883   : >> { %v4823_v49 = vadd.f32 %v4822_v47, %v4793_v44 }
 0x886   : >> { %v4964_v34 = vpop.f32.mrf.mxu0 }
 0x88a   : >> { %v4795_v46 = vpop.f32.mrf.mxu2  ;;  %v4824_v25 = vpop.f32.mrf.mxu3 }
 0x88b   : >> { %v4825_v53 = vadd.f32 %v4824_v25, %v4795_v46 }
 0x892   : >> { %v4856_v35 = vpop.f32.mrf.mxu2  ;;  %v4909_v2 = vpop.f32.mrf.mxu3 }
 0x893   : >> { %v4861_v63 = vadd.f32 %v4856_v35, %v4823_v49 }
 0x895   : >> { %v4914_v9 = vadd.f32 %v4909_v2, %v4861_v63 }
 0x897   : >> { %v4967_v28 = vadd.f32 %v4962_v59, %v4914_v9 }
 0x899   : >> { %v4973_v31 = vadd.f32 %v7900_v48, %v4967_v28 }
 0x89a   : >> { %v4858_v14 = vpop.f32.mrf.mxu2  ;;  %v4911_v51 = vpop.f32.mrf.mxu3 }
 0x89b   : >> { %v4862_v37 = vadd.f32 %v4858_v14, %v4825_v53  ;;  %v4975_v8 = vmax.f32 %v4973_v31, 0.0 }
 0x89d   : >> { %v4915_v43 = vadd.f32 %v4911_v51, %v4862_v37  ;;  %v4981_v45 = vrot.slane %v4975_v8, 6  ;;  %v4991_v33 = vrot.slane %v4975_v8, 7  ;;  %v5053_v42 = vrot.slane %v4975_v8, 1 }
 0x89e   : >> { %v5082_v4 = vrot.slane %v4975_v8, 2 }
 0x89f   : >> { %v4968_v27 = vadd.f32 %v4964_v34, %v4915_v43 }
 0x8a1   : >> { %v4974_v16 = vadd.f32 %v7900_v48, %v4968_v27 }
 0x8a3   : >> { %v4976_v38 = vmax.f32 %v4974_v16, 0.0 }
 0x8a5   : >> { %v4978_v55 = vrot.slane %v4976_v38, 6  ;;  %v4989_v24 = vrot.slane %v4976_v38, 7  ;;  %v5054_v23 = vrot.slane %v4976_v38, 1  ;;  %v5033_v22 = vpack.c.bf16 %v4976_v38, %v4975_v8 }
 0x8a6   : >> { %v5083_v62 = vrot.slane %v4976_v38, 2 }
 0x8a7   : >> { %v4992_v52 = vsel %vm725_vm4, %v4991_v33, %v4989_v24  ;;  %v4995_v15 = vsel %vm725_vm4, %v4989_v24, %v4991_v33  ;;  %v4982_v50 = vsel %vm464_vm0, %v4981_v45, %v4978_v55  ;;  %v4985_v54 = vsel %vm464_vm0, %v4978_v55, %v4981_v45  ;;  %5855 = vmatmul.msk.bf16.vlgmr.msra.gmra.mxu3 %vm910_vm2, %v5033_v22 }
 0x8a8   : >> { %v4996_v0 = vsel %vm789_vm5, %v4995_v15, 0.0  ;;  %v4997_v11 = vsel %vm4755_vm15, %v4992_v52, 0.0  ;;  %v4986_v61 = vsel %vm615_vm6, %v4985_v54, 0.0  ;;  %v4987_v17 = vsel %vm4733_vm1, %v4982_v50, 0.0 }
 0x8a9   : >> { %v4998_v56 = vpack.c.bf16 %v4997_v11, %v4996_v0  ;;  %v4988_v18 = vpack.c.bf16 %v4987_v17, %v4986_v61  ;;  %v5055_v30 = vsel %vm1183_vm3, %v5053_v42, %v5054_v23  ;;  %v5059_v1 = vsel %vm1183_vm3, %v5054_v23, %v5053_v42  ;;  %v5972_v11 = vld [vmem:[%s8010_s5 + $0x18] sm:$0xff] (%p393_p5)  ;;  %v5970_v61 = vld [vmem:[%s8010_s5 + $0x8] sm:$0xff] (%p393_p5) }
 0x8aa   : >> { %v5061_v57 = vsel %vm4871_vm8, %v5059_v1, 0.0  ;;  %v5088_v58 = vsel %vm1459_vm10, %v5083_v62, %v5082_v4  ;;  %v5084_v26 = vsel %vm1459_vm10, %v5082_v4, %v5083_v62  ;;  %v5974_v17 = vld [vmem:[%s8010_s5 + $0x28] sm:$0xff] (%p393_p5)  ;;  %5197 = vmatpush.bf16.msra.mxu0 (%p393_p5), %v5972_v11  ;;  %v5973_v1 = vld [vmem:[%s8010_s5 + $0x20] sm:$0xff] (%p393_p5)  ;;  %vm5387_vm0 = vcmask (%p393_p5), 34816  }
 0x8ab   : >> { %5853 = vmatmul.msk.bf16.vlgmr.msra.gmra.mxu1 %vm910_vm2, %v4998_v56  ;;  %5854 = vmatmul.msk.bf16.vlgmr.msrb.gmra.mxu2 %vm910_vm2, %v4988_v18  ;;  %v5062_v60 = vpack.c.bf16 %v5061_v57, %v5055_v30  ;;  %v5090_v20 = vsel %vm4924_vm7, %v5088_v58, 0.0  ;;  %v5976_v56 = vld [vmem:[%s8010_s5 + $0x38] sm:$0xff] (%p393_p5)  ;;  %v5971_v18 = vld [vmem:[%s8010_s5 + $0x10] sm:$0xff] (%p393_p5)  ;;  %v5969_v30 = vld [vmem:[%s8010_s5] sm:$0xff] (%p393_p5) }
 0x8ac   : >> { %v5091_v41 = vpack.c.bf16 %v5090_v20, %v5084_v26  ;;  %5225 = vmatpush.bf16.msra.mxu1 (%p393_p5), %v5970_v61  ;;  %v5975_v57 = vld [vmem:[%s8010_s5 + $0x30] sm:$0xff] (%p393_p5)  ;;  %5261 = vmatpush.bf16.msra.mxu2 (%p393_p5), %v5974_v17 }
 0x8ad   : >> { %5856 = vmatmul.msk.bf16.vlgmr.msrb.gmra.mxu0 %vm910_vm2, %v5062_v60  ;;  %5298 = vmatpush.bf16.msra.mxu3 (%p393_p5), %v5976_v56 }
 0x8ae   : > { %5198 = vmatpush.bf16.msra.mxu0 (%p393_p5), %v5971_v18 }
 0x8b0   : > { %5226 = vmatpush.bf16.msra.mxu1 (%p393_p5), %v5969_v30  ;;  %5262 = vmatpush.bf16.msra.mxu2 (%p393_p5), %v5973_v1 }
 0x8b1   : > { %5299 = vmatpush.bf16.msra.mxu3 (%p393_p5), %v5975_v57 }
 0x8bb   : >> { %5857 = vmatmul.msk.bf16.vlgmr.msrb.gmra.mxu1 %vm910_vm2, %v5091_v41 }
 0x928   : >> { %v5011_v32 = vpop.f32.mrf.mxu1 }
 0x92a   : >> { %v5046_v12 = vpop.f32.mrf.mxu3  ;;  %v5075_v13 = vpop.f32.mrf.mxu0 }
 0x92e   : >> { %v5028_v6 = vpop.f32.mrf.mxu2 }
 0x92f   : >> { %v5029_v39 = vadd.f32 %v5028_v6, %v5011_v32  ;;  %v5978_v6 = vld [vmem:[%s8012_s7 + $0x8] sm:$0xff] (%p393_p5) }
 0x930   : >> { %v5013_v5 = vpop.f32.mrf.mxu1  ;;  %5342 = vmatpush.bf16.msrb.mxu0 (%p393_p5), %v5978_v6 }
 0x931   : >> { %v5051_v29 = vadd.f32 %v5046_v12, %v5029_v39  ;;  %v5977_v39 = vld [vmem:[%s8012_s7] sm:$0xff] (%p393_p5) }
 0x932   : >> { %v5048_v47 = vpop.f32.mrf.mxu3  ;;  %v5077_v25 = vpop.f32.mrf.mxu0  ;;  %v5979_v12 = vld [vmem:[%s8014_s9] sm:$0xff] (%p393_p5) }
 0x933   : >> { %v5080_v40 = vadd.f32 %v5075_v13, %v5051_v29 }
 0x934   : > { %5343 = vmatpush.bf16.msrb.mxu0 (%p393_p5), %v5977_v39 }
 0x936   : >> { %v5030_v21 = vpop.f32.mrf.mxu2 }
 0x937   : >> { %v5031_v19 = vadd.f32 %v5030_v21, %v5013_v5  ;;  %v5980_v5 = vld [vmem:[%s8014_s9 + $0x8] sm:$0xff] (%p393_p5) }
 0x938   : >> { %v5104_v36 = vpop.f32.mrf.mxu1  ;;  %5380 = vmatpush.bf16.msrb.mxu1 (%p393_p5), %v5980_v5 }
 0x939   : >> { %v5109_v44 = vadd.f32 %v5104_v36, %v5080_v40  ;;  %v5052_v46 = vadd.f32 %v5048_v47, %v5031_v19 }
 0x93b   : >> { %v5111_v7 = vadd.f32 %v7900_v48, %v5109_v44  ;;  %v5081_v49 = vadd.f32 %v5077_v25, %v5052_v46  ;;  %v6007_v44 = vld [vmem:[%s8011_s6] ss:$0 sm:$0xff] (%p393_p5) }
 0x93c   : > { %5381 = vmatpush.bf16.msrb.mxu1 (%p393_p5), %v5979_v12 }
 0x93d   : >> { %v5113_v63 = vadd.f32 %v5111_v7, %v7850_v10 }
 0x93f   : >> { %v5115_v9 = vmax.f32 %v5113_v63, 0.0 }
 0x940   : >> { %v5106_v35 = vpop.f32.mrf.mxu1 }
 0x941   : >> { %v5110_v2 = vadd.f32 %v5106_v35, %v5081_v49  ;;  %v5119_v14 = vrot.slane %v5115_v9, 1  ;;  %v5128_v51 = vrot.slane %v5115_v9, 2  ;;  %v5137_v38 = vrot.slane %v5115_v9, 3 }
 0x942   : >> { %v5146_v55 = vrot.slane %v5115_v9, 4 }
 0x943   : >> { %v5112_v59 = vadd.f32 %v7900_v48, %v5110_v2 }
 0x945   : >> { %v5114_v53 = vadd.f32 %v5112_v59, %v7854_v3  ;;  %v6008_v59 = vld [vmem:[%s8013_s8] ss:$0 sm:$0xff] (%p393_p5) }
 0x947   : >> { %v5116_v28 = vmax.f32 %v5114_v53, 0.0 }
 0x949   : >> { %v5120_v37 = vrot.slane %v5116_v28, 1  ;;  %v5129_v31 = vrot.slane %v5116_v28, 2  ;;  %v5138_v27 = vrot.slane %v5116_v28, 3  ;;  %v5147_v45 = vrot.slane %v5116_v28, 4 }
 0x94b   : >> { %v5121_v43 = vsel %vm1183_vm3, %v5119_v14, %v5120_v37  ;;  %v5125_v34 = vsel %vm1183_vm3, %v5120_v37, %v5119_v14  ;;  %v5130_v10 = vsel %vm1459_vm10, %v5128_v51, %v5129_v31  ;;  %v5134_v48 = vsel %vm1459_vm10, %v5129_v31, %v5128_v51  ;;  %v6009_v31 = vld [vmem:[%s8015_s10] ss:$0 sm:$0xff] (%p393_p5) }
 0x94c   : >> { %v5126_v8 = vmax.f32 %v5115_v9, %v5121_v43  ;;  %v5127_v16 = vmax.f32 %v5116_v28, %v5125_v34  ;;  %v5139_v24 = vsel %vm2694_vm12, %v5137_v38, %v5138_v27  ;;  %v5143_v23 = vsel %vm2694_vm12, %v5138_v27, %v5137_v38 }
 0x94d   : >> { %v5148_v52 = vsel %vm2760_vm13, %v5146_v55, %v5147_v45  ;;  %v5152_v15 = vsel %vm2760_vm13, %v5147_v45, %v5146_v55 }
 0x94e   : >> { %v5135_v3 = vmax.f32 %v5126_v8, %v5130_v10  ;;  %v5136_v33 = vmax.f32 %v5127_v16, %v5134_v48 }
 0x950   : >> { %v5144_v42 = vmax.f32 %v5135_v3, %v5139_v24  ;;  %v5145_v22 = vmax.f32 %v5136_v33, %v5143_v23 }
 0x952   : >> { %v5153_v50 = vmax.f32 %v5144_v42, %v5148_v52  ;;  %v5154_v54 = vmax.f32 %v5145_v22, %v5152_v15 }
 0x954   : >> { %5155 = vst.msk [vmem:[#allocation2] sm:$0xff] %vm910_vm2, %v5153_v50 }
 0x955   : >> { %5156 = vst.msk [vmem:[#allocation2 + $0x8] sm:$0xff] %vm910_vm2, %v5154_v54 }
 0x959   : > { %395 = sbr.rel (!%p393_p5) target bundleno = 14 (0xe), region = 120 }
 0x95c   : >> { %v5157_v0 = vld [vmem:[#allocation2] ss:$2 sm:$0xff] }
 0x95d   : >> { %5160 = vst.msk [vmem:[%s5159_s20] sm:$0xff] %vm910_vm2, %v5157_v0 }
 0x964   : > { %v5168_v60 = vld [vmem:[#allocation3 + $0x1] ss:$8 sm:$0x7]  ;;  %v5161_v62 = vld [vmem:[#allocation3] ss:$8 sm:$0x7] }
 0x965   : > { %v5233_v4 = vld [vmem:[#allocation3 + $0x2] ss:$8 sm:$0x7]  ;;  %v5270_v58 = vld [vmem:[#allocation3 + $0x3] ss:$8 sm:$0x7]  ;;  %v5169_v26 = vpack.c.bf16 %v5168_v60, %v5168_v60  ;;  %v5162_v20 = vpack.c.bf16 %v5161_v62, %v5161_v62 }
 0x966   : > { %v5234_v41 = vpack.c.bf16 %v5233_v4, %v5233_v4  ;;  %v5271_v32 = vpack.c.bf16 %v5270_v58, %v5270_v58 }
 0x967   : > { %5871 = vmatmul.msk.bf16.vlgmr.msra.gmra.mxu0 %vm910_vm2, %v5169_v26  ;;  %5880 = vmatmul.msk.bf16.vlgmr.msra.gmra.mxu1 %vm910_vm2, %v5162_v20 }
 0x968   : > { %5893 = vmatmul.msk.bf16.vlgmr.msra.gmra.mxu2 %vm910_vm2, %v5234_v41  ;;  %5906 = vmatmul.msk.bf16.vlgmr.msra.gmra.mxu3 %vm910_vm2, %v5271_v32 }
 0x9e4   : > { %v5200_v29 = vpop.f32.mrf.mxu0  ;;  %v5228_v13 = vpop.f32.mrf.mxu1 }
 0x9e5   : > { %v5229_v21 = vadd.f32 %v5228_v13, %v5200_v29 }
 0x9eb   : > { %v5264_v19 = vpop.f32.mrf.mxu2  ;;  %v5301_v40 = vpop.f32.mrf.mxu3 }
 0x9ec   : > { %v5268_v36 = vadd.f32 %v5264_v19, %v5229_v21  ;;  %v5202_v47 = vpop.f32.mrf.mxu0  ;;  %v5230_v46 = vpop.f32.mrf.mxu1 }
 0x9ee   : > { %v5305_v7 = vadd.f32 %v5301_v40, %v5268_v36 }
 0x9f0   : > { %v5310_v25 = vadd.f32 %v6007_v44, %v5305_v7 }
 0x9f2   : > { %v5311_v49 = vmax.f32 %v5310_v25, 0.0 }
 0x9f3   : > { %v5266_v35 = vpop.f32.mrf.mxu2  ;;  %v5303_v63 = vpop.f32.mrf.mxu3 }
 0x9f4   : > { %v5312_v2 = vpack.c.bf16 %v5311_v49, %v5311_v49 }
 0x9f6   : > { %5915 = vmatmul.msk.bf16.vlgmr.msrb.gmra.mxu0 %vm910_vm2, %v5312_v2 }
 0xa73   : > { %v5345_v9 = vpop.f32.mrf.mxu0 }
 0xa74   : > { %v5346_v53 = vadd.f32 %v6008_v59, %v5345_v9 }
 0xa76   : > { %v5349_v28 = vmax.f32 %v5346_v53, 0.0 }
 0xa78   : > { %v5350_v14 = vpack.c.bf16 %v5349_v28, %v5349_v28 }
 0xa7a   : > { %5924 = vmatmul.msk.bf16.vlgmr.msrb.gmra.mxu1 %vm910_vm2, %v5350_v14 }
 0xa7b   : > { %v5347_v37 = vpop.f32.mrf.mxu0 }
 0xaf7   : > { %v5383_v51 = vpop.f32.mrf.mxu1 }
 0xaf8   : > { %v5384_v43 = vadd.f32 %v6009_v31, %v5383_v51 }
 0xafa   : > { %v5388_v34 = vsel %vm5387_vm0, %v5384_v43, -inf }
 0xafb   : > { %5389 = vmax.xlane.f32.xlu0 %v5388_v34 }
 0xaff   : > { %v5385_v27 = vpop.f32.mrf.mxu1 }
 0xb6e   : > { %v5390_v8 = vpop.xlane.xlu0 %5389 }
 0xb6f   : > { %v5391_v16 = vsub.f32 %v5384_v43, %v5390_v8 }
 0xb71   : > { %v5392_v38 = vmul.f32 1.442695, %v5391_v16 }
 0xb73   : > { %6010 = vpow2.f32 %v5392_v38 }
 0xb79   : > { %v6011_v10 = vpop.eup %6010 }
 0xb7a   : > { %v5394_v48 = vsel %vm5387_vm0, %v6011_v10, 0.0 }
 0xb7b   : > { %5395 = vadd.xlane.f32.xlu0 %v5394_v48 }
 0xbee   : > { %v5396_v45 = vpop.xlane.xlu0 %5395 }
 0xbef   : > { %6012 = vlog2.f32 %v5396_v45 }
 0xbf5   : > { %v6013_v3 = vpop.eup %6012 }
 0xbf6   : > { %v5398_v33 = vmul.f32 0.6931472, %v6013_v3 }
 0xbf8   : > { %v5399_v55 = vsub.f32 %v5391_v16, %v5398_v33 }
 0xbfa   : > { %5400 = vst.msk [vmem:[%s6101_s24] sm:$0x7] %vm5387_vm0, %v5399_v55 }
 0xbfb PF: > { %s21_s17 = sadd.s32 1, %s6024_s17  }
 0xbfc   : > { %p18_p6 = scmp.ge.s32.totalorder %s21_s17, 4  }
 0xbfe   :  { %20 = sbr.rel (!%p18_p6) target bundleno = 1 (0x1), region = 131 }

</bundles_post_ra>
